<compile_context>
chip_gen: v7x
topology: tpu7x:2x2x1
jax: 0.10.0
libtpu: 0.0.40
codegen_flags: <defaults>
</compile_context>

<pallas_src>
import functools

import jax
import jax.numpy as jnp
import numpy as np
from jax.experimental import pallas as pl
from jax.experimental.pallas import tpu as pltpu


def _round_up(x, m):
    return (x + m - 1) // m * m


def _classifier_kernel(start_ref,      # (B_pad, 1) int32 segment start (point index)
                       end_ref,        # (B_pad, 1) int32 segment end   (point index, exclusive)
                       invcnt_ref,     # (B_pad, 1) f32   1/count per segment (0 for padded rows)
                       feat_ref,       # (tile_n, D) point-feature tile (bf16 or f32)
                       w1_ref, b1_ref,  # Linear(D,256)  with BN1 folded in
                       w2_ref, b2_ref,  # Linear(256,128) with BN2 folded in
                       w3_ref, b3_ref,  # Linear(128, C_pad) (classes zero-padded to lane width)
                       out_ref,        # (B_pad, C_pad) logits, written once on the last step
                       acc_ref,        # (B_pad, D) f32 scratch: segment-sum accumulator
                       *, n_points, tile_n, ragged_tail):
    t = pl.program_id(0)
    b_pad = acc_ref.shape[0]

    @pl.when(t == 0)
    def _():
        acc_ref[...] = jnp.zeros_like(acc_ref)

    feat = feat_ref[...]
    if ragged_tail:
        # N is not a multiple of tile_n: the last block's trailing rows are undefined
        # bytes in VMEM. Zero them on the VPU before the MXU (a zero one-hot column is
        # NOT enough: 0 * NaN/Inf garbage would propagate into the accumulator).
        rows = t * tile_n + jax.lax.broadcasted_iota(jnp.int32, (tile_n, 1), 0)
        feat = jnp.where(rows < n_points, feat, jnp.zeros_like(feat))

    # ---- segment_csr sum for this tile: one-hot built in-kernel (VPU) + matmul (MXU) ----
    col = t * tile_n + jax.lax.broadcasted_iota(jnp.int32, (b_pad, tile_n), 1)
    onehot = ((col >= start_ref[...]) & (col < end_ref[...])).astype(feat.dtype)
    acc_ref[...] += jnp.dot(onehot, feat, preferred_element_type=jnp.float32)  # (B_pad, D) f32

    # ---- on the last tile: mean, then the whole cls_head MLP batched to B_pad ----
    @pl.when(t == pl.num_programs(0) - 1)
    def _():
        pooled = acc_ref[...] * invcnt_ref[...]                  # segment mean (B_pad, D)

        h = jnp.dot(pooled, w1_ref[...], preferred_element_type=jnp.float32) + b1_ref[...]
        h = jnp.maximum(h, 0.0)                                  # ReLU; Dropout(p=0.5) = id in eval

        h = jnp.dot(h, w2_ref[...], preferred_element_type=jnp.float32) + b2_ref[...]
        h = jnp.maximum(h, 0.0)

        logits = jnp.dot(h, w3_ref[...], preferred_element_type=jnp.float32) + b3_ref[...]
        out_ref[...] = logits.astype(out_ref.dtype)              # single lane-dense store


def default_classifier_forward(feat, offset, params, num_classes, *, tile_n_max=2048):
    """feat: [N, D] per-point backbone features (bf16 preferred); offset: [B] cumulative counts."""
    N, D = feat.shape
    B = int(offset.shape[0])
    B_pad = _round_up(max(B, 1), 8)           # sublane-aligned batch rows for the MLP
    C_pad = _round_up(num_classes, 128)       # lane-dense output

    # Big point tiles: HBM-stream bound, per-grid-step overhead ~0.35us, so >=1024-2048 rows.
    tile_n = min(tile_n_max, _round_up(N, 128))
    num_tiles = int(pl.cdiv(N, tile_n))
    ragged_tail = (N % tile_n) != 0           # no jnp.pad of feat; last tile masked in-kernel

    # segment metadata: O(B) work, tiny (B_pad, 1) VMEM vectors (no N-length seg-id stream)
    offset = offset.astype(jnp.int32)
    if not isinstance(offset, jax.core.Tracer):
        assert int(offset[-1]) == N, "offset[-1] must equal the number of points"
    indptr = jnp.concatenate([jnp.zeros((1,), jnp.int32), offset])
    starts = jnp.pad(indptr[:-1], (0, B_pad - B)).reshape(B_pad, 1)   # padded rows: [0, 0) -> empty
    ends = jnp.pad(indptr[1:], (0, B_pad - B)).reshape(B_pad, 1)
    counts = (indptr[1:] - indptr[:-1]).astype(jnp.float32)
    inv_counts = jnp.where(counts > 0, 1.0 / jnp.maximum(counts, 1.0), 0.0)
    inv_counts = jnp.pad(inv_counts, (0, B_pad - B)).reshape(B_pad, 1)

    # fold eval-mode BatchNorm into the preceding Linear (y*s + t == x @ (W*s) + (b*s + t))
    w1 = params["w1"] * params["s1"]
    b1 = params["b1"] * params["s1"] + params["t1"]
    w2 = params["w2"] * params["s2"]
    b2 = params["b2"] * params["s2"] + params["t2"]
    w3 = jnp.pad(params["w3"], ((0, 0), (0, C_pad - num_classes)))
    b3 = jnp.pad(params["b3"], ((0, 0), (0, C_pad - num_classes)))

    # Explicit VMEM budget: 2x feat tile (double-buffer) + 2x weights + acc/out + headroom,
    # capped at 48 MiB so it stays under v7x's 64 MiB physical VMEM.
    itemsize = jnp.dtype(feat.dtype).itemsize
    weight_bytes = 4 * (D * 256 + 256 + 256 * 128 + 128 + 128 * C_pad + C_pad)
    vmem_budget = (2 * tile_n * D * itemsize
                   + 2 * weight_bytes
                   + 4 * B_pad * (D + C_pad + 3)
                   + (8 << 20))
    vmem_limit = int(min(max(vmem_budget, 16 << 20), 48 << 20))

    kernel = functools.partial(_classifier_kernel,
                               n_points=N, tile_n=tile_n, ragged_tail=ragged_tail)

    grid_spec = pltpu.PrefetchScalarGridSpec(
        num_scalar_prefetch=0,
        grid=(num_tiles,),
        in_specs=[
            pl.BlockSpec((B_pad, 1), lambda t: (0, 0)),           # segment starts
            pl.BlockSpec((B_pad, 1), lambda t: (0, 0)),           # segment ends
            pl.BlockSpec((B_pad, 1), lambda t: (0, 0)),           # 1/counts
            # NOTE: if profiling shows exposed DMA per step, add pipeline_mode=pl.Buffered(3) here.
            pl.BlockSpec((tile_n, D), lambda t: (t, 0)),          # feature tile (HBM stream)
            pl.BlockSpec((D, 256), lambda t: (0, 0)),
            pl.BlockSpec((1, 256), lambda t: (0, 0)),
            pl.BlockSpec((256, 128), lambda t: (0, 0)),
            pl.BlockSpec((1, 128), lambda t: (0, 0)),
            pl.BlockSpec((128, C_pad), lambda t: (0, 0)),
            pl.BlockSpec((1, C_pad), lambda t: (0, 0)),
        ],
        out_specs=pl.BlockSpec((B_pad, C_pad), lambda t: (0, 0)),
        scratch_shapes=[pltpu.VMEM((B_pad, D), jnp.float32)],
    )

    out = pl.pallas_call(
        kernel,
        out_shape=jax.ShapeDtypeStruct((B_pad, C_pad), jnp.float32),
        grid_spec=grid_spec,
        compiler_params=pltpu.CompilerParams(
            # single grid axis is the point-tile reduction (resident accumulator/output)
            # TODO(synk): on v7x (2 TCs) a ("parallel","arbitrary") split of the point axis
            #             with per-core partial sums could reach 2x if one TC can't saturate HBM.
            dimension_semantics=("arbitrary",),
            vmem_limit_bytes=vmem_limit,
        ),
    )(starts, ends, inv_counts, feat, w1, b1, w2, b2, w3, b3)

    return out[:B, :num_classes]


def _fold_bn(gamma, beta, running_mean, running_var, eps=1e-5):
    scale = gamma / jnp.sqrt(running_var + eps)
    shift = beta - running_mean * scale
    return scale[None, :], shift[None, :]


def make_params(key, embed_dim=256, num_classes=40):
    ks = jax.random.split(key, 14)
    p = {}
    # Linear(embed_dim, 256)
    p["w1"] = jax.random.normal(ks[0], (embed_dim, 256), jnp.float32) * 0.05
    p["b1"] = jax.random.normal(ks[1], (1, 256), jnp.float32) * 0.01
    # BatchNorm1d(256), eval mode, non-trivial stats (exercises the BN fold)
    p["s1"], p["t1"] = _fold_bn(
        jax.random.uniform(ks[2], (256,), minval=0.5, maxval=1.5),
        jax.random.normal(ks[3], (256,)) * 0.1,
        jax.random.normal(ks[4], (256,)) * 0.1,
        jax.random.uniform(ks[5], (256,), minval=0.5, maxval=1.5))
    # Linear(256, 128)
    p["w2"] = jax.random.normal(ks[6], (256, 128), jnp.float32) * 0.05
    p["b2"] = jax.random.normal(ks[7], (1, 128), jnp.float32) * 0.01
    # BatchNorm1d(128)
    p["s2"], p["t2"] = _fold_bn(
        jax.random.uniform(ks[8], (128,), minval=0.5, maxval=1.5),
        jax.random.normal(ks[9], (128,)) * 0.1,
        jax.random.normal(ks[10], (128,)) * 0.1,
        jax.random.uniform(ks[11], (128,), minval=0.5, maxval=1.5))
    # Linear(128, num_classes)
    p["w3"] = jax.random.normal(ks[12], (128, num_classes), jnp.float32) * 0.05
    p["b3"] = jax.random.normal(ks[13], (1, num_classes), jnp.float32) * 0.01
    return p


def reference_forward(feat_f32, offset, params):
    """Pure-JAX reference of the same forward (eval mode), unfused BN, high-precision dots."""
    hp = jax.lax.Precision.HIGHEST
    indptr = np.concatenate([np.zeros((1,), np.int64), np.asarray(offset, np.int64)])
    pooled = []
    for b in range(offset.shape[0]):
        s, e = int(indptr[b]), int(indptr[b + 1])
        pooled.append(jnp.mean(feat_f32[s:e], axis=0))
    x = jnp.stack(pooled, axis=0)
    h = jnp.dot(x, params["w1"], precision=hp) + params["b1"]
    h = h * params["s1"] + params["t1"]
    h = jnp.maximum(h, 0.0)
    h = jnp.dot(h, params["w2"], precision=hp) + params["b2"]
    h = h * params["s2"] + params["t2"]
    h = jnp.maximum(h, 0.0)
    return jnp.dot(h, params["w3"], precision=hp) + params["b3"]


if __name__ == "__main__":
    key = jax.random.PRNGKey(0)
    k_feat, k_params = jax.random.split(key)

    # Three point clouds of uneven size; with the default 2048-row tile this gives
    # 2 grid steps (one full tile + a 552-row ragged tail), exercising the resident
    # accumulator, the in-kernel one-hot, and the no-pad ragged-tail masking.
    sizes = [700, 900, 1000]
    N = sum(sizes)                 # 2600 points total
    embed_dim = 256                # backbone_embed_dim (module default)
    num_classes = 40               # module default

    # Backbone features arrive in bf16 (halves the dominant HBM stream); the kernel
    # accumulates the segment-sum in f32 via the MXU.
    feat = jax.random.normal(k_feat, (N, embed_dim), jnp.float32).astype(jnp.bfloat16)
    offset = jnp.array(np.cumsum(sizes), dtype=jnp.int32)   # pointcept cumulative offsets

    params = make_params(k_params, embed_dim, num_classes)

    logits = default_classifier_forward(feat, offset, params, num_classes)
    logits = jax.block_until_ready(logits)

    ref = reference_forward(feat.astype(jnp.float32), offset, params)
    # both sides pool the same bf16-valued features; tolerance covers MXU f32-matmul
    # pass-decomposition differences in the tiny MLP epilogue.
    np.testing.assert_allclose(np.asarray(logits), np.asarray(ref), rtol=1e-2, atol=1e-3)

    print("KERNEL_OK")
</pallas_src>

<mosaic_0001>
module attributes {stable_mosaic.version = 11 : i64} {
  func.func @_classifier_kernel(%arg0: i32, %arg1: memref<8x1xi32, #tpu.memory_space<vmem>>, %arg2: memref<8x1xi32, #tpu.memory_space<vmem>>, %arg3: memref<8x1xf32, #tpu.memory_space<vmem>>, %arg4: memref<2048x256xbf16, #tpu.memory_space<vmem>>, %arg5: memref<256x256xf32, #tpu.memory_space<vmem>>, %arg6: memref<1x256xf32, #tpu.memory_space<vmem>>, %arg7: memref<256x128xf32, #tpu.memory_space<vmem>>, %arg8: memref<1x128xf32, #tpu.memory_space<vmem>>, %arg9: memref<128x128xf32, #tpu.memory_space<vmem>>, %arg10: memref<1x128xf32, #tpu.memory_space<vmem>>, %arg11: memref<8x128xf32, #tpu.memory_space<vmem>>, %arg12: memref<8x256xf32, #tpu.memory_space<vmem>>) attributes {dimension_semantics = [#tpu.dimension_semantics<arbitrary>], iteration_bounds = array<i64: 2>, scalar_prefetch = 0 : i64, scratch_operands = 1 : i64, tpu.core_type = #tpu.core_type<tc>, window_params = [{pipeline_mode = #tpu.pipeline_mode<synchronous>, transform_indices = @transform_0, window_bounds = array<i64: 8, 1>}, {pipeline_mode = #tpu.pipeline_mode<synchronous>, transform_indices = @transform_1, window_bounds = array<i64: 8, 1>}, {pipeline_mode = #tpu.pipeline_mode<synchronous>, transform_indices = @transform_2, window_bounds = array<i64: 8, 1>}, {transform_indices = @transform_3, window_bounds = array<i64: 2048, 256>}, {pipeline_mode = #tpu.pipeline_mode<synchronous>, transform_indices = @transform_4, window_bounds = array<i64: 256, 256>}, {pipeline_mode = #tpu.pipeline_mode<synchronous>, transform_indices = @transform_5, window_bounds = array<i64: 1, 256>}, {pipeline_mode = #tpu.pipeline_mode<synchronous>, transform_indices = @transform_6, window_bounds = array<i64: 256, 128>}, {pipeline_mode = #tpu.pipeline_mode<synchronous>, transform_indices = @transform_7, window_bounds = array<i64: 1, 128>}, {pipeline_mode = #tpu.pipeline_mode<synchronous>, transform_indices = @transform_8, window_bounds = array<i64: 128, 128>}, {pipeline_mode = #tpu.pipeline_mode<synchronous>, transform_indices = @transform_9, window_bounds = array<i64: 1, 128>}, {pipeline_mode = #tpu.pipeline_mode<synchronous>, transform_indices = @transform_10, window_bounds = array<i64: 8, 128>}]} {
    %c0_i32 = arith.constant 0 : i32
    %0 = arith.cmpi eq, %arg0, %c0_i32 : i32
    %1 = arith.extui %0 : i1 to i32
    %c0_i32_0 = arith.constant 0 : i32
    %2 = arith.cmpi ne, %1, %c0_i32_0 : i32
    scf.if %2 {
      %cst_13 = arith.constant 0.000000e+00 : f32
      %35 = vector.broadcast %cst_13 : f32 to vector<8x256xf32>
      %c0_14 = arith.constant 0 : index
      %c0_15 = arith.constant 0 : index
      %36 = vector.load %arg12[%c0_14, %c0_15] : memref<8x256xf32, #tpu.memory_space<vmem>>, vector<8x256xf32>
      tpu.vector_store %arg12[%c0_14, %c0_15], %35 {strides = array<i32>} : memref<8x256xf32, #tpu.memory_space<vmem>>, vector<8x256xf32>,
    } else {
    }
    %c0 = arith.constant 0 : index
    %c0_1 = arith.constant 0 : index
    %3 = vector.load %arg4[%c0, %c0_1] : memref<2048x256xbf16, #tpu.memory_space<vmem>>, vector<2048x256xbf16>
    %c2048_i32 = arith.constant 2048 : i32
    %4 = arith.muli %arg0, %c2048_i32 : i32
    %5 = tpu.iota {dimensions = array<i32: 0>} : vector<2048x1xi32>
    %6 = vector.broadcast %4 : i32 to vector<2048x1xi32>
    %7 = arith.addi %6, %5 : vector<2048x1xi32>
    %c2600_i32 = arith.constant 2600 : i32
    %8 = vector.broadcast %c2600_i32 : i32 to vector<2048x1xi32>
    %9 = arith.cmpi slt, %7, %8 : vector<2048x1xi32>
    %cst = arith.constant 0.000000e+00 : bf16
    %10 = vector.broadcast %cst : bf16 to vector<2048x256xbf16>
    %11 = vector.shape_cast %9 : vector<2048x1xi1> to vector<2048x1xi1>
    %12 = vector.broadcast %11 : vector<2048x1xi1> to vector<2048x256xi1>
    %13 = arith.select %12, %3, %10 : vector<2048x256xi1>, vector<2048x256xbf16>
    %c2048_i32_2 = arith.constant 2048 : i32
    %14 = arith.muli %arg0, %c2048_i32_2 : i32
    %15 = tpu.iota {dimensions = array<i32: 1>} : vector<8x2048xi32>
    %16 = vector.broadcast %14 : i32 to vector<8x2048xi32>
    %17 = arith.addi %16, %15 : vector<8x2048xi32>
    %c0_3 = arith.constant 0 : index
    %c0_4 = arith.constant 0 : index
    %18 = vector.load %arg1[%c0_3, %c0_4] : memref<8x1xi32, #tpu.memory_space<vmem>>, vector<8x1xi32>
    %19 = vector.broadcast %18 : vector<8x1xi32> to vector<8x2048xi32>
    %20 = arith.cmpi sge, %17, %19 : vector<8x2048xi32>
    %c0_5 = arith.constant 0 : index
    %c0_6 = arith.constant 0 : index
    %21 = vector.load %arg2[%c0_5, %c0_6] : memref<8x1xi32, #tpu.memory_space<vmem>>, vector<8x1xi32>
    %22 = vector.broadcast %21 : vector<8x1xi32> to vector<8x2048xi32>
    %23 = arith.cmpi slt, %17, %22 : vector<8x2048xi32>
    %24 = arith.andi %20, %23 : vector<8x2048xi1>
    %25 = arith.extui %24 : vector<8x2048xi1> to vector<8x2048xi32>
    %26 = arith.sitofp %25 : vector<8x2048xi32> to vector<8x2048xf32>
    %27 = arith.truncf %26 : vector<8x2048xf32> to vector<8x2048xbf16>
    %c0_7 = arith.constant 0 : index
    %c0_8 = arith.constant 0 : index
    %28 = vector.load %arg12[%c0_7, %c0_8] : memref<8x256xf32, #tpu.memory_space<vmem>>, vector<8x256xf32>
    %cst_9 = arith.constant dense<0.000000e+00> : vector<8x256xf32>
    %29 = tpu.matmul %27, %13, %cst_9 {dimension_numbers = #tpu.dot_dimension_numbers<[1], [0], [0], [1], [0, 0, 1, 1], [], []>} : vector<8x2048xbf16>, vector<2048x256xbf16>, vector<8x256xf32> -> vector<8x256xf32>
    %30 = arith.addf %28, %29 : vector<8x256xf32>
    %c0_10 = arith.constant 0 : index
    %c0_11 = arith.constant 0 : index
    %31 = vector.load %arg12[%c0_10, %c0_11] : memref<8x256xf32, #tpu.memory_space<vmem>>, vector<8x256xf32>
    tpu.vector_store %arg12[%c0_10, %c0_11], %30 {strides = array<i32>} : memref<8x256xf32, #tpu.memory_space<vmem>>, vector<8x256xf32>,
    %c1_i32 = arith.constant 1 : i32
    %32 = arith.cmpi eq, %arg0, %c1_i32 : i32
    %33 = arith.extui %32 : i1 to i32
    %c0_i32_12 = arith.constant 0 : i32
    %34 = arith.cmpi ne, %33, %c0_i32_12 : i32
    scf.if %34 {
      %c0_13 = arith.constant 0 : index
      %c0_14 = arith.constant 0 : index
      %35 = vector.load %arg12[%c0_13, %c0_14] : memref<8x256xf32, #tpu.memory_space<vmem>>, vector<8x256xf32>
      %c0_15 = arith.constant 0 : index
      %c0_16 = arith.constant 0 : index
      %36 = vector.load %arg3[%c0_15, %c0_16] : memref<8x1xf32, #tpu.memory_space<vmem>>, vector<8x1xf32>
      %37 = vector.broadcast %36 : vector<8x1xf32> to vector<8x256xf32>
      %38 = arith.mulf %35, %37 : vector<8x256xf32>
      %c0_17 = arith.constant 0 : index
      %c0_18 = arith.constant 0 : index
      %39 = vector.load %arg5[%c0_17, %c0_18] : memref<256x256xf32, #tpu.memory_space<vmem>>, vector<256x256xf32>
      %cst_19 = arith.constant dense<0.000000e+00> : vector<8x256xf32>
      %40 = tpu.matmul %38, %39, %cst_19 {dimension_numbers = #tpu.dot_dimension_numbers<[1], [0], [0], [1], [0, 0, 1, 1], [], []>} : vector<8x256xf32>, vector<256x256xf32>, vector<8x256xf32> -> vector<8x256xf32>
      %c0_20 = arith.constant 0 : index
      %c0_21 = arith.constant 0 : index
      %41 = vector.load %arg6[%c0_20, %c0_21] : memref<1x256xf32, #tpu.memory_space<vmem>>, vector<1x256xf32>
      %42 = vector.broadcast %41 : vector<1x256xf32> to vector<8x256xf32>
      %43 = arith.addf %40, %42 : vector<8x256xf32>
      %cst_22 = arith.constant 0.000000e+00 : f32
      %44 = vector.broadcast %cst_22 : f32 to vector<8x256xf32>
      %45 = arith.maximumf %43, %44 : vector<8x256xf32>
      %c0_23 = arith.constant 0 : index
      %c0_24 = arith.constant 0 : index
      %46 = vector.load %arg7[%c0_23, %c0_24] : memref<256x128xf32, #tpu.memory_space<vmem>>, vector<256x128xf32>
      %cst_25 = arith.constant dense<0.000000e+00> : vector<8x128xf32>
      %47 = tpu.matmul %45, %46, %cst_25 {dimension_numbers = #tpu.dot_dimension_numbers<[1], [0], [0], [1], [0, 0, 1, 1], [], []>} : vector<8x256xf32>, vector<256x128xf32>, vector<8x128xf32> -> vector<8x128xf32>
      %c0_26 = arith.constant 0 : index
      %c0_27 = arith.constant 0 : index
      %48 = vector.load %arg8[%c0_26, %c0_27] : memref<1x128xf32, #tpu.memory_space<vmem>>, vector<1x128xf32>
      %49 = vector.broadcast %48 : vector<1x128xf32> to vector<8x128xf32>
      %50 = arith.addf %47, %49 : vector<8x128xf32>
      %cst_28 = arith.constant 0.000000e+00 : f32
      %51 = vector.broadcast %cst_28 : f32 to vector<8x128xf32>
      %52 = arith.maximumf %50, %51 : vector<8x128xf32>
      %c0_29 = arith.constant 0 : index
      %c0_30 = arith.constant 0 : index
      %53 = vector.load %arg9[%c0_29, %c0_30] : memref<128x128xf32, #tpu.memory_space<vmem>>, vector<128x128xf32>
      %cst_31 = arith.constant dense<0.000000e+00> : vector<8x128xf32>
      %54 = tpu.matmul %52, %53, %cst_31 {dimension_numbers = #tpu.dot_dimension_numbers<[1], [0], [0], [1], [0, 0, 1, 1], [], []>} : vector<8x128xf32>, vector<128x128xf32>, vector<8x128xf32> -> vector<8x128xf32>
      %c0_32 = arith.constant 0 : index
      %c0_33 = arith.constant 0 : index
      %55 = vector.load %arg10[%c0_32, %c0_33] : memref<1x128xf32, #tpu.memory_space<vmem>>, vector<1x128xf32>
      %56 = vector.broadcast %55 : vector<1x128xf32> to vector<8x128xf32>
      %57 = arith.addf %54, %56 : vector<8x128xf32>
      %c0_34 = arith.constant 0 : index
      %c0_35 = arith.constant 0 : index
      %58 = vector.load %arg11[%c0_34, %c0_35] : memref<8x128xf32, #tpu.memory_space<vmem>>, vector<8x128xf32>
      tpu.vector_store %arg11[%c0_34, %c0_35], %57 {strides = array<i32>} : memref<8x128xf32, #tpu.memory_space<vmem>>, vector<8x128xf32>,
    } else {
    }
    return
  }
  func.func @transform_0(%arg0: i32) -> (i32, i32) {
    %c0_i32 = arith.constant 0 : i32
    %c0_i32_0 = arith.constant 0 : i32
    %c0_i32_1 = arith.constant 0 : i32
    return %c0_i32, %c0_i32_0 : i32, i32
  }
  func.func @transform_1(%arg0: i32) -> (i32, i32) {
    %c0_i32 = arith.constant 0 : i32
    %c0_i32_0 = arith.constant 0 : i32
    %c0_i32_1 = arith.constant 0 : i32
    return %c0_i32, %c0_i32_0 : i32, i32
  }
  func.func @transform_2(%arg0: i32) -> (i32, i32) {
    %c0_i32 = arith.constant 0 : i32
    %c0_i32_0 = arith.constant 0 : i32
    %c0_i32_1 = arith.constant 0 : i32
    return %c0_i32, %c0_i32_0 : i32, i32
  }
  func.func @transform_3(%arg0: i32) -> (i32, i32) {
    %c0_i32 = arith.constant 0 : i32
    %c0_i32_0 = arith.constant 0 : i32
    return %arg0, %c0_i32 : i32, i32
  }
  func.func @transform_4(%arg0: i32) -> (i32, i32) {
    %c0_i32 = arith.constant 0 : i32
    %c0_i32_0 = arith.constant 0 : i32
    %c0_i32_1 = arith.constant 0 : i32
    return %c0_i32, %c0_i32_0 : i32, i32
  }
  func.func @transform_5(%arg0: i32) -> (i32, i32) {
    %c0_i32 = arith.constant 0 : i32
    %c0_i32_0 = arith.constant 0 : i32
    %c0_i32_1 = arith.constant 0 : i32
    return %c0_i32, %c0_i32_0 : i32, i32
  }
  func.func @transform_6(%arg0: i32) -> (i32, i32) {
    %c0_i32 = arith.constant 0 : i32
    %c0_i32_0 = arith.constant 0 : i32
    %c0_i32_1 = arith.constant 0 : i32
    return %c0_i32, %c0_i32_0 : i32, i32
  }
  func.func @transform_7(%arg0: i32) -> (i32, i32) {
    %c0_i32 = arith.constant 0 : i32
    %c0_i32_0 = arith.constant 0 : i32
    %c0_i32_1 = arith.constant 0 : i32
    return %c0_i32, %c0_i32_0 : i32, i32
  }
  func.func @transform_8(%arg0: i32) -> (i32, i32) {
    %c0_i32 = arith.constant 0 : i32
    %c0_i32_0 = arith.constant 0 : i32
    %c0_i32_1 = arith.constant 0 : i32
    return %c0_i32, %c0_i32_0 : i32, i32
  }
  func.func @transform_9(%arg0: i32) -> (i32, i32) {
    %c0_i32 = arith.constant 0 : i32
    %c0_i32_0 = arith.constant 0 : i32
    %c0_i32_1 = arith.constant 0 : i32
    return %c0_i32, %c0_i32_0 : i32, i32
  }
  func.func @transform_10(%arg0: i32) -> (i32, i32) {
    %c0_i32 = arith.constant 0 : i32
    %c0_i32_0 = arith.constant 0 : i32
    %c0_i32_1 = arith.constant 0 : i32
    return %c0_i32, %c0_i32_0 : i32, i32
  }
}

</mosaic_0001>

<bundles_post_ra>
// kernel: tpu_custom_call.1
= control target key start
LH: loop header
LB: loop body
LE: loop exit
PB: predicated region body
PF: predicated region fallthrough
CT: control target
= control target key end

     0   :  { %s8568_s0 = inlined_call_operand.vmem [shape: s32[8,1], index: 0, kind: input, shape index: {}]   ;;  %s8569_s1 = inlined_call_operand.vmem [shape: s32[8,1], index: 1, kind: input, shape index: {}]   ;;  %s8570_s2 = inlined_call_operand.vmem [shape: f32[8,1], index: 2, kind: input, shape index: {}]   ;;  %s8571_s3 = inlined_call_operand.hbm [shape: bf16[2600,256], index: 3, kind: input, shape index: {}]   ;;  %s8572_s4 = inlined_call_operand.hbm [shape: f32[256,256], index: 4, kind: input, shape index: {}]   ;;  %s8573_s5 = inlined_call_operand.hbm [shape: f32[1,256], index: 5, kind: input, shape index: {}]   ;;  %s8574_s6 = inlined_call_operand.hbm [shape: f32[256,128], index: 6, kind: input, shape index: {}]   ;;  %s8575_s7 = inlined_call_operand.hbm [shape: f32[1,128], index: 7, kind: input, shape index: {}]   ;;  %s8576_s8 = inlined_call_operand.hbm [shape: f32[128,128], index: 8, kind: input, shape index: {}]   ;;  %s8577_s9 = inlined_call_operand.hbm [shape: f32[1,128], index: 9, kind: input, shape index: {}]   ;;  %s8578_s10 = inlined_call_operand.hbm [shape: f32[8,128], index: 10, kind: output, shape index: {}]  }
   0x1   :  { %8587 = sst [smem:[#allocation23_spill]] %s8570_s2 }
   0x2   :  { %8588 = sst [smem:[#allocation24_spill]] %s8572_s4 }
   0x3   :  { %8589 = sst [smem:[#allocation25_spill]] %s8578_s10 }
   0x4   :  { %15 = vsyncpa [#allocation4], 0 }
   0x5   :  { %17 = vsyncpa [#allocation4 + $0x1], 0 }
   0x6   :  { %18 = vsyncpa [#allocation7], 0 }
   0x7   :  { %19 = vsyncpa [#allocation10], 0 }
   0x8   :  { %20 = vsyncpa [#allocation13], 0 }
   0x9   :  { %21 = vsyncpa [#allocation5], 0  ;;  %s5766_s13 = smov 0   ;;  %s5768_s14 = smov 0  }
   0xa   :  { %s5770_s15 = smov 0   ;;  %s5772_s16 = smov 0  }
   0xb LB: > { %s5785_s17 = sadd.s32 4294967295, %s5688_s16   ;;  %s5788_s18 = sadd.s32 1, %s5688_s16   ;;  %s5688_s16 = sphi %s5772_s16, %s8733_s16   ;;  %s5684_s15 = sphi %s5770_s15, %s8737_s15   ;;  %s5680_s14 = sphi %s5768_s14, %s8736_s14   ;;  %s5676_s13 = sphi %s5766_s13, %s8735_s13  }
   0xc   : > { %8590 = sst [smem:[#allocation21_spill]] %s5788_s18  ;;  %s94_s19 = ssub.s32 %s5688_s16, %s5788_s18 }
   0xd   : > { %s97_s20 = sadd.s32 1, %s5684_s15  ;;  %p95_p0 = scmp.eq.s32.totalorder %s94_s19, 0 }
   0xe   : > { %p104_p1 = scmp.ne.s32.totalorder %s5684_s15, %s5680_s14  ;;  %p105_p2 = scmp.eq.s32.totalorder %s5688_s16, 0 }
   0xf   : > { %p110_p3 = scmp.ne.s32.totalorder %s5680_s14, %s5676_s13  ;;  %p8579_p5 = scmp.eq.s32.totalorder %s5785_s17, 0 }
  0x10   : > { %s5798_s21 = scalar_select %p95_p0, %s5684_s15, %s97_s20  }
  0x11   : > { %p5800_p4 = por %p105_p2, %p104_p1  ;;  %p4752_p6 = scmp.ge.s32.totalorder %s5688_s16, 1 }
  0x12   : > { %8591 = sst [smem:[#allocation22_spill]] %s5798_s21  ;;  %p268_p7 = scmp.lt.s32.totalorder %s5688_s16, 3 }
  0x13   : > { %s8592_s22 = scalar_select %p5800_p4, 1, 0 }
  0x14   : > { %p5809_p8 = por %p8579_p5, %p110_p3  ;;  %p5814_p10 = pnand %p4752_p6, %p268_p7 }
  0x15   : > { %s5690_s25 = smov [#allocation6]   ;;  %s5691_s28 = smov [#allocation9]  }
  0x16   : > { %s8593_s23 = scalar_select %p5809_p8, 1, 0 }
  0x17   : > { %s8594_s24 = scalar_select %p5814_p10, 1, 0 }
  0x18   : > { %s289_s26 = sshll.u32 %s5690_s25, 4  ;;  %p5329_p11 = pneg %p5814_p10  ;;  %s290_s26 = int_to_ptr.vmem [resolvable:$true] %s289_s26 }
  0x19   : > { %s313_s29 = sshll.u32 %s5691_s28, 4  ;;  %s8596_s4 = sld [smem:[#allocation24_spill]]  ;;  %s5826_s29 = int_to_ptr.vmem [resolvable:$true] %s313_s29 }
  0x1a   : > { %p5822_p12 = pnand %p5329_p11, %p8579_p5 }
  0x1c   : > { %p5836_p0 = pneg %p5822_p12 }
  0x1f   : > { %s5416_s12 = scalar_lea.hbm %s8596_s4, 8192 }
  0x20   : > { %p5417_p13 = scmp.ne.s32.totalorder %s8596_s4, %s5416_s12  ;;  %p5423_p3 = scmp.lt.u32.totalorder %s5416_s12, %s8596_s4 }
  0x22   : > { %p5419_p1 = pnand %p5836_p0, %p5417_p13 }
  0x24   : > { %p5420_p2 = pneg %p5419_p1 }
  0x26   : > { %p5425_p6 = pnand %p5423_p3, %p5420_p2 }
  0x28   : > { %5428 = shalt.err (!%p5425_p6)
}
  0x29   : > { %s5429_s30 = scalar_lea.vmem %s290_s26, 8192  ;;  %p5437_p5 = scmp.lt.s32.totalorder %s290_s26, %s290_s26 }
  0x2a   : > { %p5430_p7 = scmp.ne.s32.totalorder %s290_s26, %s5429_s30  ;;  %p5438_p8 = scmp.lt.s32.totalorder %s5429_s30, %s5429_s30 }
  0x2c   : > { %p5432_p11 = pnand %p5430_p7, %p5836_p0  ;;  %p5439_p10 = por %p5438_p8, %p5437_p5 }
  0x2e   : > { %p5433_p9 = pneg %p5432_p11 }
  0x30   : > { %p5440_p4 = pnand %p5439_p10, %p5433_p9 }
  0x32   : > { %5443 = shalt.err (!%p5440_p4)
}
  0x33   : > { %s5692_s11 = smov 256   ;;  %s5693_s13 = smov 16  }
  0x34   : > { %5332 = dma.hbm_to_vmem [thread:$0]  (!%p5822_p12), %s8596_s4, 8192, %s290_s26, [#allocation7], %s5692_s11, %s5692_s11, %s5693_s13  }
  0x35   : > { %s5444_s21 = scalar_lea.hbm %s8574_s6, 4096 }
  0x36   : > { %p5445_p13 = scmp.ne.s32.totalorder %s8574_s6, %s5444_s21  ;;  %p5451_p8 = scmp.lt.u32.totalorder %s5444_s21, %s8574_s6 }
  0x38   : > { %p5447_p5 = pnand %p5445_p13, %p5836_p0 }
  0x3a   : > { %p5448_p4 = pneg %p5447_p5 }
  0x3c   : > { %p5453_p9 = pnand %p5451_p8, %p5448_p4 }
  0x3e   : > { %5456 = shalt.err (!%p5453_p9)
}
  0x3f   : > { %s5457_s26 = scalar_lea.vmem %s5826_s29, 4096  ;;  %p5465_p3 = scmp.lt.s32.totalorder %s5826_s29, %s5826_s29 }
  0x40   : > { %p5458_p10 = scmp.ne.s32.totalorder %s5826_s29, %s5457_s26  ;;  %p5466_p6 = scmp.lt.s32.totalorder %s5457_s26, %s5457_s26 }
  0x42   : > { %p5460_p1 = pnand %p5458_p10, %p5836_p0  ;;  %p5467_p7 = por %p5466_p6, %p5465_p3 }
  0x44   : > { %p5461_p2 = pneg %p5460_p1 }
  0x46   : > { %p5468_p11 = pnand %p5467_p7, %p5461_p2 }
  0x48   : > { %5471 = shalt.err (!%p5468_p11)
}
  0x49   : > { %s5694_s10 = smov 128   ;;  %s5695_s2 = smov 8  }
  0x4a   : > { %5338 = dma.hbm_to_vmem [thread:$0]  (!%p5822_p12), %s8574_s6, 4096, %s5826_s29, [#allocation10], %s5694_s10, %s5694_s10, %s5695_s2  }
  0x4b   : > { %s5696_s11 = smov [#allocation12]   ;;  %s5697_s19 = smov [#allocation8]  }
  0x4c   : > { %s337_s13 = sshll.u32 %s5696_s11, 4  ;;  %s303_s12 = sshll.u32 %s5697_s19, 4  ;;  %s338_s13 = int_to_ptr.vmem [resolvable:$true] %s337_s13  ;;  %s5875_s12 = int_to_ptr.vmem [resolvable:$true] %s303_s12 }
  0x4d   : > { %s5472_s30 = scalar_lea.hbm %s8576_s8, 2048 }
  0x4e   : > { %p5473_p13 = scmp.ne.s32.totalorder %s8576_s8, %s5472_s30  ;;  %p5479_p8 = scmp.lt.u32.totalorder %s5472_s30, %s8576_s8 }
  0x50   : > { %p5475_p5 = pnand %p5473_p13, %p5836_p0 }
  0x52   : > { %p5476_p4 = pneg %p5475_p5 }
  0x54   : > { %p5481_p9 = pnand %p5479_p8, %p5476_p4 }
  0x56   : > { %5484 = shalt.err (!%p5481_p9)
}
  0x57   : > { %s5485_s21 = scalar_lea.vmem %s338_s13, 2048  ;;  %p5493_p3 = scmp.lt.s32.totalorder %s338_s13, %s338_s13 }
  0x58   : > { %p5486_p10 = scmp.ne.s32.totalorder %s338_s13, %s5485_s21  ;;  %p5494_p6 = scmp.lt.s32.totalorder %s5485_s21, %s5485_s21 }
  0x5a   : > { %p5488_p1 = pnand %p5486_p10, %p5836_p0  ;;  %p5495_p7 = por %p5494_p6, %p5493_p3 }
  0x5c   : > { %p5489_p2 = pneg %p5488_p1 }
  0x5e   : > { %p5496_p11 = pnand %p5495_p7, %p5489_p2 }
  0x60   : > { %5499 = shalt.err (!%p5496_p11)
}
  0x61   : > { %5344 = dma.hbm_to_vmem [thread:$0]  (!%p5822_p12), %s8576_s8, 2048, %s338_s13, [#allocation13], %s5694_s10, %s5694_s10, %s5695_s2  }
  0x62   : > { %s5500_s28 = scalar_lea.hbm %s8573_s5, 32 }
  0x63   : > { %p5501_p13 = scmp.ne.s32.totalorder %s8573_s5, %s5500_s28  ;;  %p5507_p8 = scmp.lt.u32.totalorder %s5500_s28, %s8573_s5 }
  0x65   : > { %p5503_p5 = pnand %p5501_p13, %p5836_p0 }
  0x67   : > { %p5504_p4 = pneg %p5503_p5 }
  0x69   : > { %p5509_p9 = pnand %p5507_p8, %p5504_p4 }
  0x6b   : > { %5512 = shalt.err (!%p5509_p9)
}
  0x6c   : > { %s5513_s10 = scalar_lea.vmem %s5875_s12, 32  ;;  %p5521_p3 = scmp.lt.s32.totalorder %s5875_s12, %s5875_s12 }
  0x6d   : > { %p5514_p10 = scmp.ne.s32.totalorder %s5875_s12, %s5513_s10  ;;  %p5522_p6 = scmp.lt.s32.totalorder %s5513_s10, %s5513_s10 }
  0x6f   : > { %p5516_p1 = pnand %p5514_p10, %p5836_p0  ;;  %p5523_p7 = por %p5522_p6, %p5521_p3 }
  0x71   : > { %p5517_p2 = pneg %p5516_p1 }
  0x73   : > { %p5524_p11 = pnand %p5523_p7, %p5517_p2 }
  0x75   : > { %5527 = shalt.err (!%p5524_p11)
}
  0x76   : > { %5335 = dma.hbm_to_vmem [thread:$0]  (!%p5822_p12), %s8573_s5, 32, %s5875_s12, [#allocation7]  }
  0x77   : > { %s5698_s21 = smov [#allocation11]   ;;  %s5699_s11 = smov [#allocation14]  }
  0x78   : > { %s327_s4 = sshll.u32 %s5698_s21, 4  ;;  %s351_s19 = sshll.u32 %s5699_s11, 4  ;;  %s328_s4 = int_to_ptr.vmem [resolvable:$true] %s327_s4  ;;  %s5918_s19 = int_to_ptr.vmem [resolvable:$true] %s351_s19 }
  0x79   : > { %s5528_s30 = scalar_lea.hbm %s8575_s7, 16 }
  0x7a   : > { %p5529_p13 = scmp.ne.s32.totalorder %s8575_s7, %s5528_s30  ;;  %p5535_p8 = scmp.lt.u32.totalorder %s5528_s30, %s8575_s7 }
  0x7c   : > { %p5531_p5 = pnand %p5529_p13, %p5836_p0 }
  0x7e   : > { %p5532_p4 = pneg %p5531_p5 }
  0x80   : > { %p5537_p9 = pnand %p5535_p8, %p5532_p4 }
  0x82   : > { %5540 = shalt.err (!%p5537_p9)
}
  0x83   : > { %s5541_s10 = scalar_lea.vmem %s328_s4, 16  ;;  %s5548_s2 = scalar_lea.vmem %s328_s4, 32 }
  0x84   : > { %p5542_p10 = scmp.ne.s32.totalorder %s328_s4, %s5541_s10  ;;  %p5549_p3 = scmp.lt.s32.totalorder %s328_s4, %s328_s4 }
  0x85   : > { %p5550_p6 = scmp.lt.s32.totalorder %s5548_s2, %s5541_s10 }
  0x86   : > { %p5544_p1 = pnand %p5542_p10, %p5836_p0 }
  0x87   : > { %p5551_p7 = por %p5550_p6, %p5549_p3 }
  0x88   : > { %p5545_p2 = pneg %p5544_p1 }
  0x8a   : > { %p5552_p11 = pnand %p5551_p7, %p5545_p2 }
  0x8c   : > { %5555 = shalt.err (!%p5552_p11)
}
  0x8d   : > { %5341 = dma.hbm_to_vmem [thread:$0]  (!%p5822_p12), %s8575_s7, 16, %s328_s4, [#allocation10]  }
  0x8e   : > { %s5556_s28 = scalar_lea.hbm %s8577_s9, 16 }
  0x8f   : > { %p5557_p13 = scmp.ne.s32.totalorder %s8577_s9, %s5556_s28  ;;  %p5563_p8 = scmp.lt.u32.totalorder %s5556_s28, %s8577_s9 }
  0x91   : > { %p5559_p5 = pnand %p5557_p13, %p5836_p0 }
  0x93   : > { %p5560_p4 = pneg %p5559_p5 }
  0x95   : > { %p5565_p9 = pnand %p5563_p8, %p5560_p4 }
  0x97   : > { %5568 = shalt.err (!%p5565_p9)
}
  0x98   : > { %s5569_s4 = scalar_lea.vmem %s5918_s19, 16  ;;  %s5576_s12 = scalar_lea.vmem %s5918_s19, 32 }
  0x99   : > { %p5570_p10 = scmp.ne.s32.totalorder %s5918_s19, %s5569_s4  ;;  %p5577_p3 = scmp.lt.s32.totalorder %s5918_s19, %s5918_s19 }
  0x9a   : > { %p5578_p6 = scmp.lt.s32.totalorder %s5576_s12, %s5569_s4 }
  0x9b   : > { %p5572_p1 = pnand %p5570_p10, %p5836_p0 }
  0x9c   : > { %p5579_p7 = por %p5578_p6, %p5577_p3 }
  0x9d   : > { %p5573_p2 = pneg %p5572_p1 }
  0x9f   : > { %p5580_p11 = pnand %p5579_p7, %p5573_p2 }
  0xa1   : > { %5583 = shalt.err (!%p5580_p11)
}
  0xa2   : > { %5347 = dma.hbm_to_vmem [thread:$0]  (!%p5822_p12), %s8577_s9, 16, %s5918_s19, [#allocation13]  }
  0xa3   : > { %p4759_p13 = scmp.ge.s32.totalorder %s5688_s16, 2 }
  0xa4   : > { %p8598_p0 = scmp.ne.s32.totalorder (!%p4759_p13), %s8592_s22, 0 }
  0xa5   : > { %358 = sbr.rel (%p4759_p13) target bundleno = 207 (0xcf), region = 52 }
  0xac   : > { %361 = sbr.rel (!%p8598_p0) target bundleno = 207 (0xcf), region = 56  ;;  %s362_s20 = sand.u32 (%p8598_p0), 1, %s5684_s15  }
  0xad   : > { %s4761_s13 = sshll.u32 (%p8598_p0), %s5688_s16, 8  ;;  %s4760_s21 = sshll.u32 (%p8598_p0), %s362_s20, 11 }
  0xae   : > { %s368_s11 = ssub.s32 (%p8598_p0), 325, %s4761_s13  ;;  %s5970_s28 = scalar_lea.sflag (%p8598_p0), [#allocation4], %s362_s20 }
  0xaf   : > { %p369_p5 = scmp.lt.s32.totalorder (%p8598_p0), %s368_s11, 256  ;;  %s366_s19 = scalar_lea.vmem (%p8598_p0), [#allocation3], %s4760_s21 }
  0xb3   : > { %s8739_s11 = smov (!%p369_p5, %s368_s11), 256 }
  0xb4   : > { %s5967_s27 = sshll.u32 %s8739_s11, 7 }
  0xb5   : > { %s374_s25 = ssub.s32 32768, %s5967_s27 }
  0xb6   : > { %375 = vsyncadd %s5970_s28, %s374_s25  ;;  %p4764_p12 = scmp.ne.s32.totalorder %s5967_s27, 0  ;;  %s5092_s22 = sshll.u32 %s5688_s16, 15 }
  0xb7   : > { %s5978_s18 = scalar_lea.hbm %s8571_s3, %s5092_s22  ;;  %s381_s29 = sshll.u32 %s366_s19, 4  ;;  %s5980_s29 = int_to_ptr.vmem [resolvable:$true] %s381_s29 }
  0xb8   : > { %s5584_s4 = scalar_lea.hbm %s5978_s18, %s5967_s27  ;;  %s5588_s16 = scalar_lea.hbm %s8571_s3, 41600 }
  0xb9   : > { %p5585_p4 = scmp.ne.s32.totalorder %s5978_s18, %s5584_s4  ;;  %p5589_p10 = scmp.lt.u32.totalorder %s5978_s18, %s8571_s3 }
  0xba   : > { %p5590_p1 = scmp.lt.u32.totalorder %s5588_s16, %s5584_s4  ;;  %p5592_p3 = scmp.lt.u32.totalorder %s5584_s4, %s5978_s18 }
  0xbb   : > { %p5586_p8 = pnand %p5585_p4, %p4764_p12 }
  0xbc   : > { %p5591_p2 = por %p5590_p1, %p5589_p10 }
  0xbd   : > { %p5587_p9 = pneg %p5586_p8 }
  0xbe   : > { %p5593_p6 = por %p5592_p3, %p5591_p2 }
  0xc0   : > { %p5594_p7 = pnand %p5593_p6, %p5587_p9 }
  0xc2   : > { %5597 = shalt.err (!%p5594_p7)
}
  0xc3   : > { %s5598_s13 = scalar_lea.vmem %s5980_s29, %s5967_s27  ;;  %s5700_s21 = smov [#allocation3]  }
  0xc4   : > { %p5599_p11 = scmp.ne.s32.totalorder %s5980_s29, %s5598_s13  ;;  %s5602_s11 = sshll.u32 %s5700_s21, 4  ;;  %s5603_s11 = int_to_ptr.vmem [resolvable:$false] %s5602_s11 }
  0xc5   : > { %s5604_s25 = scalar_lea.vmem %s5603_s11, 65536  ;;  %p5605_p5 = scmp.lt.s32.totalorder %s5980_s29, %s5603_s11 }
  0xc6   : > { %p5600_p13 = pnand %p5599_p11, %p4764_p12  ;;  %p5606_p4 = scmp.lt.s32.totalorder %s5604_s25, %s5598_s13 }
  0xc8   : > { %p5601_p0 = pneg %p5600_p13  ;;  %p5607_p8 = por %p5606_p4, %p5605_p5 }
  0xca   : > { %p5608_p10 = pnand %p5607_p8, %p5601_p0 }
  0xcc   : > { %5611 = shalt.err (!%p5608_p10)
}
  0xcd   : > { %s5701_s19 = smov 128   ;;  %s5702_s22 = smov 8  }
  0xce   : > { %387 = dma.hbm_to_vmem [thread:$0]  (%p4764_p12), %s5978_s18, %s5967_s27, %s5980_s29, %s5970_s28, %s5701_s19, %s5701_s19, %s5702_s22  }
  0xcf PF: > { %p8599_p9 = scmp.ne.s32.totalorder %s8594_s24, 0 }
  0xd0   : > { %s395_s30 = sand.u32 (!%p8599_p9), 1, %s5680_s14   ;;  %p8600_p1 = scmp.ne.s32.totalorder (!%p8599_p9), %s8593_s23, 0 }
  0xd1   : > { %393 = sbr.rel (%p8599_p9) target bundleno = 1524 (0x5f4), region = 60  ;;  %s4770_s26 = sshll.u32 (!%p8599_p9), %s395_s30, 11 }
  0xd2   : > { %s396_s4 = scalar_lea.sflag (!%p8599_p9), [#allocation4], %s395_s30  ;;  %s6010_s12 = scalar_lea.vmem (!%p8599_p9), [#allocation3], %s4770_s26 }
  0xd8   : > { %5655 = dma.done.wait (%p8600_p1), %s396_s4, 32768  }
  0xd9   : > { %5657 = vsyncadd (%p8600_p1), %s396_s4, 4294934528  ;;  %p8601_p2 = scmp.eq.s32.totalorder %s5785_s17, 0 }
  0xdb   : > { %5659 = dma.done.wait (%p8601_p2), [#allocation7], 8224   ;;  %p8602_p12 = pmov %p8601_p2 }
  0xdc   : > { %p8603_p3 = pmov %p8601_p2 }
  0xdd   : > { %5661 = vsyncadd (%p8602_p12), [#allocation7], 4294959072 }
  0xde   : > { %5663 = dma.done.wait (%p8603_p3), [#allocation10], 4112   ;;  %p8604_p6 = pmov %p8601_p2 }
  0xdf   : > { %p8605_p7 = pmov %p8601_p2 }
  0xe0   : > { %5665 = vsyncadd (%p8604_p6), [#allocation10], 4294963184 }
  0xe1   : > { %5667 = dma.done.wait (%p8605_p7), [#allocation13], 2064   ;;  %p8606_p11 = pmov %p8601_p2 }
  0xe2   : > { %p8607_p13 = scmp.ne.s32.totalorder %s5785_s17, 0 }
  0xe3   : > { %5669 = vsyncadd (%p8606_p11), [#allocation13], 4294965232  ;;  %v5703_v0 = vmov (!%p8607_p13), 0.0  }
  0xe4   : > { %465 = sbr.rel (%p8607_p13) target bundleno = 235 (0xeb), region = 92  ;;  %466 = vst [vmem:[#allocation2] sm:$0xff] (!%p8607_p13), %v5703_v0  ;;  %467 = vst [vmem:[#allocation2 + $0x8] sm:$0xff] (!%p8607_p13), %v5703_v0 }
  0xeb PF: > { %v2552_v1 = vld [vmem:[%s8568_s0] sm:$0xff]  ;;  %s4778_s27 = sshll.u32 %s5785_s17, 11  ;;  %v725_v2 = vlaneseq  ;;  %v5704_v3 = vmov 0   ;;  %v468_v11 = vld [vmem:[%s6010_s12] sm:$0xff]  ;;  %v470_v28 = vld [vmem:[%s6010_s12 + $0x10] sm:$0xff]  ;;  %p5083_p0 = scmp.ne.s32.totalorder %s5785_s17, 1 }
  0xec   : > { %5414 = vset.pattern.permute.xlu0 %v5704_v3  ;;  %v6034_v4 = vstv %s4778_s27  ;;  %v2572_v6 = vld [vmem:[%s8569_s1] sm:$0xff]  ;;  %v500_v25 = vld [vmem:[%s6010_s12 + $0x100] sm:$0xff]  ;;  %v471_v35 = vld [vmem:[%s6010_s12 + $0x18] sm:$0xff]  ;;  %s8731_s16 = sld [smem:[#allocation23_spill]] (!%p5083_p0) }
  0xed   : > { %2554 = vperm.xlu0 %5414, %v2552_v1   ;;  %v6037_v5 = vshrl.u32 %v725_v2, 7  ;;  %v469_v19 = vld [vmem:[%s6010_s12 + $0x8] sm:$0xff]  ;;  %v502_v38 = vld [vmem:[%s6010_s12 + $0x110] sm:$0xff]  ;;  %v503_v45 = vld [vmem:[%s6010_s12 + $0x118] sm:$0xff] }
  0xee   : > { %v501_v26 = vld [vmem:[%s6010_s12 + $0x108] sm:$0xff]  ;;  %v472_v48 = vld [vmem:[%s6010_s12 + $0x20] sm:$0xff] }
  0xef   : > { %v727_v7 = vadd.s32 8, %v6037_v5  ;;  %v983_v8 = vadd.s32 %v6034_v4, %v6037_v5  ;;  %v758_v9 = vadd.s32 256, %v6037_v5  ;;  %v759_v10 = vadd.s32 264, %v6037_v5  ;;  %v473_v52 = vld [vmem:[%s6010_s12 + $0x28] sm:$0xff]  ;;  %v504_v54 = vld [vmem:[%s6010_s12 + $0x120] sm:$0xff] }
  0xf0   : > { %v728_v12 = vadd.s32 16, %v6037_v5  ;;  %v729_v13 = vadd.s32 24, %v6037_v5  ;;  %v760_v14 = vadd.s32 272, %v6037_v5  ;;  %v761_v15 = vadd.s32 280, %v6037_v5  ;;  %v505_v61 = vld [vmem:[%s6010_s12 + $0x128] sm:$0xff] }
  0xf1   : > { %2574 = vperm.xlu0 %5414, %v2572_v6   ;;  %v984_v16 = vadd.s32 %v6034_v4, %v727_v7  ;;  %vm1239_vm0 = vcmp.lt.s32.totalorder %v983_v8, 2600  ;;  %v1015_v17 = vadd.s32 %v6034_v4, %v758_v9  ;;  %v1016_v18 = vadd.s32 %v6034_v4, %v759_v10  ;;  %v474_v9 = vld [vmem:[%s6010_s12 + $0x30] sm:$0xff] }
  0xf2   : > { %vm2007_vm1 = vmpackc.low %vm1239_vm0, %vm1239_vm0  ;;  %v985_v20 = vadd.s32 %v6034_v4, %v728_v12  ;;  %v986_v21 = vadd.s32 %v6034_v4, %v729_v13  ;;  %v1017_v22 = vadd.s32 %v6034_v4, %v760_v14  ;;  %v1018_v23 = vadd.s32 %v6034_v4, %v761_v15  ;;  %v475_v12 = vld [vmem:[%s6010_s12 + $0x38] sm:$0xff]  ;;  %v506_v15 = vld [vmem:[%s6010_s12 + $0x130] sm:$0xff] }
  0xf3   : > { %vm1240_vm2 = vcmp.lt.s32.totalorder %v984_v16, 2600  ;;  %v2263_v24 = vsel %vm2007_vm1, %v468_v11, 0  ;;  %vm1271_vm3 = vcmp.lt.s32.totalorder %v1015_v17, 2600  ;;  %vm1272_vm4 = vcmp.lt.s32.totalorder %v1016_v18, 2600  ;;  %v507_v18 = vld [vmem:[%s6010_s12 + $0x138] sm:$0xff] }
  0xf4   : > { %vm2008_vm5 = vmpackc.low %vm1240_vm2, %vm1240_vm2  ;;  %vm1241_vm6 = vcmp.lt.s32.totalorder %v985_v20, 2600  ;;  %vm1242_vm7 = vcmp.lt.s32.totalorder %v986_v21, 2600  ;;  %vm1273_vm8 = vcmp.lt.s32.totalorder %v1017_v22, 2600  ;;  %vm1274_vm9 = vcmp.lt.s32.totalorder %v1018_v23, 2600 }
  0xf5   : > { %v2264_v27 = vsel %vm2008_vm5, %v469_v19, 0  ;;  %vm2039_vm10 = vmpackc.low %vm1271_vm3, %vm1271_vm3  ;;  %v730_v29 = vadd.s32 32, %v6037_v5  ;;  %v731_v30 = vadd.s32 40, %v6037_v5  ;;  %v762_v31 = vadd.s32 288, %v6037_v5 }
  0xf6   : > { %v4796_v32 = vcombine.high %v2263_v24, %v2264_v27  ;;  %vm2040_vm11 = vmpackc.low %vm1272_vm4, %vm1272_vm4  ;;  %v2295_v33 = vsel %vm2039_vm10, %v500_v25, 0  ;;  %v4795_v34 = vcombine.low %v2263_v24, %v2264_v27  ;;  %v763_v36 = vadd.s32 296, %v6037_v5 }
  0xf7   : > { %v2296_v37 = vsel %vm2040_vm11, %v501_v26, 0  ;;  %vm2009_vm12 = vmpackc.low %vm1241_vm6, %vm1241_vm6  ;;  %v987_v39 = vadd.s32 %v6034_v4, %v730_v29  ;;  %v988_v40 = vadd.s32 %v6034_v4, %v731_v30  ;;  %v1019_v41 = vadd.s32 %v6034_v4, %v762_v31  ;;  %v476_v29 = vld [vmem:[%s6010_s12 + $0x40] sm:$0xff] }
  0xf8   : > { %3938 = vmatprep.subr.bf16.mxu0 %v4796_v32  ;;  %v4828_v42 = vcombine.high %v2295_v33, %v2296_v37  ;;  %v4827_v43 = vcombine.low %v2295_v33, %v2296_v37  ;;  %vm2010_vm13 = vmpackc.low %vm1242_vm7, %vm1242_vm7  ;;  %v2265_v44 = vsel %vm2009_vm12, %v470_v28, 0  ;;  %v1020_v46 = vadd.s32 %v6034_v4, %v763_v36  ;;  %v477_v32 = vld [vmem:[%s6010_s12 + $0x48] sm:$0xff]  ;;  %v508_v37 = vld [vmem:[%s6010_s12 + $0x140] sm:$0xff] }
  0xf9   : > { %3939 = vmatpush1.bf16.msra.mxu0 %v4795_v34  ;;  %v2266_v47 = vsel %vm2010_vm13, %v471_v35, 0  ;;  %vm2041_vm14 = vmpackc.low %vm1273_vm8, %vm1273_vm8  ;;  %vm1243_vm15 = vcmp.lt.s32.totalorder %v987_v39, 2600  ;;  %vm1244_vm0 = vcmp.lt.s32.totalorder %v988_v40, 2600  ;;  %vm1275_vm1 = vcmp.lt.s32.totalorder %v1019_v41, 2600  ;;  %v509_v40 = vld [vmem:[%s6010_s12 + $0x148] sm:$0xff] }
  0xfa   : > { %3979 = vmatprep.subr.bf16.mxu1 %v4828_v42  ;;  %v4798_v49 = vcombine.high %v2265_v44, %v2266_v47  ;;  %vm2042_vm2 = vmpackc.low %vm1274_vm9, %vm1274_vm9  ;;  %v2297_v50 = vsel %vm2041_vm14, %v502_v38, 0  ;;  %v4797_v51 = vcombine.low %v2265_v44, %v2266_v47  ;;  %vm1276_vm3 = vcmp.lt.s32.totalorder %v1020_v46, 2600 }
  0xfb   : > { %3980 = vmatpush1.bf16.msra.mxu1 %v4827_v43  ;;  %v2298_v53 = vsel %vm2042_vm2, %v503_v45, 0  ;;  %vm2011_vm4 = vmpackc.low %vm1243_vm15, %vm1243_vm15  ;;  %v732_v55 = vadd.s32 48, %v6037_v5  ;;  %v733_v56 = vadd.s32 56, %v6037_v5  ;;  %v764_v57 = vadd.s32 304, %v6037_v5  ;;  %v478_v43 = vld [vmem:[%s6010_s12 + $0x50] sm:$0xff] }
  0xfc   : > { %3940 = vmatprep.subr.bf16.mxu0 %v4798_v49  ;;  %v4830_v58 = vcombine.high %v2297_v50, %v2298_v53  ;;  %v4829_v59 = vcombine.low %v2297_v50, %v2298_v53  ;;  %vm2012_vm5 = vmpackc.low %vm1244_vm0, %vm1244_vm0  ;;  %v2267_v60 = vsel %vm2011_vm4, %v472_v48, 0  ;;  %v765_v62 = vadd.s32 312, %v6037_v5  ;;  %v479_v49 = vld [vmem:[%s6010_s12 + $0x58] sm:$0xff] }
  0xfd   : > { %3941 = vmatpush1.bf16.msra.mxu0 %v4797_v51  ;;  %v2268_v63 = vsel %vm2012_vm5, %v473_v52, 0  ;;  %vm2043_vm6 = vmpackc.low %vm1275_vm1, %vm1275_vm1  ;;  %v989_v0 = vadd.s32 %v6034_v4, %v732_v55  ;;  %v990_v1 = vadd.s32 %v6034_v4, %v733_v56  ;;  %v1021_v3 = vadd.s32 %v6034_v4, %v764_v57  ;;  %v510_v57 = vld [vmem:[%s6010_s12 + $0x150] sm:$0xff] }
  0xfe   : > { %3981 = vmatprep.subr.bf16.mxu1 %v4830_v58  ;;  %v4800_v6 = vcombine.high %v2267_v60, %v2268_v63  ;;  %vm2044_vm7 = vmpackc.low %vm1276_vm3, %vm1276_vm3  ;;  %v2299_v7 = vsel %vm2043_vm6, %v504_v54, 0  ;;  %v4799_v8 = vcombine.low %v2267_v60, %v2268_v63  ;;  %v1022_v10 = vadd.s32 %v6034_v4, %v765_v62  ;;  %v511_v60 = vld [vmem:[%s6010_s12 + $0x158] sm:$0xff] }
  0xff   : > { %3982 = vmatpush1.bf16.msra.mxu1 %v4829_v59  ;;  %v2300_v11 = vsel %vm2044_vm7, %v505_v61, 0  ;;  %vm1245_vm8 = vcmp.lt.s32.totalorder %v989_v0, 2600  ;;  %vm1246_vm9 = vcmp.lt.s32.totalorder %v990_v1, 2600  ;;  %vm1277_vm10 = vcmp.lt.s32.totalorder %v1021_v3, 2600  ;;  %v480_v0 = vld [vmem:[%s6010_s12 + $0x60] sm:$0xff] }
 0x100   : > { %3942 = vmatprep.subr.bf16.mxu0 %v4800_v6  ;;  %v4832_v13 = vcombine.high %v2299_v7, %v2300_v11  ;;  %v4831_v14 = vcombine.low %v2299_v7, %v2300_v11  ;;  %vm2013_vm11 = vmpackc.low %vm1245_vm8, %vm1245_vm8  ;;  %vm1278_vm12 = vcmp.lt.s32.totalorder %v1022_v10, 2600  ;;  %v734_v16 = vadd.s32 64, %v6037_v5  ;;  %v481_v7 = vld [vmem:[%s6010_s12 + $0x68] sm:$0xff] }
 0x101   : > { %3943 = vmatpush1.bf16.msra.mxu0 %v4799_v8  ;;  %vm2014_vm13 = vmpackc.low %vm1246_vm9, %vm1246_vm9  ;;  %v2269_v17 = vsel %vm2013_vm11, %v474_v9, 0  ;;  %v735_v19 = vadd.s32 72, %v6037_v5  ;;  %v766_v20 = vadd.s32 320, %v6037_v5  ;;  %v767_v21 = vadd.s32 328, %v6037_v5 }
 0x102   : > { %3983 = vmatprep.subr.bf16.mxu1 %v4832_v13  ;;  %v2270_v22 = vsel %vm2014_vm13, %v475_v12, 0  ;;  %vm2045_vm14 = vmpackc.low %vm1277_vm10, %vm1277_vm10  ;;  %v991_v23 = vadd.s32 %v6034_v4, %v734_v16  ;;  %v736_v24 = vadd.s32 80, %v6037_v5  ;;  %v737_v25 = vadd.s32 88, %v6037_v5  ;;  %v512_v16 = vld [vmem:[%s6010_s12 + $0x160] sm:$0xff] }
 0x103   : > { %3984 = vmatpush1.bf16.msra.mxu1 %v4831_v14  ;;  %v4802_v26 = vcombine.high %v2269_v17, %v2270_v22  ;;  %vm2046_vm15 = vmpackc.low %vm1278_vm12, %vm1278_vm12  ;;  %v2301_v27 = vsel %vm2045_vm14, %v506_v15, 0  ;;  %v4801_v28 = vcombine.low %v2269_v17, %v2270_v22  ;;  %v992_v30 = vadd.s32 %v6034_v4, %v735_v19  ;;  %v513_v19 = vld [vmem:[%s6010_s12 + $0x168] sm:$0xff] }
 0x104   : > { %v2302_v31 = vsel %vm2046_vm15, %v507_v18, 0  ;;  %vm1247_vm0 = vcmp.lt.s32.totalorder %v991_v23, 2600  ;;  %v1023_v33 = vadd.s32 %v6034_v4, %v766_v20  ;;  %v1024_v34 = vadd.s32 %v6034_v4, %v767_v21 }
 0x105   : > { %3944 = vmatprep.subr.bf16.mxu0 %v4802_v26  ;;  %v4834_v35 = vcombine.high %v2301_v27, %v2302_v31  ;;  %v4833_v36 = vcombine.low %v2301_v27, %v2302_v31  ;;  %vm1248_vm1 = vcmp.lt.s32.totalorder %v992_v30, 2600  ;;  %vm2015_vm2 = vmpackc.low %vm1247_vm0, %vm1247_vm0  ;;  %v993_v38 = vadd.s32 %v6034_v4, %v736_v24  ;;  %v482_v24 = vld [vmem:[%s6010_s12 + $0x70] sm:$0xff]  ;;  %v483_v27 = vld [vmem:[%s6010_s12 + $0x78] sm:$0xff] }
 0x106   : > { %3945 = vmatpush1.bf16.msra.mxu0 %v4801_v28  ;;  %vm2016_vm3 = vmpackc.low %vm1248_vm1, %vm1248_vm1  ;;  %v2271_v39 = vsel %vm2015_vm2, %v476_v29, 0  ;;  %vm1279_vm4 = vcmp.lt.s32.totalorder %v1023_v33, 2600  ;;  %vm1280_vm5 = vcmp.lt.s32.totalorder %v1024_v34, 2600  ;;  %v994_v41 = vadd.s32 %v6034_v4, %v737_v25 }
 0x107   : > { %3985 = vmatprep.subr.bf16.mxu1 %v4834_v35  ;;  %v2272_v42 = vsel %vm2016_vm3, %v477_v32, 0  ;;  %vm2047_vm6 = vmpackc.low %vm1279_vm4, %vm1279_vm4  ;;  %vm1249_vm7 = vcmp.lt.s32.totalorder %v993_v38, 2600  ;;  %v768_v44 = vadd.s32 336, %v6037_v5  ;;  %v769_v45 = vadd.s32 344, %v6037_v5 }
 0x108   : > { %3986 = vmatpush1.bf16.msra.mxu1 %v4833_v36  ;;  %v4804_v46 = vcombine.high %v2271_v39, %v2272_v42  ;;  %vm2048_vm8 = vmpackc.low %vm1280_vm5, %vm1280_vm5  ;;  %v2303_v47 = vsel %vm2047_vm6, %v508_v37, 0  ;;  %v4803_v48 = vcombine.low %v2271_v39, %v2272_v42  ;;  %vm1250_vm9 = vcmp.lt.s32.totalorder %v994_v41, 2600  ;;  %v514_v36 = vld [vmem:[%s6010_s12 + $0x170] sm:$0xff]  ;;  %v515_v39 = vld [vmem:[%s6010_s12 + $0x178] sm:$0xff] }
 0x109   : > { %v2304_v50 = vsel %vm2048_vm8, %v509_v40, 0  ;;  %vm2017_vm10 = vmpackc.low %vm1249_vm7, %vm1249_vm7  ;;  %v1025_v51 = vadd.s32 %v6034_v4, %v768_v44  ;;  %v1026_v52 = vadd.s32 %v6034_v4, %v769_v45  ;;  %v738_v53 = vadd.s32 96, %v6037_v5  ;;  %v484_v44 = vld [vmem:[%s6010_s12 + $0x80] sm:$0xff] }
 0x10a   : > { %3946 = vmatprep.subr.bf16.mxu0 %v4804_v46  ;;  %v4836_v54 = vcombine.high %v2303_v47, %v2304_v50  ;;  %v4835_v55 = vcombine.low %v2303_v47, %v2304_v50  ;;  %vm2018_vm11 = vmpackc.low %vm1250_vm9, %vm1250_vm9  ;;  %v2273_v56 = vsel %vm2017_vm10, %v478_v43, 0  ;;  %v739_v58 = vadd.s32 104, %v6037_v5  ;;  %v485_v47 = vld [vmem:[%s6010_s12 + $0x88] sm:$0xff] }
 0x10b   : > { %3947 = vmatpush1.bf16.msra.mxu0 %v4803_v48  ;;  %v2274_v59 = vsel %vm2018_vm11, %v479_v49, 0  ;;  %vm1281_vm12 = vcmp.lt.s32.totalorder %v1025_v51, 2600  ;;  %vm1282_vm13 = vcmp.lt.s32.totalorder %v1026_v52, 2600  ;;  %v995_v61 = vadd.s32 %v6034_v4, %v738_v53 }
 0x10c   : > { %3987 = vmatprep.subr.bf16.mxu1 %v4836_v54  ;;  %v4806_v62 = vcombine.high %v2273_v56, %v2274_v59  ;;  %vm2049_vm14 = vmpackc.low %vm1281_vm12, %vm1281_vm12  ;;  %v4805_v63 = vcombine.low %v2273_v56, %v2274_v59  ;;  %v996_v1 = vadd.s32 %v6034_v4, %v739_v58  ;;  %v770_v3 = vadd.s32 352, %v6037_v5  ;;  %v516_v56 = vld [vmem:[%s6010_s12 + $0x180] sm:$0xff]  ;;  %v517_v59 = vld [vmem:[%s6010_s12 + $0x188] sm:$0xff] }
 0x10d   : > { %3988 = vmatpush1.bf16.msra.mxu1 %v4835_v55  ;;  %vm2050_vm15 = vmpackc.low %vm1282_vm13, %vm1282_vm13  ;;  %v2305_v6 = vsel %vm2049_vm14, %v510_v57, 0  ;;  %vm1251_vm0 = vcmp.lt.s32.totalorder %v995_v61, 2600  ;;  %v771_v8 = vadd.s32 360, %v6037_v5  ;;  %v740_v9 = vadd.s32 112, %v6037_v5 }
 0x10e   : > { %3948 = vmatprep.subr.bf16.mxu0 %v4806_v62  ;;  %v2306_v10 = vsel %vm2050_vm15, %v511_v60, 0  ;;  %vm1252_vm1 = vcmp.lt.s32.totalorder %v996_v1, 2600  ;;  %vm2019_vm2 = vmpackc.low %vm1251_vm0, %vm1251_vm0  ;;  %v1027_v11 = vadd.s32 %v6034_v4, %v770_v3  ;;  %v741_v12 = vadd.s32 120, %v6037_v5 }
 0x10f   : > { %v4838_v13 = vcombine.high %v2305_v6, %v2306_v10  ;;  %3949 = vmatpush1.bf16.msra.mxu0 %v4805_v63  ;;  %v4837_v14 = vcombine.low %v2305_v6, %v2306_v10  ;;  %vm2020_vm3 = vmpackc.low %vm1252_vm1, %vm1252_vm1  ;;  %v2275_v15 = vsel %vm2019_vm2, %v480_v0, 0  ;;  %v1028_v17 = vadd.s32 %v6034_v4, %v771_v8  ;;  %v486_v0 = vld [vmem:[%s6010_s12 + $0x90] sm:$0xff]  ;;  %v487_v6 = vld [vmem:[%s6010_s12 + $0x98] sm:$0xff] }
 0x110   : > { %v2276_v18 = vsel %vm2020_vm3, %v481_v7, 0  ;;  %vm1283_vm4 = vcmp.lt.s32.totalorder %v1027_v11, 2600  ;;  %v997_v20 = vadd.s32 %v6034_v4, %v740_v9  ;;  %v998_v21 = vadd.s32 %v6034_v4, %v741_v12 }
 0x111   : > { %3989 = vmatprep.subr.bf16.mxu1 %v4838_v13  ;;  %v4808_v22 = vcombine.high %v2275_v15, %v2276_v18  ;;  %vm1284_vm5 = vcmp.lt.s32.totalorder %v1028_v17, 2600  ;;  %vm2051_vm6 = vmpackc.low %vm1283_vm4, %vm1283_vm4  ;;  %v4807_v23 = vcombine.low %v2275_v15, %v2276_v18  ;;  %v772_v25 = vadd.s32 368, %v6037_v5  ;;  %v518_v15 = vld [vmem:[%s6010_s12 + $0x190] sm:$0xff]  ;;  %v519_v18 = vld [vmem:[%s6010_s12 + $0x198] sm:$0xff] }
 0x112   : > { %3990 = vmatpush1.bf16.msra.mxu1 %v4837_v14  ;;  %vm2052_vm7 = vmpackc.low %vm1284_vm5, %vm1284_vm5  ;;  %v2307_v26 = vsel %vm2051_vm6, %v512_v16, 0  ;;  %vm1253_vm8 = vcmp.lt.s32.totalorder %v997_v20, 2600  ;;  %vm1254_vm9 = vcmp.lt.s32.totalorder %v998_v21, 2600  ;;  %v773_v28 = vadd.s32 376, %v6037_v5 }
 0x113   : > { %3950 = vmatprep.subr.bf16.mxu0 %v4808_v22  ;;  %v2308_v29 = vsel %vm2052_vm7, %v513_v19, 0  ;;  %vm2021_vm10 = vmpackc.low %vm1253_vm8, %vm1253_vm8  ;;  %v1029_v30 = vadd.s32 %v6034_v4, %v772_v25  ;;  %v742_v31 = vadd.s32 128, %v6037_v5  ;;  %v743_v32 = vadd.s32 136, %v6037_v5 }
 0x114   : > { %v4840_v33 = vcombine.high %v2307_v26, %v2308_v29  ;;  %3951 = vmatpush1.bf16.msra.mxu0 %v4807_v23  ;;  %v4839_v34 = vcombine.low %v2307_v26, %v2308_v29  ;;  %vm2022_vm11 = vmpackc.low %vm1254_vm9, %vm1254_vm9  ;;  %v2277_v35 = vsel %vm2021_vm10, %v482_v24, 0  ;;  %v1030_v37 = vadd.s32 %v6034_v4, %v773_v28  ;;  %v488_v23 = vld [vmem:[%s6010_s12 + $0xa0] sm:$0xff]  ;;  %v489_v26 = vld [vmem:[%s6010_s12 + $0xa8] sm:$0xff] }
 0x115   : > { %v2278_v38 = vsel %vm2022_vm11, %v483_v27, 0  ;;  %vm1285_vm12 = vcmp.lt.s32.totalorder %v1029_v30, 2600  ;;  %v999_v40 = vadd.s32 %v6034_v4, %v742_v31  ;;  %v1000_v41 = vadd.s32 %v6034_v4, %v743_v32 }
 0x116   : > { %3991 = vmatprep.subr.bf16.mxu1 %v4840_v33  ;;  %v4810_v42 = vcombine.high %v2277_v35, %v2278_v38  ;;  %vm1286_vm13 = vcmp.lt.s32.totalorder %v1030_v37, 2600  ;;  %vm2053_vm14 = vmpackc.low %vm1285_vm12, %vm1285_vm12  ;;  %v4809_v43 = vcombine.low %v2277_v35, %v2278_v38  ;;  %v774_v45 = vadd.s32 384, %v6037_v5  ;;  %v520_v35 = vld [vmem:[%s6010_s12 + $0x1a0] sm:$0xff]  ;;  %v521_v38 = vld [vmem:[%s6010_s12 + $0x1a8] sm:$0xff] }
 0x117   : > { %3992 = vmatpush1.bf16.msra.mxu1 %v4839_v34  ;;  %vm2054_vm15 = vmpackc.low %vm1286_vm13, %vm1286_vm13  ;;  %v2309_v46 = vsel %vm2053_vm14, %v514_v36, 0  ;;  %vm1255_vm0 = vcmp.lt.s32.totalorder %v999_v40, 2600  ;;  %vm1256_vm1 = vcmp.lt.s32.totalorder %v1000_v41, 2600  ;;  %v775_v48 = vadd.s32 392, %v6037_v5 }
 0x118   : > { %3952 = vmatprep.subr.bf16.mxu0 %v4810_v42  ;;  %v2310_v49 = vsel %vm2054_vm15, %v515_v39, 0  ;;  %vm2023_vm2 = vmpackc.low %vm1255_vm0, %vm1255_vm0  ;;  %v1031_v50 = vadd.s32 %v6034_v4, %v774_v45  ;;  %v744_v51 = vadd.s32 144, %v6037_v5  ;;  %v745_v52 = vadd.s32 152, %v6037_v5 }
 0x119   : > { %v4842_v53 = vcombine.high %v2309_v46, %v2310_v49  ;;  %3953 = vmatpush1.bf16.msra.mxu0 %v4809_v43  ;;  %v4841_v54 = vcombine.low %v2309_v46, %v2310_v49  ;;  %vm2024_vm3 = vmpackc.low %vm1256_vm1, %vm1256_vm1  ;;  %v2279_v55 = vsel %vm2023_vm2, %v484_v44, 0  ;;  %v1032_v57 = vadd.s32 %v6034_v4, %v775_v48  ;;  %v490_v43 = vld [vmem:[%s6010_s12 + $0xb0] sm:$0xff]  ;;  %v491_v46 = vld [vmem:[%s6010_s12 + $0xb8] sm:$0xff] }
 0x11a   : > { %v2280_v58 = vsel %vm2024_vm3, %v485_v47, 0  ;;  %vm1287_vm4 = vcmp.lt.s32.totalorder %v1031_v50, 2600  ;;  %v1001_v60 = vadd.s32 %v6034_v4, %v744_v51  ;;  %v1002_v61 = vadd.s32 %v6034_v4, %v745_v52 }
 0x11b   : > { %3993 = vmatprep.subr.bf16.mxu1 %v4842_v53  ;;  %v4812_v62 = vcombine.high %v2279_v55, %v2280_v58  ;;  %vm1288_vm5 = vcmp.lt.s32.totalorder %v1032_v57, 2600  ;;  %vm2055_vm6 = vmpackc.low %vm1287_vm4, %vm1287_vm4  ;;  %v4811_v63 = vcombine.low %v2279_v55, %v2280_v58  ;;  %v776_v1 = vadd.s32 400, %v6037_v5  ;;  %v522_v55 = vld [vmem:[%s6010_s12 + $0x1b0] sm:$0xff]  ;;  %v523_v58 = vld [vmem:[%s6010_s12 + $0x1b8] sm:$0xff] }
 0x11c   : > { %3994 = vmatpush1.bf16.msra.mxu1 %v4841_v54  ;;  %vm2056_vm7 = vmpackc.low %vm1288_vm5, %vm1288_vm5  ;;  %v2311_v3 = vsel %vm2055_vm6, %v516_v56, 0  ;;  %vm1257_vm8 = vcmp.lt.s32.totalorder %v1001_v60, 2600  ;;  %vm1258_vm9 = vcmp.lt.s32.totalorder %v1002_v61, 2600  ;;  %v777_v7 = vadd.s32 408, %v6037_v5 }
 0x11d   : > { %3954 = vmatprep.subr.bf16.mxu0 %v4812_v62  ;;  %v2312_v8 = vsel %vm2056_vm7, %v517_v59, 0  ;;  %vm2025_vm10 = vmpackc.low %vm1257_vm8, %vm1257_vm8  ;;  %v1033_v9 = vadd.s32 %v6034_v4, %v776_v1  ;;  %v746_v10 = vadd.s32 160, %v6037_v5  ;;  %v747_v11 = vadd.s32 168, %v6037_v5 }
 0x11e   : > { %v4844_v12 = vcombine.high %v2311_v3, %v2312_v8  ;;  %3955 = vmatpush1.bf16.msra.mxu0 %v4811_v63  ;;  %v4843_v13 = vcombine.low %v2311_v3, %v2312_v8  ;;  %vm2026_vm11 = vmpackc.low %vm1258_vm9, %vm1258_vm9  ;;  %v2281_v14 = vsel %vm2025_vm10, %v486_v0, 0  ;;  %v1034_v16 = vadd.s32 %v6034_v4, %v777_v7  ;;  %v492_v63 = vld [vmem:[%s6010_s12 + $0xc0] sm:$0xff]  ;;  %v493_v3 = vld [vmem:[%s6010_s12 + $0xc8] sm:$0xff] }
 0x11f   : > { %v2282_v17 = vsel %vm2026_vm11, %v487_v6, 0  ;;  %vm1289_vm12 = vcmp.lt.s32.totalorder %v1033_v9, 2600  ;;  %v1003_v19 = vadd.s32 %v6034_v4, %v746_v10  ;;  %v1004_v20 = vadd.s32 %v6034_v4, %v747_v11 }
 0x120   : > { %3995 = vmatprep.subr.bf16.mxu1 %v4844_v12  ;;  %v4814_v21 = vcombine.high %v2281_v14, %v2282_v17  ;;  %vm1290_vm13 = vcmp.lt.s32.totalorder %v1034_v16, 2600  ;;  %vm2057_vm14 = vmpackc.low %vm1289_vm12, %vm1289_vm12  ;;  %v4813_v22 = vcombine.low %v2281_v14, %v2282_v17  ;;  %v778_v24 = vadd.s32 416, %v6037_v5  ;;  %v524_v14 = vld [vmem:[%s6010_s12 + $0x1c0] sm:$0xff]  ;;  %v525_v17 = vld [vmem:[%s6010_s12 + $0x1c8] sm:$0xff] }
 0x121   : > { %3996 = vmatpush1.bf16.msra.mxu1 %v4843_v13  ;;  %vm2058_vm15 = vmpackc.low %vm1290_vm13, %vm1290_vm13  ;;  %v2313_v25 = vsel %vm2057_vm14, %v518_v15, 0  ;;  %vm1259_vm0 = vcmp.lt.s32.totalorder %v1003_v19, 2600  ;;  %vm1260_vm1 = vcmp.lt.s32.totalorder %v1004_v20, 2600  ;;  %v779_v27 = vadd.s32 424, %v6037_v5 }
 0x122   : > { %3956 = vmatprep.subr.bf16.mxu0 %v4814_v21  ;;  %v2314_v28 = vsel %vm2058_vm15, %v519_v18, 0  ;;  %vm2027_vm2 = vmpackc.low %vm1259_vm0, %vm1259_vm0  ;;  %v1035_v29 = vadd.s32 %v6034_v4, %v778_v24  ;;  %v748_v30 = vadd.s32 176, %v6037_v5  ;;  %v749_v31 = vadd.s32 184, %v6037_v5 }
 0x123   : > { %v4846_v32 = vcombine.high %v2313_v25, %v2314_v28  ;;  %3957 = vmatpush1.bf16.msra.mxu0 %v4813_v22  ;;  %v4845_v33 = vcombine.low %v2313_v25, %v2314_v28  ;;  %vm2028_vm3 = vmpackc.low %vm1260_vm1, %vm1260_vm1  ;;  %v2283_v34 = vsel %vm2027_vm2, %v488_v23, 0  ;;  %v1036_v36 = vadd.s32 %v6034_v4, %v779_v27  ;;  %v494_v22 = vld [vmem:[%s6010_s12 + $0xd0] sm:$0xff]  ;;  %v495_v25 = vld [vmem:[%s6010_s12 + $0xd8] sm:$0xff] }
 0x124   : > { %v2284_v37 = vsel %vm2028_vm3, %v489_v26, 0  ;;  %vm1291_vm4 = vcmp.lt.s32.totalorder %v1035_v29, 2600  ;;  %v1005_v39 = vadd.s32 %v6034_v4, %v748_v30  ;;  %v1006_v40 = vadd.s32 %v6034_v4, %v749_v31 }
 0x125   : > { %3997 = vmatprep.subr.bf16.mxu1 %v4846_v32  ;;  %v4816_v41 = vcombine.high %v2283_v34, %v2284_v37  ;;  %vm1292_vm5 = vcmp.lt.s32.totalorder %v1036_v36, 2600  ;;  %vm2059_vm6 = vmpackc.low %vm1291_vm4, %vm1291_vm4  ;;  %v4815_v42 = vcombine.low %v2283_v34, %v2284_v37  ;;  %v780_v44 = vadd.s32 432, %v6037_v5  ;;  %v526_v34 = vld [vmem:[%s6010_s12 + $0x1d0] sm:$0xff]  ;;  %v527_v37 = vld [vmem:[%s6010_s12 + $0x1d8] sm:$0xff] }
 0x126   : > { %3998 = vmatpush1.bf16.msra.mxu1 %v4845_v33  ;;  %vm2060_vm7 = vmpackc.low %vm1292_vm5, %vm1292_vm5  ;;  %v2315_v45 = vsel %vm2059_vm6, %v520_v35, 0  ;;  %vm1261_vm8 = vcmp.lt.s32.totalorder %v1005_v39, 2600  ;;  %vm1262_vm9 = vcmp.lt.s32.totalorder %v1006_v40, 2600  ;;  %v781_v47 = vadd.s32 440, %v6037_v5 }
 0x127   : > { %3958 = vmatprep.subr.bf16.mxu0 %v4816_v41  ;;  %v2316_v48 = vsel %vm2060_vm7, %v521_v38, 0  ;;  %vm2029_vm10 = vmpackc.low %vm1261_vm8, %vm1261_vm8  ;;  %v1037_v49 = vadd.s32 %v6034_v4, %v780_v44  ;;  %v750_v50 = vadd.s32 192, %v6037_v5  ;;  %v751_v51 = vadd.s32 200, %v6037_v5 }
 0x128   : > { %v4848_v52 = vcombine.high %v2315_v45, %v2316_v48  ;;  %3959 = vmatpush1.bf16.msra.mxu0 %v4815_v42  ;;  %v4847_v53 = vcombine.low %v2315_v45, %v2316_v48  ;;  %vm2030_vm11 = vmpackc.low %vm1262_vm9, %vm1262_vm9  ;;  %v2285_v54 = vsel %vm2029_vm10, %v490_v43, 0  ;;  %v1038_v56 = vadd.s32 %v6034_v4, %v781_v47  ;;  %v496_v42 = vld [vmem:[%s6010_s12 + $0xe0] sm:$0xff]  ;;  %v497_v45 = vld [vmem:[%s6010_s12 + $0xe8] sm:$0xff] }
 0x129   : > { %v2286_v57 = vsel %vm2030_vm11, %v491_v46, 0  ;;  %vm1293_vm12 = vcmp.lt.s32.totalorder %v1037_v49, 2600  ;;  %v1007_v59 = vadd.s32 %v6034_v4, %v750_v50  ;;  %v1008_v60 = vadd.s32 %v6034_v4, %v751_v51 }
 0x12a   : > { %3999 = vmatprep.subr.bf16.mxu1 %v4848_v52  ;;  %v4818_v61 = vcombine.high %v2285_v54, %v2286_v57  ;;  %vm1294_vm13 = vcmp.lt.s32.totalorder %v1038_v56, 2600  ;;  %vm2061_vm14 = vmpackc.low %vm1293_vm12, %vm1293_vm12  ;;  %v4817_v62 = vcombine.low %v2285_v54, %v2286_v57  ;;  %v782_v0 = vadd.s32 448, %v6037_v5  ;;  %v528_v54 = vld [vmem:[%s6010_s12 + $0x1e0] sm:$0xff]  ;;  %v529_v57 = vld [vmem:[%s6010_s12 + $0x1e8] sm:$0xff] }
 0x12b   : > { %4000 = vmatpush1.bf16.msra.mxu1 %v4847_v53  ;;  %vm2062_vm15 = vmpackc.low %vm1294_vm13, %vm1294_vm13  ;;  %v2317_v1 = vsel %vm2061_vm14, %v522_v55, 0  ;;  %vm1263_vm0 = vcmp.lt.s32.totalorder %v1007_v59, 2600  ;;  %vm1264_vm1 = vcmp.lt.s32.totalorder %v1008_v60, 2600  ;;  %v783_v6 = vadd.s32 456, %v6037_v5 }
 0x12c   : > { %3960 = vmatprep.subr.bf16.mxu0 %v4818_v61  ;;  %v2318_v7 = vsel %vm2062_vm15, %v523_v58, 0  ;;  %vm2031_vm2 = vmpackc.low %vm1263_vm0, %vm1263_vm0  ;;  %v1039_v8 = vadd.s32 %v6034_v4, %v782_v0  ;;  %v752_v9 = vadd.s32 208, %v6037_v5  ;;  %v753_v10 = vadd.s32 216, %v6037_v5 }
 0x12d   : > { %v4850_v11 = vcombine.high %v2317_v1, %v2318_v7  ;;  %3961 = vmatpush1.bf16.msra.mxu0 %v4817_v62  ;;  %v4849_v12 = vcombine.low %v2317_v1, %v2318_v7  ;;  %vm2032_vm3 = vmpackc.low %vm1264_vm1, %vm1264_vm1  ;;  %v2287_v13 = vsel %vm2031_vm2, %v492_v63, 0  ;;  %v1040_v15 = vadd.s32 %v6034_v4, %v783_v6  ;;  %v498_v62 = vld [vmem:[%s6010_s12 + $0xf0] sm:$0xff]  ;;  %v499_v1 = vld [vmem:[%s6010_s12 + $0xf8] sm:$0xff] }
 0x12e   : > { %v2288_v16 = vsel %vm2032_vm3, %v493_v3, 0  ;;  %vm1295_vm4 = vcmp.lt.s32.totalorder %v1039_v8, 2600  ;;  %v1009_v18 = vadd.s32 %v6034_v4, %v752_v9  ;;  %v1010_v19 = vadd.s32 %v6034_v4, %v753_v10 }
 0x12f   : > { %4001 = vmatprep.subr.bf16.mxu1 %v4850_v11  ;;  %v4820_v20 = vcombine.high %v2287_v13, %v2288_v16  ;;  %vm1296_vm5 = vcmp.lt.s32.totalorder %v1040_v15, 2600  ;;  %vm2063_vm6 = vmpackc.low %vm1295_vm4, %vm1295_vm4  ;;  %v4819_v21 = vcombine.low %v2287_v13, %v2288_v16  ;;  %v784_v23 = vadd.s32 464, %v6037_v5  ;;  %v530_v11 = vld [vmem:[%s6010_s12 + $0x1f0] sm:$0xff] }
 0x130   : > { %4002 = vmatpush1.bf16.msra.mxu1 %v4849_v12  ;;  %vm2064_vm7 = vmpackc.low %vm1296_vm5, %vm1296_vm5  ;;  %v2319_v24 = vsel %vm2063_vm6, %v524_v14, 0  ;;  %vm1265_vm8 = vcmp.lt.s32.totalorder %v1009_v18, 2600  ;;  %vm1266_vm9 = vcmp.lt.s32.totalorder %v1010_v19, 2600  ;;  %v785_v26 = vadd.s32 472, %v6037_v5  ;;  %v531_v14 = vld [vmem:[%s6010_s12 + $0x1f8] sm:$0xff] }
 0x131   : > { %3962 = vmatprep.subr.bf16.mxu0 %v4820_v20  ;;  %v2320_v27 = vsel %vm2064_vm7, %v525_v17, 0  ;;  %vm2033_vm10 = vmpackc.low %vm1265_vm8, %vm1265_vm8  ;;  %v1041_v28 = vadd.s32 %v6034_v4, %v784_v23  ;;  %v754_v29 = vadd.s32 224, %v6037_v5  ;;  %v755_v30 = vadd.s32 232, %v6037_v5 }
 0x132   : > { %v4852_v31 = vcombine.high %v2319_v24, %v2320_v27  ;;  %3963 = vmatpush1.bf16.msra.mxu0 %v4819_v21  ;;  %v4851_v32 = vcombine.low %v2319_v24, %v2320_v27  ;;  %vm2034_vm11 = vmpackc.low %vm1266_vm9, %vm1266_vm9  ;;  %v2289_v33 = vsel %vm2033_vm10, %v494_v22, 0  ;;  %v1042_v35 = vadd.s32 %v6034_v4, %v785_v26  ;;  %v532_v27 = vld [vmem:[%s6010_s12 + $0x200] sm:$0xff] }
 0x133   : > { %v2290_v36 = vsel %vm2034_vm11, %v495_v25, 0  ;;  %vm1297_vm12 = vcmp.lt.s32.totalorder %v1041_v28, 2600  ;;  %v1011_v38 = vadd.s32 %v6034_v4, %v754_v29  ;;  %v1012_v39 = vadd.s32 %v6034_v4, %v755_v30  ;;  %v533_v30 = vld [vmem:[%s6010_s12 + $0x208] sm:$0xff] }
 0x134   : > { %4003 = vmatprep.subr.bf16.mxu1 %v4852_v31  ;;  %v4822_v40 = vcombine.high %v2289_v33, %v2290_v36  ;;  %vm1298_vm13 = vcmp.lt.s32.totalorder %v1042_v35, 2600  ;;  %vm2065_vm14 = vmpackc.low %vm1297_vm12, %vm1297_vm12  ;;  %v4821_v41 = vcombine.low %v2289_v33, %v2290_v36  ;;  %v786_v43 = vadd.s32 480, %v6037_v5  ;;  %v565_v35 = vld [vmem:[%s6010_s12 + $0x308] sm:$0xff] }
 0x135   : > { %4004 = vmatpush1.bf16.msra.mxu1 %v4851_v32  ;;  %vm2066_vm15 = vmpackc.low %vm1298_vm13, %vm1298_vm13  ;;  %v2321_v44 = vsel %vm2065_vm14, %v526_v34, 0  ;;  %vm1267_vm0 = vcmp.lt.s32.totalorder %v1011_v38, 2600  ;;  %vm1268_vm1 = vcmp.lt.s32.totalorder %v1012_v39, 2600  ;;  %v787_v46 = vadd.s32 488, %v6037_v5 }
 0x136   : > { %3964 = vmatprep.subr.bf16.mxu0 %v4822_v40  ;;  %v2322_v47 = vsel %vm2066_vm15, %v527_v37, 0  ;;  %vm2035_vm2 = vmpackc.low %vm1267_vm0, %vm1267_vm0  ;;  %v1043_v48 = vadd.s32 %v6034_v4, %v786_v43  ;;  %v756_v49 = vadd.s32 240, %v6037_v5  ;;  %v757_v50 = vadd.s32 248, %v6037_v5 }
 0x137   : > { %v4854_v51 = vcombine.high %v2321_v44, %v2322_v47  ;;  %3965 = vmatpush1.bf16.msra.mxu0 %v4821_v41  ;;  %v4853_v52 = vcombine.low %v2321_v44, %v2322_v47  ;;  %vm2036_vm3 = vmpackc.low %vm1268_vm1, %vm1268_vm1  ;;  %v2291_v53 = vsel %vm2035_vm2, %v496_v42, 0  ;;  %v1044_v55 = vadd.s32 %v6034_v4, %v787_v46 }
 0x138   : > { %v2292_v56 = vsel %vm2036_vm3, %v497_v45, 0  ;;  %vm1299_vm4 = vcmp.lt.s32.totalorder %v1043_v48, 2600  ;;  %v1013_v58 = vadd.s32 %v6034_v4, %v756_v49  ;;  %v1014_v59 = vadd.s32 %v6034_v4, %v757_v50 }
 0x139   : > { %4005 = vmatprep.subr.bf16.mxu1 %v4854_v51  ;;  %v4824_v60 = vcombine.high %v2291_v53, %v2292_v56  ;;  %vm1300_vm5 = vcmp.lt.s32.totalorder %v1044_v55, 2600  ;;  %vm2067_vm6 = vmpackc.low %vm1299_vm4, %vm1299_vm4  ;;  %v4823_v61 = vcombine.low %v2291_v53, %v2292_v56  ;;  %v788_v63 = vadd.s32 496, %v6037_v5 }
 0x13a   : > { %4006 = vmatpush1.bf16.msra.mxu1 %v4853_v52  ;;  %vm2068_vm7 = vmpackc.low %vm1300_vm5, %vm1300_vm5  ;;  %v2323_v0 = vsel %vm2067_vm6, %v528_v54, 0  ;;  %vm1269_vm8 = vcmp.lt.s32.totalorder %v1013_v58, 2600  ;;  %vm1270_vm9 = vcmp.lt.s32.totalorder %v1014_v59, 2600  ;;  %v789_v3 = vadd.s32 504, %v6037_v5 }
 0x13b   : > { %3966 = vmatprep.subr.bf16.mxu0 %v4824_v60  ;;  %v2324_v6 = vsel %vm2068_vm7, %v529_v57, 0  ;;  %vm2037_vm10 = vmpackc.low %vm1269_vm8, %vm1269_vm8  ;;  %v1045_v7 = vadd.s32 %v6034_v4, %v788_v63  ;;  %v790_v17 = vadd.s32 512, %v6037_v5  ;;  %v791_v19 = vadd.s32 520, %v6037_v5  ;;  %v534_v63 = vld [vmem:[%s6010_s12 + $0x210] sm:$0xff] }
 0x13c   : > { %v4856_v8 = vcombine.high %v2323_v0, %v2324_v6  ;;  %3967 = vmatpush1.bf16.msra.mxu0 %v4823_v61  ;;  %v4855_v9 = vcombine.low %v2323_v0, %v2324_v6  ;;  %vm2038_vm11 = vmpackc.low %vm1270_vm9, %vm1270_vm9  ;;  %v2293_v10 = vsel %vm2037_vm10, %v498_v62, 0  ;;  %v1046_v12 = vadd.s32 %v6034_v4, %v789_v3  ;;  %v535_v3 = vld [vmem:[%s6010_s12 + $0x218] sm:$0xff] }
 0x13d   : > { %v2294_v13 = vsel %vm2038_vm11, %v499_v1, 0  ;;  %vm1301_vm12 = vcmp.lt.s32.totalorder %v1045_v7, 2600  ;;  %v822_v20 = vadd.s32 768, %v6037_v5  ;;  %v6256_v22 = vand.u32 127, %v725_v2  ;;  %v564_v2 = vld [vmem:[%s6010_s12 + $0x300] sm:$0xff] }
 0x13e   : > { %4007 = vmatprep.subr.bf16.mxu1 %v4856_v8  ;;  %v4826_v15 = vcombine.high %v2293_v10, %v2294_v13  ;;  %vm1302_vm13 = vcmp.lt.s32.totalorder %v1046_v12, 2600  ;;  %vm2069_vm14 = vmpackc.low %vm1301_vm12, %vm1301_vm12  ;;  %v4825_v16 = vcombine.low %v2293_v10, %v2294_v13  ;;  %v1047_v23 = vadd.s32 %v6034_v4, %v790_v17  ;;  %v566_v12 = vld [vmem:[%s6010_s12 + $0x310] sm:$0xff]  ;;  %v567_v17 = vld [vmem:[%s6010_s12 + $0x318] sm:$0xff] }
 0x13f   : > { %4008 = vmatpush1.bf16.msra.mxu1 %v4855_v9  ;;  %vm2070_vm15 = vmpackc.low %vm1302_vm13, %vm1302_vm13  ;;  %v2325_v18 = vsel %vm2069_vm14, %v530_v11, 0  ;;  %v823_v24 = vadd.s32 776, %v6037_v5  ;;  %v1048_v28 = vadd.s32 %v6034_v4, %v791_v19  ;;  %v1079_v29 = vadd.s32 %v6034_v4, %v822_v20 }
 0x140   : > { %3968 = vmatprep.subr.bf16.mxu0 %v4826_v15  ;;  %v2326_v21 = vsel %vm2070_vm15, %v531_v14, 0  ;;  %vm1303_vm0 = vcmp.lt.s32.totalorder %v1047_v23, 2600  ;;  %v792_v32 = vadd.s32 528, %v6037_v5  ;;  %v2521_v33 = vadd.s32 128, %v6256_v22  ;;  %v537_v23 = vld [vmem:[%s6010_s12 + $0x228] sm:$0xff] }
 0x141   : > { %v4858_v25 = vcombine.high %v2325_v18, %v2326_v21  ;;  %3969 = vmatpush1.bf16.msra.mxu0 %v4825_v16  ;;  %v4857_v26 = vcombine.low %v2325_v18, %v2326_v21  ;;  %v1080_v31 = vadd.s32 %v6034_v4, %v823_v24  ;;  %vm1304_vm1 = vcmp.lt.s32.totalorder %v1048_v28, 2600  ;;  %vm2071_vm2 = vmpackc.low %vm1303_vm0, %vm1303_vm0  ;;  %v536_v21 = vld [vmem:[%s6010_s12 + $0x220] sm:$0xff] }
 0x142   : > { %vm1335_vm3 = vcmp.lt.s32.totalorder %v1079_v29, 2600  ;;  %vm2072_vm4 = vmpackc.low %vm1304_vm1, %vm1304_vm1  ;;  %v6268_v34 = vsel %vm2071_vm2, %v532_v27, 0  ;;  %v2523_v36 = vadd.s32 384, %v6256_v22  ;;  %v793_v38 = vadd.s32 536, %v6037_v5 }
 0x143   : > { %4009 = vmatprep.subr.bf16.mxu1 %v4858_v25  ;;  %vm1336_vm5 = vcmp.lt.s32.totalorder %v1080_v31, 2600  ;;  %v6272_v37 = vsel %vm2072_vm4, %v533_v30, 0  ;;  %vm2103_vm6 = vmpackc.low %vm1335_vm3, %vm1335_vm3  ;;  %v1049_v39 = vadd.s32 %v6034_v4, %v792_v32  ;;  %v2522_v42 = vadd.s32 256, %v6256_v22  ;;  %v541_v30 = vld [vmem:[%s6010_s12 + $0x248] sm:$0xff] }
 0x144   : > { %4010 = vmatpush1.bf16.msra.mxu1 %v4857_v26  ;;  %v4860_v40 = vcombine.high %v6268_v34, %v6272_v37  ;;  %vm2104_vm7 = vmpackc.low %vm1336_vm5, %vm1336_vm5  ;;  %v6278_v41 = vsel %vm2103_vm6, %v564_v2, 0  ;;  %v824_v43 = vadd.s32 784, %v6037_v5  ;;  %v2525_v45 = vadd.s32 640, %v6256_v22 }
 0x145   : > { %v6282_v44 = vsel %vm2104_vm7, %v565_v35, 0  ;;  %v1050_v46 = vadd.s32 %v6034_v4, %v793_v38  ;;  %v825_v47 = vadd.s32 792, %v6037_v5  ;;  %vm1305_vm8 = vcmp.lt.s32.totalorder %v1049_v39, 2600 }
 0x146   : > { %4020 = vmatprep.subr.bf16.mxu0 %v4860_v40  ;;  %v4892_v48 = vcombine.high %v6278_v41, %v6282_v44  ;;  %v1081_v49 = vadd.s32 %v6034_v4, %v824_v43  ;;  %v794_v50 = vadd.s32 544, %v6037_v5  ;;  %v2527_v51 = vadd.s32 896, %v6256_v22  ;;  %vm6297_vm11 = vmpackc.low %vm1305_vm8, %vm1305_vm8 }
 0x147   : > { %vm1306_vm9 = vcmp.lt.s32.totalorder %v1050_v46, 2600  ;;  %v1082_v52 = vadd.s32 %v6034_v4, %v825_v47  ;;  %v795_v53 = vadd.s32 552, %v6037_v5  ;;  %v826_v55 = vadd.s32 800, %v6037_v5 }
 0x148   : > { %4061 = vmatprep.subr.bf16.mxu1 %v4892_v48  ;;  %vm1337_vm10 = vcmp.lt.s32.totalorder %v1081_v49, 2600  ;;  %v1051_v54 = vadd.s32 %v6034_v4, %v794_v50  ;;  %v827_v56 = vadd.s32 808, %v6037_v5  ;;  %v796_v59 = vadd.s32 560, %v6037_v5  ;;  %vm6316_vm13 = vmpackc.low %vm1306_vm9, %vm1306_vm9  ;;  %v569_v48 = vld [vmem:[%s6010_s12 + $0x328] sm:$0xff]  ;;  %v538_v49 = vld [vmem:[%s6010_s12 + $0x230] sm:$0xff] }
 0x149   : > { %vm1338_vm12 = vcmp.lt.s32.totalorder %v1082_v52, 2600  ;;  %v1052_v58 = vadd.s32 %v6034_v4, %v795_v53  ;;  %v6304_v60 = vadd.s32 %v2521_v33, %v6034_v4  ;;  %v6307_v61 = vadd.s32 %v2523_v36, %v6034_v4  ;;  %vm6326_vm15 = vmpackc.low %vm1337_vm10, %vm1337_vm10  ;;  %v568_v36 = vld [vmem:[%s6010_s12 + $0x320] sm:$0xff] }
 0x14a   : > { %v6311_v62 = vadd.s32 %v6256_v22, %v6034_v4  ;;  %vm1307_vm14 = vcmp.lt.s32.totalorder %v1051_v54, 2600  ;;  %v6321_v1 = vadd.s32 %v2522_v42, %v6034_v4  ;;  %v1083_v7 = vadd.s32 %v6034_v4, %v826_v55  ;;  %vm6343_vm1 = vmpackc.low %vm1338_vm12, %vm1338_vm12  ;;  %v539_v55 = vld [vmem:[%s6010_s12 + $0x238] sm:$0xff] }
 0x14b   : > { %vm1308_vm0 = vcmp.lt.s32.totalorder %v1052_v58, 2600  ;;  %v1084_v8 = vadd.s32 %v6034_v4, %v827_v56  ;;  %v4859_v9 = vcombine.low %v6268_v34, %v6272_v37  ;;  %v6335_v10 = vadd.s32 %v2525_v45, %v6034_v4  ;;  %vm6357_vm2 = vmpackc.low %vm1307_vm14, %vm1307_vm14  ;;  %v570_v58 = vld [vmem:[%s6010_s12 + $0x330] sm:$0xff] }
 0x14c   : > { %v6338_v11 = vadd.s32 %v2527_v51, %v6034_v4  ;;  %v797_v14 = vadd.s32 568, %v6037_v5  ;;  %v4891_v15 = vcombine.low %v6278_v41, %v6282_v44  ;;  %v6352_v16 = vsel %vm6297_vm11, %v534_v63, 0  ;;  %vm2076_vm4 = vmpackc.low %vm1308_vm0, %vm1308_vm0 }
 0x14d   : > { %vm1339_vm3 = vcmp.lt.s32.totalorder %v1083_v7, 2600  ;;  %v1053_v19 = vadd.s32 %v6034_v4, %v796_v59  ;;  %v6364_v20 = vsel %vm6316_vm13, %v535_v3, 0  ;;  %vm1340_vm5 = vcmp.lt.s32.totalorder %v1084_v8, 2600  ;;  %v571_v59 = vld [vmem:[%s6010_s12 + $0x338] sm:$0xff] }
 0x14e   : > { %v1054_v24 = vadd.s32 %v6034_v4, %v797_v14  ;;  %v828_v25 = vadd.s32 816, %v6037_v5  ;;  %v6374_v26 = vsel %vm6326_vm15, %v566_v12, 0  ;;  %v829_v27 = vadd.s32 824, %v6037_v5  ;;  %vm6382_vm7 = vmpackc.low %vm1339_vm3, %vm1339_vm3 }
 0x14f   : > { %vm1309_vm6 = vcmp.lt.s32.totalorder %v1053_v19, 2600  ;;  %v798_v28 = vadd.s32 576, %v6037_v5  ;;  %v6380_v29 = vsel %vm6343_vm1, %v567_v17, 0  ;;  %v799_v2 = vadd.s32 584, %v6037_v5  ;;  %vm6399_vm9 = vmpackc.low %vm1340_vm5, %vm1340_vm5 }
 0x150   : > { %vm1310_vm8 = vcmp.lt.s32.totalorder %v1054_v24, 2600  ;;  %v1085_v31 = vadd.s32 %v6034_v4, %v828_v25  ;;  %v6392_v33 = vsel %vm6357_vm2, %v536_v21, 0  ;;  %v6394_v35 = vsel %vm2076_vm4, %v537_v23, 0  ;;  %vm6406_vm10 = vmpackc.low %vm1309_vm6, %vm1309_vm6 }
 0x151   : > { %v1086_v39 = vadd.s32 %v6034_v4, %v829_v27  ;;  %v4862_v40 = vcombine.high %v6352_v16, %v6364_v20  ;;  %v1055_v43 = vadd.s32 %v6034_v4, %v798_v28  ;;  %v1056_v45 = vadd.s32 %v6034_v4, %v799_v2  ;;  %vm6420_vm12 = vmpackc.low %vm1310_vm8, %vm1310_vm8  ;;  %v540_v28 = vld [vmem:[%s6010_s12 + $0x240] sm:$0xff] }
 0x152   : > { %vm1341_vm11 = vcmp.lt.s32.totalorder %v1085_v31, 2600  ;;  %v4894_v47 = vcombine.high %v6374_v26, %v6380_v29  ;;  %v830_v51 = vadd.s32 832, %v6037_v5  ;;  %v6431_v54 = vsel %vm6382_vm7, %v568_v36, 0 }
 0x153   : > { %vm1342_vm13 = vcmp.lt.s32.totalorder %v1086_v39, 2600  ;;  %vm6434_vm14 = vmpackc.low %vm1341_vm11, %vm1341_vm11  ;;  %v831_v57 = vadd.s32 840, %v6037_v5  ;;  %vm1311_vm0 = vcmp.lt.s32.totalorder %v1055_v43, 2600  ;;  %v800_v0 = vadd.s32 592, %v6037_v5  ;;  %v546_v43 = vld [vmem:[%s6010_s12 + $0x270] sm:$0xff] }
 0x154   : > { %vm2110_vm15 = vmpackc.low %vm1342_vm13, %vm1342_vm13  ;;  %v1087_v63 = vadd.s32 %v6034_v4, %v830_v51  ;;  %v801_v3 = vadd.s32 600, %v6037_v5  ;;  %v6446_v6 = vsel %vm6399_vm9, %v569_v48, 0  ;;  %v6450_v7 = vsel %vm6406_vm10, %v538_v49, 0  ;;  %v573_v51 = vld [vmem:[%s6010_s12 + $0x348] sm:$0xff]  ;;  %v574_v48 = vld [vmem:[%s6010_s12 + $0x350] sm:$0xff] }
 0x155   : > { %vm1312_vm1 = vcmp.lt.s32.totalorder %v1056_v45, 2600  ;;  %v1088_v8 = vadd.s32 %v6034_v4, %v831_v57  ;;  %v6455_v12 = vsel %vm6420_vm12, %v539_v55, 0  ;;  %v1057_v13 = vadd.s32 %v6034_v4, %v800_v0  ;;  %vm6465_vm3 = vmpackc.low %vm1311_vm0, %vm1311_vm0  ;;  %v572_v45 = vld [vmem:[%s6010_s12 + $0x340] sm:$0xff]  ;;  %v543_v0 = vld [vmem:[%s6010_s12 + $0x258] sm:$0xff] }
 0x156   : > { %vm1343_vm2 = vcmp.lt.s32.totalorder %v1087_v63, 2600  ;;  %v1058_v14 = vadd.s32 %v6034_v4, %v801_v3  ;;  %v6461_v17 = vsel %vm6434_vm14, %v570_v58, 0  ;;  %v6463_v18 = vsel %vm2110_vm15, %v571_v59, 0  ;;  %vm6474_vm5 = vmpackc.low %vm1312_vm1, %vm1312_vm1  ;;  %v542_v63 = vld [vmem:[%s6010_s12 + $0x250] sm:$0xff] }
 0x157   : > { %vm1344_vm4 = vcmp.lt.s32.totalorder %v1088_v8, 2600  ;;  %v832_v21 = vadd.s32 848, %v6037_v5  ;;  %vm1313_vm6 = vcmp.lt.s32.totalorder %v1057_v13, 2600  ;;  %v833_v27 = vadd.s32 856, %v6037_v5  ;;  %vm6481_vm7 = vmpackc.low %vm1343_vm2, %vm1343_vm2 }
 0x158   : > { %vm1314_vm8 = vcmp.lt.s32.totalorder %v1058_v14, 2600  ;;  %v802_v36 = vadd.s32 608, %v6037_v5  ;;  %v803_v38 = vadd.s32 616, %v6037_v5  ;;  %vm6497_vm9 = vmpackc.low %vm1344_vm4, %vm1344_vm4  ;;  %v6515_v58 = vsel %vm6465_vm3, %v540_v28, 0 }
 0x159   : > { %v1089_v2 = vadd.s32 %v6034_v4, %v832_v21  ;;  %v1090_v49 = vadd.s32 %v6034_v4, %v833_v27  ;;  %vm6507_vm10 = vmpackc.low %vm1313_vm6, %vm1313_vm6  ;;  %v6519_v59 = vsel %vm6474_vm5, %v541_v30, 0  ;;  %v834_v3 = vadd.s32 864, %v6037_v5 }
 0x15a   : > { %v1059_v56 = vadd.s32 %v6034_v4, %v802_v36  ;;  %v1060_v57 = vadd.s32 %v6034_v4, %v803_v38  ;;  %vm2082_vm12 = vmpackc.low %vm1314_vm8, %vm1314_vm8  ;;  %v6528_v8 = vsel %vm6481_vm7, %v572_v45, 0  ;;  %v835_v19 = vadd.s32 872, %v6037_v5 }
 0x15b   : > { %vm1345_vm11 = vcmp.lt.s32.totalorder %v1089_v2, 2600  ;;  %vm1346_vm13 = vcmp.lt.s32.totalorder %v1090_v49, 2600  ;;  %v6537_v14 = vsel %vm6497_vm9, %v573_v51, 0  ;;  %v1091_v25 = vadd.s32 %v6034_v4, %v834_v3  ;;  %v575_v49 = vld [vmem:[%s6010_s12 + $0x358] sm:$0xff]  ;;  %v545_v3 = vld [vmem:[%s6010_s12 + $0x268] sm:$0xff] }
 0x15c   : > { %vm6530_vm14 = vmpackc.low %vm1345_vm11, %vm1345_vm11  ;;  %vm1315_vm15 = vcmp.lt.s32.totalorder %v1059_v56, 2600  ;;  %vm1316_vm0 = vcmp.lt.s32.totalorder %v1060_v57, 2600  ;;  %v804_v27 = vadd.s32 624, %v6037_v5  ;;  %v805_v28 = vadd.s32 632, %v6037_v5 }
 0x15d   : > { %vm6539_vm1 = vmpackc.low %vm1346_vm13, %vm1346_vm13  ;;  %v6550_v31 = vsel %vm6507_vm10, %v542_v63, 0  ;;  %v6552_v2 = vsel %vm2082_vm12, %v543_v0, 0  ;;  %v1092_v38 = vadd.s32 %v6034_v4, %v835_v19  ;;  %vm1347_vm4 = vcmp.lt.s32.totalorder %v1091_v25, 2600  ;;  %v544_v0 = vld [vmem:[%s6010_s12 + $0x260] sm:$0xff]  ;;  %v577_v63 = vld [vmem:[%s6010_s12 + $0x368] sm:$0xff] }
 0x15e   : > { %vm6554_vm2 = vmpackc.low %vm1315_vm15, %vm1315_vm15  ;;  %v1061_v55 = vadd.s32 %v6034_v4, %v804_v27  ;;  %v1062_v56 = vadd.s32 %v6034_v4, %v805_v28  ;;  %v836_v25 = vadd.s32 880, %v6037_v5  ;;  %v576_v28 = vld [vmem:[%s6010_s12 + $0x360] sm:$0xff]  ;;  %v837_v57 = vadd.s32 888, %v6037_v5 }
 0x15f   : > { %vm6563_vm3 = vmpackc.low %vm1316_vm0, %vm1316_vm0  ;;  %vm1348_vm5 = vcmp.lt.s32.totalorder %v1092_v38, 2600  ;;  %v6590_v38 = vsel %vm6530_vm14, %v574_v48, 0  ;;  %v806_v45 = vadd.s32 640, %v6037_v5  ;;  %v807_v39 = vadd.s32 648, %v6037_v5 }
 0x160   : > { %vm6575_vm6 = vmpackc.low %vm1347_vm4, %vm1347_vm4  ;;  %vm1317_vm8 = vcmp.lt.s32.totalorder %v1061_v55, 2600  ;;  %vm1318_vm9 = vcmp.lt.s32.totalorder %v1062_v56, 2600  ;;  %v1093_v27 = vadd.s32 %v6034_v4, %v836_v25  ;;  %v6599_v55 = vsel %vm6539_vm1, %v575_v49, 0  ;;  %v547_v56 = vld [vmem:[%s6010_s12 + $0x278] sm:$0xff] }
 0x161   : > { %vm6583_vm7 = vmpackc.low %vm1348_vm5, %vm1348_vm5  ;;  %v6603_v13 = vsel %vm6554_vm2, %v544_v0, 0  ;;  %v6607_v48 = vsel %vm6563_vm3, %v545_v3, 0  ;;  %v1094_v25 = vadd.s32 %v6034_v4, %v837_v57  ;;  %v6613_v50 = vsel %vm6575_vm6, %v576_v28, 0  ;;  %v578_v0 = vld [vmem:[%s6010_s12 + $0x370] sm:$0xff]  ;;  %v579_v3 = vld [vmem:[%s6010_s12 + $0x378] sm:$0xff] }
 0x162   : > { %vm2085_vm10 = vmpackc.low %vm1317_vm8, %vm1317_vm8  ;;  %vm1349_vm12 = vcmp.lt.s32.totalorder %v1093_v27, 2600  ;;  %v1063_v21 = vadd.s32 %v6034_v4, %v806_v45  ;;  %v1064_v49 = vadd.s32 %v6034_v4, %v807_v39  ;;  %v6619_v36 = vsel %vm6583_vm7, %v577_v63, 0 }
 0x163   : > { %vm2086_vm11 = vmpackc.low %vm1318_vm9, %vm1318_vm9  ;;  %v6621_v51 = vsel %vm2085_vm10, %v546_v43, 0  ;;  %vm1350_vm13 = vcmp.lt.s32.totalorder %v1094_v25, 2600  ;;  %v838_v57 = vadd.s32 896, %v6037_v5  ;;  %v839_v39 = vadd.s32 904, %v6037_v5  ;;  %v549_v43 = vld [vmem:[%s6010_s12 + $0x288] sm:$0xff] }
 0x164   : > { %vm2117_vm14 = vmpackc.low %vm1349_vm12, %vm1349_vm12  ;;  %v6626_v19 = vsel %vm2086_vm11, %v547_v56, 0  ;;  %vm1319_vm0 = vcmp.lt.s32.totalorder %v1063_v21, 2600  ;;  %vm1320_vm1 = vcmp.lt.s32.totalorder %v1064_v49, 2600  ;;  %v548_v49 = vld [vmem:[%s6010_s12 + $0x280] sm:$0xff]  ;;  %v808_v56 = vadd.s32 656, %v6037_v5 }
 0x165   : > { %vm2118_vm15 = vmpackc.low %vm1350_vm13, %vm1350_vm13  ;;  %v1095_v27 = vadd.s32 %v6034_v4, %v838_v57  ;;  %v6644_v25 = vsel %vm2117_vm14, %v578_v0, 0  ;;  %v1096_v45 = vadd.s32 %v6034_v4, %v839_v39  ;;  %v809_v39 = vadd.s32 664, %v6037_v5 }
 0x166   : > { %vm6635_vm2 = vmpackc.low %vm1319_vm0, %vm1319_vm0  ;;  %v6646_v21 = vsel %vm2118_vm15, %v579_v3, 0  ;;  %v580_v3 = vld [vmem:[%s6010_s12 + $0x380] sm:$0xff]  ;;  %v6714_v52 = vadd.s32 %v6034_v4, %v808_v56  ;;  %v843_v46 = vadd.s32 936, %v6037_v5 }
 0x167   : > { %vm2088_vm3 = vmpackc.low %vm1320_vm1, %vm1320_vm1  ;;  %vm1351_vm4 = vcmp.lt.s32.totalorder %v1095_v27, 2600  ;;  %v6667_v57 = vsel %vm6635_vm2, %v548_v49, 0  ;;  %vm1352_vm5 = vcmp.lt.s32.totalorder %v1096_v45, 2600  ;;  %v581_v45 = vld [vmem:[%s6010_s12 + $0x388] sm:$0xff]  ;;  %v841_v49 = vadd.s32 920, %v6037_v5 }
 0x168   : > { %v6669_v23 = vsel %vm2088_vm3, %v549_v43, 0  ;;  %vm6680_vm8 = vmpackc.low %vm1351_vm4, %vm1351_vm4  ;;  %v840_v43 = vadd.s32 912, %v6037_v5  ;;  %v6717_v24 = vadd.s32 %v6034_v4, %v809_v39  ;;  %v811_v27 = vadd.s32 680, %v6037_v5 }
 0x169   : > { %vm6692_vm12 = vmpackc.low %vm1352_vm5, %vm1352_vm5  ;;  %v6711_v42 = vsel %vm6680_vm8, %v580_v3, 0  ;;  %v810_v3 = vadd.s32 672, %v6037_v5  ;;  %v6737_v39 = vadd.s32 %v6034_v4, %v841_v49  ;;  %v845_v49 = vadd.s32 952, %v6037_v5 }
 0x16a   : > { %v6730_v30 = vsel %vm6692_vm12, %v581_v45, 0  ;;  %v6733_v56 = vadd.s32 %v6034_v4, %v840_v43  ;;  %v812_v43 = vadd.s32 688, %v6037_v5  ;;  %v813_v45 = vadd.s32 696, %v6037_v5 }
 0x16b   : > { %vm1322_vm12 = vcmp.lt.s32.totalorder %v6717_v24, 2600  ;;  %v6771_v63 = vadd.s32 %v6034_v4, %v810_v3  ;;  %v6779_v53 = vadd.s32 %v6034_v4, %v811_v27  ;;  %v6785_v32 = vadd.s32 %v6034_v4, %v843_v46 }
 0x16c   : > { %v6640_v28 = vpop.permute.xlu0 %2554  ;;  %v6798_v34 = vadd.s32 %v6034_v4, %v812_v43  ;;  %v6801_v37 = vadd.s32 %v6034_v4, %v813_v45  ;;  %v815_v46 = vadd.s32 712, %v6037_v5  ;;  %v847_v27 = vadd.s32 968, %v6037_v5  ;;  %v550_v43 = vld [vmem:[%s6010_s12 + $0x290] sm:$0xff]  ;;  %v551_v45 = vld [vmem:[%s6010_s12 + $0x298] sm:$0xff] }
 0x16d   : > { %vm2557_vm6 = vcmp.ge.s32.totalorder %v6304_v60, %v6640_v28  ;;  %vm2559_vm7 = vcmp.ge.s32.totalorder %v6307_v61, %v6640_v28  ;;  %vm2556_vm11 = vcmp.ge.s32.totalorder %v6311_v62, %v6640_v28  ;;  %vm2558_vm14 = vcmp.ge.s32.totalorder %v6321_v1, %v6640_v28 }
 0x16e   : > { %vm2561_vm15 = vcmp.ge.s32.totalorder %v6335_v10, %v6640_v28  ;;  %vm2563_vm2 = vcmp.ge.s32.totalorder %v6338_v11, %v6640_v28  ;;  %v816_v3 = vadd.s32 720, %v6037_v5  ;;  %v6826_v41 = vadd.s32 %v6034_v4, %v845_v49 }
 0x16f   : > { %v849_v49 = vadd.s32 984, %v6037_v5  ;;  %v818_v24 = vadd.s32 736, %v6037_v5 }
 0x170   : > { %v6671_v0 = vpop.permute.xlu0 %2574 }
 0x171   : > { %vm2577_vm9 = vcmp.lt.s32.totalorder %v6304_v60, %v6671_v0  ;;  %vm2579_vm10 = vcmp.lt.s32.totalorder %v6307_v61, %v6671_v0  ;;  %vm2576_vm1 = vcmp.lt.s32.totalorder %v6311_v62, %v6671_v0  ;;  %v8585_v60 = vmov 1.0|1.0  }
 0x172   : > { %vm2593_vm13 = vmand %vm2557_vm6, %vm2577_vm9  ;;  %vm2578_vm4 = vcmp.lt.s32.totalorder %v6321_v1, %v6671_v0  ;;  %v842_v61 = vadd.s32 928, %v6037_v5  ;;  %vm2583_vm8 = vcmp.lt.s32.totalorder %v6338_v11, %v6671_v0  ;;  %v844_v62 = vadd.s32 944, %v6037_v5 }
 0x173   : > { %vm5051_vm0 = vmpackc.low %vm2593_vm13, %vm2593_vm13  ;;  %vm1353_vm13 = vcmp.lt.s32.totalorder %v6733_v56, 2600  ;;  %v8656_v11 = vcombine.low %v6352_v16, %v6364_v20  ;;  %v6855_v20 = vadd.s32 %v6034_v4, %v815_v46  ;;  %v6871_v46 = vadd.s32 %v6034_v4, %v847_v27  ;;  %v552_v16 = vld [vmem:[%s6010_s12 + $0x2a0] sm:$0xff] }
 0x174   : > { %5052 = vmatprep.mubr.msk.bf16.mxu0 %vm5051_vm0, %v8585_v60  ;;  %vm2595_vm3 = vmand %vm2559_vm7, %vm2579_vm10  ;;  %vm2581_vm7 = vcmp.lt.s32.totalorder %v6335_v10, %v6671_v0  ;;  %vm1321_vm10 = vcmp.lt.s32.totalorder %v6714_v52, 2600  ;;  %v6782_v1 = vadd.s32 %v6034_v4, %v842_v61  ;;  %v6809_v10 = vadd.s32 %v6034_v4, %v844_v62  ;;  %v582_v52 = vld [vmem:[%s6010_s12 + $0x390] sm:$0xff] }
 0x175   : > { %vm5055_vm5 = vmpackc.low %vm2595_vm3, %vm2595_vm3  ;;  %v8657_v61 = vcombine.high %v6392_v33, %v6394_v35  ;;  %v8660_v62 = vcombine.low %v6374_v26, %v6380_v29  ;;  %v8661_v26 = vcombine.high %v6431_v54, %v6446_v6 }
 0x176   : > { %5056 = vmatprep.mubr.msk.bf16.mxu1 %vm5055_vm5, %v8585_v60  ;;  %vm2592_vm6 = vmand %vm2556_vm11, %vm2576_vm1  ;;  %vm1354_vm1 = vcmp.lt.s32.totalorder %v6737_v39, 2600 }
 0x177   : > { %vm5053_vm9 = vmpackc.low %vm2592_vm6, %vm2592_vm6  ;;  %vm1355_vm6 = vcmp.lt.s32.totalorder %v6782_v1, 2600 }
 0x178   : > { %5054 = vmatmul.mubr.msk.bf16.vlgmr.msra.gmra.mrb[0].mxu0 %vm5053_vm9, %v8585_v60  ;;  %vm2594_vm11 = vmand %vm2558_vm14, %vm2578_vm4  ;;  %vm1323_vm4 = vcmp.lt.s32.totalorder %v6771_v63, 2600  ;;  %vm1325_vm9 = vcmp.lt.s32.totalorder %v6798_v34, 2600  ;;  %v584_v63 = vld [vmem:[%s6010_s12 + $0x3a0] sm:$0xff] }
 0x179   : > { %vm5057_vm0 = vmpackc.low %vm2594_vm11, %vm2594_vm11  ;;  %4021 = vmatpush1.bf16.msra.mxu0 %v4859_v9  ;;  %v814_v9 = vadd.s32 704, %v6037_v5  ;;  %vm1326_vm11 = vcmp.lt.s32.totalorder %v6801_v37, 2600 }
 0x17a   : > { %5058 = vmatmul.mubr.msk.bf16.vlgmr.msra.gmra.mrb[0].mxu1 %vm5057_vm0, %v8585_v60  ;;  %vm2597_vm14 = vmand %vm2561_vm15, %vm2581_vm7  ;;  %4022 = vmatprep.subr.bf16.mxu0 %v4862_v40  ;;  %v846_v40 = vadd.s32 960, %v6037_v5  ;;  %vm1356_vm7 = vcmp.lt.s32.totalorder %v6785_v32, 2600  ;;  %vm1357_vm0 = vcmp.lt.s32.totalorder %v6809_v10, 2600  ;;  %v557_v10 = vld [vmem:[%s6010_s12 + $0x2c8] sm:$0xff] }
 0x17b   : > { %4062 = vmatpush1.bf16.msra.mxu1 %v4891_v15  ;;  %vm5059_vm3 = vmpackc.low %vm2597_vm14, %vm2597_vm14  ;;  %v6829_v44 = vadd.s32 %v6034_v4, %v814_v9  ;;  %v817_v15 = vadd.s32 728, %v6037_v5  ;;  %v583_v9 = vld [vmem:[%s6010_s12 + $0x398] sm:$0xff]  ;;  %vm1358_vm14 = vcmp.lt.s32.totalorder %v6826_v41, 2600  ;;  %v852_v41 = vadd.s32 1008, %v6037_v5 }
 0x17c   : > { %5060 = vmatprep.mubr.msk.bf16.mxu0 %vm5059_vm3, %v8585_v60  ;;  %vm2599_vm15 = vmand %vm2563_vm2, %vm2583_vm8  ;;  %4063 = vmatprep.subr.bf16.mxu1 %v4894_v47  ;;  %vm1324_vm2 = vcmp.lt.s32.totalorder %v6779_v53, 2600  ;;  %v848_v47 = vadd.s32 976, %v6037_v5  ;;  %v8669_v53 = vcombine.high %v6461_v17, %v6463_v18 }
 0x17d   : > { %vm5063_vm5 = vmpackc.low %vm2599_vm15, %vm2599_vm15  ;;  %4023 = vmatpush1.bf16.msra.mxu0 %v8656_v11  ;;  %v6868_v11 = vadd.s32 %v6034_v4, %v846_v40  ;;  %vm1327_vm3 = vcmp.lt.s32.totalorder %v6829_v44, 2600  ;;  %v6885_v29 = vadd.s32 %v6034_v4, %v817_v15  ;;  %v8662_v40 = vcombine.low %v6392_v33, %v6394_v35  ;;  %v589_v44 = vld [vmem:[%s6010_s12 + $0x3c8] sm:$0xff] }
 0x17e   : > { %5064 = vmatprep.mubr.msk.bf16.mxu1 %vm5063_vm5, %v8585_v60  ;;  %4024 = vmatprep.subr.bf16.mxu0 %v8657_v61  ;;  %vm6848_vm8 = vmpackc.low %vm1321_vm10, %vm1321_vm10  ;;  %v6874_v61 = vadd.s32 %v6034_v4, %v816_v3  ;;  %v6901_v3 = vadd.s32 %v6034_v4, %v848_v47  ;;  %v819_v15 = vadd.s32 744, %v6037_v5  ;;  %v8663_v33 = vcombine.high %v6450_v7, %v6455_v12 }
 0x17f   : > { %4064 = vmatpush1.bf16.msra.mxu1 %v8660_v62  ;;  %vm2090_vm10 = vmpackc.low %vm1322_vm12, %vm1322_vm12  ;;  %v6893_v56 = vsel %vm6848_vm8, %v550_v43, 0  ;;  %v6922_v47 = vadd.s32 %v6034_v4, %v849_v49  ;;  %v8666_v62 = vcombine.low %v6431_v54, %v6446_v6  ;;  %vm1360_vm8 = vcmp.lt.s32.totalorder %v6871_v46, 2600 }
 0x180   : > { %4065 = vmatprep.subr.bf16.mxu1 %v8661_v26  ;;  %vm2121_vm12 = vmpackc.low %vm1353_vm13, %vm1353_vm13  ;;  %v6895_v27 = vsel %vm2090_vm10, %v551_v45, 0  ;;  %v553_v45 = vld [vmem:[%s6010_s12 + $0x2a8] sm:$0xff]  ;;  %vm1329_vm10 = vcmp.lt.s32.totalorder %v6874_v61, 2600  ;;  %v6940_v54 = vadd.s32 %v6034_v4, %v818_v24  ;;  %v850_v26 = vadd.s32 992, %v6037_v5  ;;  %v591_v61 = vld [vmem:[%s6010_s12 + $0x3d8] sm:$0xff] }
 0x181   : > { %4025 = vmatpush1.bf16.msra.mxu0 %v8662_v40  ;;  %vm2122_vm13 = vmpackc.low %vm1354_vm1, %vm1354_vm1  ;;  %v6907_v35 = vsel %vm2121_vm12, %v582_v52, 0  ;;  %vm1328_vm1 = vcmp.lt.s32.totalorder %v6855_v20, 2600  ;;  %v4877_v6 = vcombine.low %v6893_v56, %v6895_v27  ;;  %v4878_v49 = vcombine.high %v6893_v56, %v6895_v27  ;;  %v628_v56 = vld [vmem:[%s6010_s12 + $0x500] sm:$0xff] }
 0x182   : > { %4026 = vmatprep.subr.bf16.mxu0 %v8663_v33  ;;  %v6909_v43 = vsel %vm2122_vm13, %v583_v9, 0  ;;  %vm6916_vm15 = vmpackc.low %vm1323_vm4, %vm1323_vm4  ;;  %v585_v9 = vld [vmem:[%s6010_s12 + $0x3a8] sm:$0xff]  ;;  %vm1359_vm4 = vcmp.lt.s32.totalorder %v6868_v11, 2600  ;;  %vm1330_vm12 = vcmp.lt.s32.totalorder %v6885_v29, 2600  ;;  %v851_v24 = vadd.s32 1000, %v6037_v5  ;;  %v558_v11 = vld [vmem:[%s6010_s12 + $0x2d0] sm:$0xff] }
 0x183   : > { %4066 = vmatpush1.bf16.msra.mxu1 %v8666_v62  ;;  %vm6930_vm5 = vmpackc.low %vm1324_vm2, %vm1324_vm2  ;;  %v8670_v40 = vcombine.low %v6450_v7, %v6455_v12  ;;  %v4909_v33 = vcombine.low %v6907_v35, %v6909_v43  ;;  %v6962_v62 = vsel %vm6916_vm15, %v552_v16, 0  ;;  %v555_v7 = vld [vmem:[%s6010_s12 + $0x2b8] sm:$0xff]  ;;  %vm1361_vm13 = vcmp.lt.s32.totalorder %v6901_v3, 2600  ;;  %v560_v29 = vld [vmem:[%s6010_s12 + $0x2e0] sm:$0xff] }
 0x184   : > { %4067 = vmatprep.subr.bf16.mxu1 %v8669_v53  ;;  %vm2123_vm2 = vmpackc.low %vm1355_vm6, %vm1355_vm6  ;;  %v6966_v1 = vsel %vm6930_vm5, %v553_v45, 0  ;;  %v554_v53 = vld [vmem:[%s6010_s12 + $0x2b0] sm:$0xff]  ;;  %v6975_v12 = vadd.s32 %v6034_v4, %v819_v15  ;;  %v8671_v16 = vcombine.high %v6515_v58, %v6519_v59  ;;  %v4910_v45 = vcombine.high %v6907_v35, %v6909_v43 }
 0x185   : > { %4027 = vmatpush1.bf16.msra.mxu0 %v8670_v40  ;;  %vm2124_vm6 = vmpackc.low %vm1356_vm7, %vm1356_vm7  ;;  %v6982_v39 = vsel %vm2123_vm2, %v584_v63, 0  ;;  %vm1362_vm15 = vcmp.lt.s32.totalorder %v6922_v47, 2600  ;;  %v820_v15 = vadd.s32 752, %v6037_v5  ;;  %v8672_v52 = vcombine.low %v6461_v17, %v6463_v18  ;;  %v586_v63 = vld [vmem:[%s6010_s12 + $0x3b0] sm:$0xff]  ;;  %v592_v47 = vld [vmem:[%s6010_s12 + $0x3e0] sm:$0xff] }
 0x186   : > { %4028 = vmatprep.subr.bf16.mxu0 %v8671_v16  ;;  %v6984_v32 = vsel %vm2124_vm6, %v585_v9, 0  ;;  %vm2093_vm7 = vmpackc.low %vm1325_vm9, %vm1325_vm9  ;;  %v587_v9 = vld [vmem:[%s6010_s12 + $0x3b8] sm:$0xff]  ;;  %vm1331_vm2 = vcmp.lt.s32.totalorder %v6940_v54, 2600  ;;  %v7001_v34 = vadd.s32 %v6034_v4, %v850_v26  ;;  %v7004_v40 = vadd.s32 %v6034_v4, %v851_v24 }
 0x187   : > { %4068 = vmatpush1.bf16.msra.mxu1 %v8672_v52  ;;  %vm2094_vm5 = vmpackc.low %vm1326_vm11, %vm1326_vm11  ;;  %v821_v16 = vadd.s32 760, %v6037_v5  ;;  %v8673_v17 = vcombine.high %v6528_v8, %v6537_v14  ;;  %v4880_v37 = vcombine.high %v6962_v62, %v6966_v1  ;;  %v7014_v52 = vsel %vm2093_vm7, %v554_v53, 0  ;;  %v556_v53 = vld [vmem:[%s6010_s12 + $0x2c0] sm:$0xff] }
 0x188   : > { %v7016_v60 = vsel %vm2094_vm5, %v555_v7, 0  ;;  %vm2125_vm9 = vmpackc.low %vm1357_vm0, %vm1357_vm0  ;;  %v8674_v26 = vcombine.low %v6515_v58, %v6519_v59  ;;  %vm1332_vm0 = vcmp.lt.s32.totalorder %v6975_v12, 2600  ;;  %v7035_v7 = vadd.s32 %v6034_v4, %v820_v15  ;;  %v562_v12 = vld [vmem:[%s6010_s12 + $0x2f0] sm:$0xff] }
 0x189   : > { %4069 = vmatprep.subr.bf16.mxu1 %v8673_v17  ;;  %v4912_v17 = vcombine.high %v6982_v39, %v6984_v32  ;;  %vm2126_vm11 = vmpackc.low %vm1358_vm14, %vm1358_vm14  ;;  %v8675_v58 = vcombine.high %v6550_v31, %v6552_v2  ;;  %v7040_v59 = vsel %vm2125_vm9, %v586_v63, 0  ;;  %v853_v24 = vadd.s32 1016, %v6037_v5  ;;  %v588_v63 = vld [vmem:[%s6010_s12 + $0x3c0] sm:$0xff] }
 0x18a   : > { %4029 = vmatpush1.bf16.msra.mxu0 %v8674_v26  ;;  %v7042_v26 = vsel %vm2126_vm11, %v587_v9, 0  ;;  %vm2095_vm6 = vmpackc.low %vm1327_vm3, %vm1327_vm3  ;;  %v8676_v15 = vcombine.low %v6528_v8, %v6537_v14  ;;  %vm1363_vm3 = vcmp.lt.s32.totalorder %v7001_v34, 2600  ;;  %vm1364_vm7 = vcmp.lt.s32.totalorder %v7004_v40, 2600  ;;  %v594_v40 = vld [vmem:[%s6010_s12 + $0x3f0] sm:$0xff] }
 0x18b   : > { %4030 = vmatprep.subr.bf16.mxu0 %v8675_v58  ;;  %vm2096_vm14 = vmpackc.low %vm1328_vm1, %vm1328_vm1  ;;  %v7062_v9 = vadd.s32 %v6034_v4, %v821_v16  ;;  %v8677_v8 = vcombine.high %v6590_v38, %v6599_v55  ;;  %v7067_v14 = vsel %vm2095_vm6, %v556_v53, 0  ;;  %v7075_v58 = vadd.s32 %v6034_v4, %v852_v41  ;;  %v559_v41 = vld [vmem:[%s6010_s12 + $0x2d8] sm:$0xff] }
 0x18c   : > { %4070 = vmatpush1.bf16.msra.mxu1 %v8676_v15  ;;  %v7069_v20 = vsel %vm2096_vm14, %v557_v10, 0  ;;  %vm2127_vm1 = vmpackc.low %vm1359_vm4, %vm1359_vm4  ;;  %v7078_v15 = vadd.s32 %v6034_v4, %v853_v24  ;;  %v8678_v16 = vcombine.low %v6550_v31, %v6552_v2  ;;  %v4882_v53 = vcombine.high %v7014_v52, %v7016_v60 }
 0x18d   : > { %4071 = vmatprep.subr.bf16.mxu1 %v8677_v8  ;;  %vm2128_vm4 = vmpackc.low %vm1360_vm8, %vm1360_vm8  ;;  %vm1333_vm5 = vcmp.lt.s32.totalorder %v7035_v7, 2600  ;;  %v2524_v24 = vadd.s32 512, %v6256_v22  ;;  %v8679_v31 = vcombine.high %v6603_v13, %v6607_v48  ;;  %v4914_v2 = vcombine.high %v7040_v59, %v7042_v26 }
 0x18e   : > { %4031 = vmatpush1.bf16.msra.mxu0 %v8678_v16  ;;  %v7099_v8 = vsel %vm2127_vm1, %v588_v63, 0  ;;  %v7101_v46 = vsel %vm2128_vm4, %v589_v44, 0  ;;  %vm2097_vm8 = vmpackc.low %vm1329_vm10, %vm1329_vm10  ;;  %v590_v16 = vld [vmem:[%s6010_s12 + $0x3d0] sm:$0xff]  ;;  %v2526_v10 = vadd.s32 768, %v6256_v22  ;;  %v8680_v18 = vcombine.low %v6590_v38, %v6599_v55 }
 0x18f   : > { %4032 = vmatprep.subr.bf16.mxu0 %v8679_v31  ;;  %vm2098_vm9 = vmpackc.low %vm1330_vm12, %vm1330_vm12  ;;  %vm1334_vm10 = vcmp.lt.s32.totalorder %v7062_v9, 2600  ;;  %vm1365_vm11 = vcmp.lt.s32.totalorder %v7075_v58, 2600  ;;  %v8681_v38 = vcombine.high %v6613_v50, %v6619_v36  ;;  %v7124_v55 = vsel %vm2097_vm8, %v558_v11, 0 }
 0x190   : > { %4072 = vmatpush1.bf16.msra.mxu1 %v8680_v18  ;;  %v7126_v18 = vsel %vm2098_vm9, %v559_v41, 0  ;;  %vm2129_vm6 = vmpackc.low %vm1361_vm13, %vm1361_vm13  ;;  %vm1366_vm12 = vcmp.lt.s32.totalorder %v7078_v15, 2600  ;;  %v854_v44 = vadd.s32 1024, %v6037_v5  ;;  %v8682_v31 = vcombine.low %v6603_v13, %v6607_v48 }
 0x191   : > { %4073 = vmatprep.subr.bf16.mxu1 %v8681_v38  ;;  %v4916_v41 = vcombine.high %v7099_v8, %v7101_v46  ;;  %vm2130_vm14 = vmpackc.low %vm1362_vm15, %vm1362_vm15  ;;  %v7144_v3 = vsel %vm2129_vm6, %v590_v16, 0  ;;  %v561_v38 = vld [vmem:[%s6010_s12 + $0x2e8] sm:$0xff]  ;;  %v7148_v63 = vadd.s32 %v2524_v24, %v6034_v4  ;;  %v8683_v13 = vcombine.high %v6621_v51, %v6626_v19 }
 0x192   : > { %4033 = vmatpush1.bf16.msra.mxu0 %v8682_v31  ;;  %v7153_v48 = vsel %vm2130_vm14, %v591_v61, 0  ;;  %vm2099_vm13 = vmpackc.low %vm1331_vm2, %vm1331_vm2  ;;  %v7160_v31 = vadd.s32 %v2526_v10, %v6034_v4  ;;  %v855_v16 = vadd.s32 1032, %v6037_v5  ;;  %v7164_v24 = vadd.s32 %v6034_v4, %v854_v44 }
 0x193   : > { %4034 = vmatprep.subr.bf16.mxu0 %v8683_v13  ;;  %v8684_v11 = vcombine.low %v6613_v50, %v6619_v36  ;;  %vm2100_vm15 = vmpackc.low %vm1332_vm0, %vm1332_vm0  ;;  %v7176_v10 = vsel %vm2099_vm13, %v560_v29, 0  ;;  %v593_v13 = vld [vmem:[%s6010_s12 + $0x3e8] sm:$0xff]  ;;  %v886_v44 = vadd.s32 1280, %v6037_v5  ;;  %v8685_v50 = vcombine.high %v6644_v25, %v6646_v21 }
 0x194   : > { %vm2131_vm2 = vmpackc.low %vm1363_vm3, %vm1363_vm3  ;;  %v7192_v29 = vadd.s32 %v6034_v4, %v855_v16  ;;  %v887_v61 = vadd.s32 1288, %v6037_v5  ;;  %v8686_v54 = vcombine.low %v6621_v51, %v6626_v19  ;;  %vm1367_vm3 = vcmp.lt.s32.totalorder %v7164_v24, 2600  ;;  %v629_v24 = vld [vmem:[%s6010_s12 + $0x508] sm:$0xff] }
 0x195   : > { %4074 = vmatpush1.bf16.msra.mxu1 %v8684_v11  ;;  %v7185_v11 = vsel %vm2100_vm15, %v561_v38, 0  ;;  %vm2132_vm0 = vmpackc.low %vm1364_vm7, %vm1364_vm7  ;;  %v7203_v34 = vsel %vm2131_vm2, %v592_v47, 0  ;;  %v563_v38 = vld [vmem:[%s6010_s12 + $0x2f8] sm:$0xff]  ;;  %v7208_v16 = vadd.s32 %v6034_v4, %v886_v44  ;;  %v8687_v51 = vcombine.high %v6667_v57, %v6669_v23 }
 0x196   : > { %4075 = vmatprep.subr.bf16.mxu1 %v8685_v50  ;;  %4035 = vmatpush1.bf16.msra.mxu0 %v8686_v54  ;;  %v4918_v50 = vcombine.high %v7144_v3, %v7153_v48  ;;  %v7215_v54 = vsel %vm2132_vm0, %v593_v13, 0  ;;  %vm2101_vm7 = vmpackc.low %vm1333_vm5, %vm1333_vm5  ;;  %v7222_v47 = vadd.s32 %v6034_v4, %v887_v61  ;;  %v2529_v44 = vadd.s32 1152, %v6256_v22  ;;  %v595_v61 = vld [vmem:[%s6010_s12 + $0x3f8] sm:$0xff] }
 0x197   : > { %4036 = vmatprep.subr.bf16.mxu0 %v8687_v51  ;;  %v8688_v36 = vcombine.low %v6644_v25, %v6646_v21  ;;  %v4888_v51 = vcombine.high %v7176_v10, %v7185_v11  ;;  %v4919_v13 = vcombine.low %v7203_v34, %v7215_v54  ;;  %vm2102_vm1 = vmpackc.low %vm1334_vm10, %vm1334_vm10  ;;  %v7235_v7 = vsel %vm2101_vm7, %v562_v12, 0 }
 0x198   : > { %vm1368_vm4 = vcmp.lt.s32.totalorder %v7192_v29, 2600  ;;  %v8689_v19 = vcombine.high %v6711_v42, %v6730_v30  ;;  %v4920_v25 = vcombine.high %v7203_v34, %v7215_v54  ;;  %v7244_v21 = vsel %vm2102_vm1, %v563_v38, 0  ;;  %vm2133_vm5 = vmpackc.low %vm1365_vm11, %vm1365_vm11  ;;  %v606_v54 = vld [vmem:[%s6010_s12 + $0x450] sm:$0xff] }
 0x199   : > { %4076 = vmatpush1.bf16.msra.mxu1 %v8688_v36  ;;  %v7250_v9 = vadd.s32 %v2529_v44, %v6034_v4  ;;  %v2531_v36 = vadd.s32 1408, %v6256_v22  ;;  %v8690_v12 = vcombine.low %v6667_v57, %v6669_v23  ;;  %vm2134_vm8 = vmpackc.low %vm1366_vm12, %vm1366_vm12  ;;  %vm2580_vm9 = vcmp.lt.s32.totalorder %v7148_v63, %v6671_v0 }
 0x19a   : > { %4077 = vmatprep.subr.bf16.mxu1 %v8689_v19  ;;  %v7259_v19 = vsel %vm2133_vm5, %v594_v40, 0  ;;  %vm1399_vm10 = vcmp.lt.s32.totalorder %v7208_v16, 2600  ;;  %vm1400_vm11 = vcmp.lt.s32.totalorder %v7222_v47, 2600  ;;  %v856_v58 = vadd.s32 1040, %v6037_v5  ;;  %vm2135_vm7 = vmpackc.low %vm1367_vm3, %vm1367_vm3 }
 0x19b   : > { %4037 = vmatpush1.bf16.msra.mxu0 %v8690_v12  ;;  %v4890_v57 = vcombine.high %v7235_v7, %v7244_v21  ;;  %v7273_v15 = vsel %vm2134_vm8, %v595_v61, 0  ;;  %v7276_v38 = vadd.s32 %v2531_v36, %v6034_v4  ;;  %v8691_v40 = vcombine.low %v6711_v42, %v6730_v30  ;;  %v596_v30 = vld [vmem:[%s6010_s12 + $0x400] sm:$0xff]  ;;  %vm2136_vm3 = vmpackc.low %vm1368_vm4, %vm1368_vm4 }
 0x19c   : > { %4038 = vmatprep.subr.bf16.mxu0 %v4878_v49  ;;  %vm2560_vm6 = vcmp.ge.s32.totalorder %v7148_v63, %v6640_v28  ;;  %vm2582_vm12 = vcmp.lt.s32.totalorder %v7160_v31, %v6671_v0  ;;  %vm2585_vm14 = vcmp.lt.s32.totalorder %v7250_v9, %v6671_v0  ;;  %v857_v49 = vadd.s32 1048, %v6037_v5  ;;  %vm2167_vm4 = vmpackc.low %vm1399_vm10, %vm1399_vm10  ;;  %v640_v63 = vld [vmem:[%s6010_s12 + $0x560] sm:$0xff] }
 0x19d   : > { %4078 = vmatpush1.bf16.msra.mxu1 %v8691_v40  ;;  %v7291_v61 = vadd.s32 %v6034_v4, %v856_v58  ;;  %v4922_v42 = vcombine.high %v7259_v19, %v7273_v15  ;;  %vm2565_vm13 = vcmp.ge.s32.totalorder %v7250_v9, %v6640_v28  ;;  %vm2587_vm15 = vcmp.lt.s32.totalorder %v7276_v38, %v6671_v0  ;;  %vm2168_vm10 = vmpackc.low %vm1400_vm11, %vm1400_vm11 }
 0x19e   : > { %4079 = vmatprep.subr.bf16.mxu1 %v4910_v45  ;;  %v888_v36 = vadd.s32 1296, %v6037_v5  ;;  %v889_v12 = vadd.s32 1304, %v6037_v5  ;;  %vm2562_vm2 = vcmp.ge.s32.totalorder %v7160_v31, %v6640_v28  ;;  %v597_v45 = vld [vmem:[%s6010_s12 + $0x408] sm:$0xff]  ;;  %v7312_v58 = vadd.s32 %v6034_v4, %v857_v49  ;;  %vm7404_vm11 = vmand %vm2560_vm6, %vm2580_vm9 }
 0x19f   : > { %4039 = vmatpush1.bf16.msra.mxu0 %v4877_v6  ;;  %vm1369_vm0 = vcmp.lt.s32.totalorder %v7291_v61, 2600  ;;  %v858_v40 = vadd.s32 1056, %v6037_v5  ;;  %v859_v44 = vadd.s32 1064, %v6037_v5  ;;  %vm2567_vm1 = vcmp.ge.s32.totalorder %v7276_v38, %v6640_v28  ;;  %vm7422_vm9 = vmand %vm2565_vm13, %vm2585_vm14  ;;  %v600_v38 = vld [vmem:[%s6010_s12 + $0x420] sm:$0xff]  ;;  %v610_v61 = vld [vmem:[%s6010_s12 + $0x470] sm:$0xff] }
 0x1a0   : > { %4040 = vmatprep.subr.bf16.mxu0 %v4880_v37  ;;  %v7327_v27 = vadd.s32 %v6034_v4, %v888_v36  ;;  %v7330_v6 = vadd.s32 %v6034_v4, %v889_v12  ;;  %v890_v49 = vadd.s32 1312, %v6037_v5  ;;  %v891_v23 = vadd.s32 1320, %v6037_v5  ;;  %vm7444_vm6 = vmand %vm2562_vm2, %vm2582_vm12 }
 0x1a1   : > { %4080 = vmatpush1.bf16.msra.mxu1 %v4909_v33  ;;  %v7340_v37 = vsel %vm2135_vm7, %v596_v30, 0  ;;  %vm1370_vm5 = vcmp.lt.s32.totalorder %v7312_v58, 2600  ;;  %v7345_v36 = vadd.s32 %v6034_v4, %v858_v40  ;;  %v7348_v12 = vadd.s32 %v6034_v4, %v859_v44  ;;  %vm2137_vm14 = vmpackc.low %vm1369_vm0, %vm1369_vm0 }
 0x1a2   : > { %4081 = vmatprep.subr.bf16.mxu1 %v4912_v17  ;;  %v7353_v35 = vsel %vm2136_vm3, %v597_v45, 0  ;;  %v7361_v43 = vadd.s32 %v6034_v4, %v890_v49  ;;  %v8692_v33 = vcombine.low %v6962_v62, %v6966_v1  ;;  %v7373_v16 = vsel %vm2167_vm4, %v628_v56, 0  ;;  %v599_v49 = vld [vmem:[%s6010_s12 + $0x418] sm:$0xff]  ;;  %vm7471_vm12 = vmand %vm2567_vm1, %vm2587_vm15 }
 0x1a3   : > { %v4923_v17 = vcombine.low %v7340_v37, %v7353_v35  ;;  %v4924_v29 = vcombine.high %v7340_v37, %v7353_v35  ;;  %vm1371_vm3 = vcmp.lt.s32.totalorder %v7345_v36, 2600  ;;  %v7379_v62 = vsel %vm2168_vm10, %v629_v24, 0  ;;  %vm2138_vm13 = vmpackc.low %vm1370_vm5, %vm1370_vm5  ;;  %v609_v37 = vld [vmem:[%s6010_s12 + $0x468] sm:$0xff] }
 0x1a4   : > { %4041 = vmatpush1.bf16.msra.mxu0 %v8692_v33  ;;  %vm1372_vm7 = vcmp.lt.s32.totalorder %v7348_v12, 2600  ;;  %v7383_v1 = vadd.s32 %v6034_v4, %v891_v23  ;;  %vm1403_vm8 = vcmp.lt.s32.totalorder %v7361_v43, 2600  ;;  %v8693_v47 = vcombine.low %v6982_v39, %v6984_v32  ;;  %v598_v32 = vld [vmem:[%s6010_s12 + $0x410] sm:$0xff]  ;;  %vm2139_vm10 = vmpackc.low %vm1371_vm3, %vm1371_vm3 }
 0x1a5   : > { %4042 = vmatprep.subr.bf16.mxu0 %v4882_v53  ;;  %v4956_v53 = vcombine.high %v7373_v16, %v7379_v62  ;;  %v860_v30 = vadd.s32 1072, %v6037_v5  ;;  %v861_v45 = vadd.s32 1080, %v6037_v5  ;;  %v892_v23 = vadd.s32 1328, %v6037_v5  ;;  %vm2140_vm3 = vmpackc.low %vm1372_vm7, %vm1372_vm7 }
 0x1a6   : > { %4082 = vmatpush1.bf16.msra.mxu1 %v8693_v47  ;;  %vm1404_vm4 = vcmp.lt.s32.totalorder %v7383_v1, 2600  ;;  %v893_v40 = vadd.s32 1336, %v6037_v5  ;;  %v8696_v56 = vcombine.low %v7014_v52, %v7016_v60  ;;  %v863_v60 = vadd.s32 1096, %v6037_v5 }
 0x1a7   : > { %4083 = vmatprep.subr.bf16.mxu1 %v4914_v2  ;;  %v862_v2 = vadd.s32 1088, %v6037_v5  ;;  %v7428_v24 = vadd.s32 %v6034_v4, %v860_v30  ;;  %v7431_v33 = vadd.s32 %v6034_v4, %v861_v45  ;;  %v894_v52 = vadd.s32 1344, %v6037_v5  ;;  %v630_v30 = vld [vmem:[%s6010_s12 + $0x510] sm:$0xff] }
 0x1a8   : > { %4043 = vmatpush1.bf16.msra.mxu0 %v8696_v56  ;;  %v8699_v47 = vcombine.high %v7067_v14, %v7069_v20  ;;  %v7453_v45 = vadd.s32 %v6034_v4, %v892_v23  ;;  %v7456_v56 = vadd.s32 %v6034_v4, %v893_v40  ;;  %v895_v31 = vadd.s32 1352, %v6037_v5  ;;  %v631_v40 = vld [vmem:[%s6010_s12 + $0x518] sm:$0xff] }
 0x1a9   : > { %v8702_v44 = vcombine.low %v7040_v59, %v7042_v26  ;;  %v7478_v23 = vsel %vm2137_vm14, %v598_v32, 0  ;;  %vm1373_vm2 = vcmp.lt.s32.totalorder %v7428_v24, 2600  ;;  %vm1374_vm0 = vcmp.lt.s32.totalorder %v7431_v33, 2600  ;;  %v601_v32 = vld [vmem:[%s6010_s12 + $0x428] sm:$0xff] }
 0x1aa   : > { %4044 = vmatprep.subr.bf16.mxu0 %v8699_v47  ;;  %v7459_v47 = vadd.s32 %v6034_v4, %v862_v2  ;;  %v7484_v59 = vadd.s32 %v6034_v4, %v863_v60  ;;  %v7489_v26 = vsel %vm2138_vm13, %v599_v49, 0  ;;  %vm8705_vm15 = vcmp.lt.s32.totalorder %v7327_v27, 2600 }
 0x1ab   : > { %4084 = vmatpush1.bf16.msra.mxu1 %v8702_v44  ;;  %vm2169_vm1 = vmpackc.low %vm8705_vm15, %vm8705_vm15  ;;  %vm1405_vm5 = vcmp.lt.s32.totalorder %v7453_v45, 2600  ;;  %v8706_v58 = vcombine.low %v7067_v14, %v7069_v20  ;;  %v4926_v27 = vcombine.high %v7478_v23, %v7489_v26  ;;  %vm8707_vm13 = vcmp.lt.s32.totalorder %v7330_v6, 2600  ;;  %v632_v6 = vld [vmem:[%s6010_s12 + $0x520] sm:$0xff] }
 0x1ac   : > { %4085 = vmatprep.subr.bf16.mxu1 %v4916_v41  ;;  %v4925_v41 = vcombine.low %v7478_v23, %v7489_v26  ;;  %vm2170_vm15 = vmpackc.low %vm8707_vm13, %vm8707_vm13  ;;  %v7508_v44 = vsel %vm2169_vm1, %v630_v30, 0  ;;  %vm1376_vm14 = vcmp.lt.s32.totalorder %v7484_v59, 2600  ;;  %v8708_v14 = vcombine.high %v7124_v55, %v7126_v18  ;;  %v642_v26 = vld [vmem:[%s6010_s12 + $0x570] sm:$0xff] }
 0x1ad   : > { %4045 = vmatpush1.bf16.msra.mxu0 %v8706_v58  ;;  %v7515_v20 = vsel %vm2170_vm15, %v631_v40, 0  ;;  %v7522_v2 = vadd.s32 %v6034_v4, %v894_v52  ;;  %v7525_v49 = vadd.s32 %v6034_v4, %v895_v31  ;;  %v864_v60 = vadd.s32 1104, %v6037_v5  ;;  %v633_v31 = vld [vmem:[%s6010_s12 + $0x528] sm:$0xff]  ;;  %vm2171_vm1 = vmpackc.low %vm1403_vm8, %vm1403_vm8 }
 0x1ae   : > { %4046 = vmatprep.subr.bf16.mxu0 %v8708_v14  ;;  %v8709_v30 = vcombine.low %v7099_v8, %v7101_v46  ;;  %v4957_v40 = vcombine.low %v7508_v44, %v7515_v20  ;;  %v4958_v36 = vcombine.high %v7508_v44, %v7515_v20  ;;  %v7538_v52 = vsel %vm2139_vm10, %v600_v38, 0  ;;  %v602_v46 = vld [vmem:[%s6010_s12 + $0x430] sm:$0xff]  ;;  %vm2172_vm8 = vmpackc.low %vm1404_vm4, %vm1404_vm4  ;;  %v603_v14 = vld [vmem:[%s6010_s12 + $0x438] sm:$0xff] }
 0x1af   : > { %v865_v58 = vadd.s32 1112, %v6037_v5  ;;  %v7545_v8 = vsel %vm2140_vm3, %v601_v32, 0  ;;  %vm1407_vm7 = vcmp.lt.s32.totalorder %v7522_v2, 2600  ;;  %vm1408_vm10 = vcmp.lt.s32.totalorder %v7525_v49, 2600  ;;  %vm2141_vm13 = vmpackc.low %vm1373_vm2, %vm1373_vm2  ;;  %v612_v20 = vld [vmem:[%s6010_s12 + $0x480] sm:$0xff] }
 0x1b0   : > { %4086 = vmatpush1.bf16.msra.mxu1 %v8709_v30  ;;  %v7554_v12 = vadd.s32 %v6034_v4, %v864_v60  ;;  %v8710_v38 = vcombine.low %v7124_v55, %v7126_v18  ;;  %v4928_v43 = vcombine.high %v7538_v52, %v7545_v8  ;;  %v7566_v32 = vsel %vm2171_vm1, %v632_v6, 0  ;;  %v634_v18 = vld [vmem:[%s6010_s12 + $0x530] sm:$0xff]  ;;  %vm5061_vm15 = vmpackc.low %vm7404_vm11, %vm7404_vm11 }
 0x1b1   : > { %4087 = vmatprep.subr.bf16.mxu1 %v4918_v50  ;;  %v4927_v50 = vcombine.low %v7538_v52, %v7545_v8  ;;  %v7570_v60 = vadd.s32 %v6034_v4, %v865_v58  ;;  %v7575_v55 = vsel %vm2172_vm8, %v633_v31, 0  ;;  %v896_v1 = vadd.s32 1360, %v6037_v5  ;;  %vm2142_vm2 = vmpackc.low %vm1374_vm0, %vm1374_vm0  ;;  %v635_v58 = vld [vmem:[%s6010_s12 + $0x538] sm:$0xff] }
 0x1b2   : > { %4047 = vmatpush1.bf16.msra.mxu0 %v8710_v38  ;;  %vm1377_vm4 = vcmp.lt.s32.totalorder %v7554_v12, 2600  ;;  %v897_v6 = vadd.s32 1368, %v6037_v5  ;;  %v8711_v30 = vcombine.low %v7144_v3, %v7153_v48  ;;  %v4960_v24 = vcombine.high %v7566_v32, %v7575_v55  ;;  %vm2173_vm0 = vmpackc.low %vm1405_vm5, %vm1405_vm5  ;;  %v604_v48 = vld [vmem:[%s6010_s12 + $0x440] sm:$0xff] }
 0x1b3   : > { %4048 = vmatprep.subr.bf16.mxu0 %v4888_v51  ;;  %v4959_v51 = vcombine.low %v7566_v32, %v7575_v55  ;;  %v7597_v31 = vsel %vm2141_vm13, %v602_v46, 0  ;;  %vm1378_vm3 = vcmp.lt.s32.totalorder %v7570_v60, 2600  ;;  %v7607_v3 = vsel %vm2142_vm2, %v603_v14, 0  ;;  %vm8718_vm11 = vmpackc.low %vm7422_vm9, %vm7422_vm9  ;;  %v645_v55 = vld [vmem:[%s6010_s12 + $0x588] sm:$0xff] }
 0x1b4   : > { %4088 = vmatpush1.bf16.msra.mxu1 %v8711_v30  ;;  %v1153_v33 = vadd.s32 %v6034_v4, %v896_v1  ;;  %v7615_v46 = vadd.s32 %v6034_v4, %v897_v6  ;;  %v866_v38 = vadd.s32 1120, %v6037_v5  ;;  %v4929_v45 = vcombine.low %v7597_v31, %v7607_v3  ;;  %v605_v6 = vld [vmem:[%s6010_s12 + $0x448] sm:$0xff]  ;;  %vm8719_vm9 = vmpackc.low %vm7444_vm6, %vm7444_vm6 }
 0x1b5   : > { %4089 = vmatprep.subr.bf16.mxu1 %v4920_v25  ;;  %v8712_v25 = vcombine.low %v7176_v10, %v7185_v11  ;;  %v4930_v14 = vcombine.high %v7597_v31, %v7607_v3  ;;  %vm8713_vm5 = vcmp.lt.s32.totalorder %v7456_v56, 2600  ;;  %v7631_v1 = vsel %vm2173_vm0, %v634_v18, 0  ;;  %v636_v56 = vld [vmem:[%s6010_s12 + $0x540] sm:$0xff]  ;;  %vm8721_vm6 = vmpackc.low %vm7471_vm12, %vm7471_vm12  ;;  %v615_v31 = vld [vmem:[%s6010_s12 + $0x498] sm:$0xff] }
 0x1b6   : > { %vm2174_vm13 = vmpackc.low %vm8713_vm5, %vm8713_vm5  ;;  %v867_v10 = vadd.s32 1128, %v6037_v5  ;;  %vm8714_vm8 = vcmp.lt.s32.totalorder %v7459_v47, 2600  ;;  %vm1409_vm5 = vcmp.lt.s32.totalorder %v1153_v33, 2600  ;;  %vm1410_vm1 = vcmp.lt.s32.totalorder %v7615_v46, 2600 }
 0x1b7   : > { %4049 = vmatpush1.bf16.msra.mxu0 %v8712_v25  ;;  %v7641_v11 = vsel %vm2174_vm13, %v635_v58, 0  ;;  %vm2143_vm0 = vmpackc.low %vm8714_vm8, %vm8714_vm8  ;;  %v1123_v18 = vadd.s32 %v6034_v4, %v866_v38  ;;  %v637_v58 = vld [vmem:[%s6010_s12 + $0x548] sm:$0xff]  ;;  %v899_v59 = vadd.s32 1384, %v6037_v5  ;;  %v900_v46 = vadd.s32 1392, %v6037_v5 }
 0x1b8   : > { %4050 = vmatprep.subr.bf16.mxu0 %v4890_v57  ;;  %4090 = vmatpush1.bf16.msra.mxu1 %v4919_v13  ;;  %v4961_v57 = vcombine.low %v7631_v1, %v7641_v11  ;;  %v4962_v30 = vcombine.high %v7631_v1, %v7641_v11  ;;  %vm2144_vm8 = vmpackc.low %vm1376_vm14, %vm1376_vm14  ;;  %v7659_v47 = vsel %vm2143_vm0, %v604_v48, 0  ;;  %v1124_v38 = vadd.s32 %v6034_v4, %v867_v10 }
 0x1b9   : > { %4091 = vmatprep.subr.bf16.mxu1 %v4922_v42  ;;  %v7666_v34 = vsel %vm2144_vm8, %v605_v6, 0  ;;  %vm2175_vm13 = vmpackc.low %vm1407_vm7, %vm1407_vm7  ;;  %vm1379_vm2 = vcmp.lt.s32.totalorder %v1123_v18, 2600  ;;  %v898_v13 = vadd.s32 1376, %v6037_v5  ;;  %v8715_v48 = vcombine.low %v7235_v7, %v7244_v21  ;;  %v607_v6 = vld [vmem:[%s6010_s12 + $0x458] sm:$0xff]  ;;  %v638_v21 = vld [vmem:[%s6010_s12 + $0x550] sm:$0xff] }
 0x1ba   : > { %v4932_v25 = vcombine.high %v7659_v47, %v7666_v34  ;;  %vm2176_vm14 = vmpackc.low %vm1408_vm10, %vm1408_vm10  ;;  %v7684_v2 = vsel %vm2175_vm13, %v636_v56, 0  ;;  %vm1380_vm7 = vcmp.lt.s32.totalorder %v1124_v38, 2600  ;;  %v1156_v10 = vadd.s32 %v6034_v4, %v899_v59 }
 0x1bb   : > { %4051 = vmatpush1.bf16.msra.mxu0 %v8715_v48  ;;  %v7690_v7 = vsel %vm2176_vm14, %v637_v58, 0  ;;  %vm2145_vm0 = vmpackc.low %vm1377_vm4, %vm1377_vm4  ;;  %v1155_v49 = vadd.s32 %v6034_v4, %v898_v13  ;;  %v868_v56 = vadd.s32 1136, %v6037_v5  ;;  %v8716_v48 = vcombine.low %v7259_v19, %v7273_v15  ;;  %v639_v13 = vld [vmem:[%s6010_s12 + $0x558] sm:$0xff]  ;;  %v608_v15 = vld [vmem:[%s6010_s12 + $0x460] sm:$0xff] }
 0x1bc   : > { %4102 = vmatprep.subr.bf16.mxu0 %v4924_v29  ;;  %v4963_v29 = vcombine.low %v7684_v2, %v7690_v7  ;;  %v4964_v12 = vcombine.high %v7684_v2, %v7690_v7  ;;  %vm2146_vm10 = vmpackc.low %vm1378_vm3, %vm1378_vm3  ;;  %v7709_v58 = vsel %vm2145_vm0, %v606_v54, 0  ;;  %v869_v59 = vadd.s32 1144, %v6037_v5 }
 0x1bd   : > { %4092 = vmatpush1.bf16.msra.mxu1 %v8716_v48  ;;  %v8717_v42 = vmov 1.0|1.0   ;;  %v7722_v19 = vsel %vm2146_vm10, %v607_v6, 0  ;;  %vm2177_vm4 = vmpackc.low %vm1409_vm5, %vm1409_vm5  ;;  %vm1411_vm3 = vcmp.lt.s32.totalorder %v1155_v49, 2600  ;;  %vm1412_vm8 = vcmp.lt.s32.totalorder %v1156_v10, 2600 }
 0x1be   : > { %5062 = vmatmul.mubr.msk.bf16.vlgmr.msra.gmra.mrb[4].mxu0 %vm5061_vm15, %v8717_v42  ;;  %4143 = vmatprep.subr.bf16.mxu1 %v4956_v53  ;;  %v1125_v60 = vadd.s32 %v6034_v4, %v868_v56  ;;  %v4933_v53 = vcombine.low %v7709_v58, %v7722_v19  ;;  %v4934_v39 = vcombine.high %v7709_v58, %v7722_v19  ;;  %vm2178_vm15 = vmpackc.low %vm1410_vm1, %vm1410_vm1  ;;  %v7744_v33 = vsel %vm2177_vm4, %v638_v21, 0  ;;  %v649_v19 = vld [vmem:[%s6010_s12 + $0x5a8] sm:$0xff] }
 0x1bf   : > { %4103 = vmatpush1.bf16.msra.mxu0 %v4923_v17  ;;  %5068 = vmatprep.mubr.msk.bf16.mxu0 %vm8718_vm11, %v8717_v42  ;;  %v1126_v35 = vadd.s32 %v6034_v4, %v869_v59  ;;  %v7757_v17 = vsel %vm2178_vm15, %v639_v13, 0  ;;  %vm2147_vm1 = vmpackc.low %vm1379_vm2, %vm1379_vm2  ;;  %v901_v54 = vadd.s32 1400, %v6037_v5  ;;  %v8720_v9 = vcombine.low %v7373_v16, %v7379_v62  ;;  %v641_v16 = vld [vmem:[%s6010_s12 + $0x568] sm:$0xff]  ;;  %v611_v13 = vld [vmem:[%s6010_s12 + $0x478] sm:$0xff] }
 0x1c0   : > { %5066 = vmatmul.mubr.msk.bf16.vlgmr.msra.gmra.mrb[4].mxu1 %vm8719_vm9, %v8717_v42  ;;  %4104 = vmatprep.subr.bf16.mxu0 %v4926_v27  ;;  %vm1381_vm5 = vcmp.lt.s32.totalorder %v1125_v60, 2600  ;;  %v4965_v27 = vcombine.low %v7744_v33, %v7757_v17  ;;  %v4966_v18 = vcombine.high %v7744_v33, %v7757_v17  ;;  %vm2148_vm2 = vmpackc.low %vm1380_vm7, %vm1380_vm7  ;;  %v7779_v6 = vsel %vm2147_vm1, %v608_v15, 0  ;;  %v643_v60 = vld [vmem:[%s6010_s12 + $0x578] sm:$0xff] }
 0x1c1   : > { %4144 = vmatpush1.bf16.msra.mxu1 %v8720_v9  ;;  %5072 = vmatprep.mubr.msk.bf16.mxu1 %vm8721_vm6, %v8717_v42  ;;  %vm1382_vm13 = vcmp.lt.s32.totalorder %v1126_v35, 2600  ;;  %v7785_v62 = vsel %vm2148_vm2, %v609_v37, 0  ;;  %vm2179_vm12 = vmpackc.low %vm1411_vm3, %vm1411_vm3  ;;  %v1157_v38 = vadd.s32 %v6034_v4, %v900_v46  ;;  %v1158_v21 = vadd.s32 %v6034_v4, %v901_v54  ;;  %v613_v54 = vld [vmem:[%s6010_s12 + $0x488] sm:$0xff]  ;;  %v619_v33 = vld [vmem:[%s6010_s12 + $0x4b8] sm:$0xff] }
 0x1c2   : > { %4145 = vmatprep.subr.bf16.mxu1 %v4958_v36  ;;  %v870_v56 = vadd.s32 1152, %v6037_v5  ;;  %v4935_v36 = vcombine.low %v7779_v6, %v7785_v62  ;;  %v4936_v49 = vcombine.high %v7779_v6, %v7785_v62  ;;  %vm2180_vm14 = vmpackc.low %vm1412_vm8, %vm1412_vm8  ;;  %v7802_v48 = vsel %vm2179_vm12, %v640_v63, 0 }
 0x1c3   : > { %4105 = vmatpush1.bf16.msra.mxu0 %v4925_v41  ;;  %v871_v59 = vadd.s32 1160, %v6037_v5  ;;  %v7809_v23 = vsel %vm2180_vm14, %v641_v16, 0  ;;  %vm2149_vm7 = vmpackc.low %vm1381_vm5, %vm1381_vm5  ;;  %vm1413_vm0 = vcmp.lt.s32.totalorder %v1157_v38, 2600  ;;  %vm1414_vm10 = vcmp.lt.s32.totalorder %v1158_v21, 2600  ;;  %v644_v38 = vld [vmem:[%s6010_s12 + $0x580] sm:$0xff] }
 0x1c4   : > { %4106 = vmatprep.subr.bf16.mxu0 %v4928_v43  ;;  %v1127_v41 = vadd.s32 %v6034_v4, %v870_v56  ;;  %v4967_v10 = vcombine.low %v7802_v48, %v7809_v23  ;;  %v4968_v43 = vcombine.high %v7802_v48, %v7809_v23  ;;  %vm2150_vm4 = vmpackc.low %vm1382_vm13, %vm1382_vm13  ;;  %v7824_v15 = vsel %vm2149_vm7, %v610_v61, 0  ;;  %v620_v23 = vld [vmem:[%s6010_s12 + $0x4c0] sm:$0xff] }
 0x1c5   : > { %4146 = vmatpush1.bf16.msra.mxu1 %v4957_v40  ;;  %v1128_v37 = vadd.s32 %v6034_v4, %v871_v59  ;;  %v7831_v44 = vsel %vm2150_vm4, %v611_v13, 0  ;;  %vm2181_vm3 = vmpackc.low %vm1413_vm0, %vm1413_vm0  ;;  %v902_v40 = vadd.s32 1408, %v6037_v5  ;;  %v903_v35 = vadd.s32 1416, %v6037_v5 }
 0x1c6   : > { %4147 = vmatprep.subr.bf16.mxu1 %v4960_v24  ;;  %vm1383_vm8 = vcmp.lt.s32.totalorder %v1127_v41, 2600  ;;  %v4937_v63 = vcombine.low %v7824_v15, %v7831_v44  ;;  %v4938_v46 = vcombine.high %v7824_v15, %v7831_v44  ;;  %vm2182_vm11 = vmpackc.low %vm1414_vm10, %vm1414_vm10  ;;  %v7845_v24 = vsel %vm2181_vm3, %v642_v26, 0 }
 0x1c7   : > { %4107 = vmatpush1.bf16.msra.mxu0 %v4927_v50  ;;  %vm1384_vm15 = vcmp.lt.s32.totalorder %v1128_v37, 2600  ;;  %v7851_v52 = vsel %vm2182_vm11, %v643_v60, 0  ;;  %vm2151_vm9 = vmpackc.low %vm1383_vm8, %vm1383_vm8  ;;  %v1159_v8 = vadd.s32 %v6034_v4, %v902_v40  ;;  %v1160_v50 = vadd.s32 %v6034_v4, %v903_v35 }
 0x1c8   : > { %4108 = vmatprep.subr.bf16.mxu0 %v4930_v14  ;;  %v872_v9 = vadd.s32 1168, %v6037_v5  ;;  %v4969_v16 = vcombine.low %v7845_v24, %v7851_v52  ;;  %v4970_v14 = vcombine.high %v7845_v24, %v7851_v52  ;;  %vm2152_vm1 = vmpackc.low %vm1384_vm15, %vm1384_vm15  ;;  %v7863_v61 = vsel %vm2151_vm9, %v612_v20, 0  ;;  %v653_v52 = vld [vmem:[%s6010_s12 + $0x5c8] sm:$0xff] }
 0x1c9   : > { %4148 = vmatpush1.bf16.msra.mxu1 %v4959_v51  ;;  %v873_v21 = vadd.s32 1176, %v6037_v5  ;;  %v7870_v32 = vsel %vm2152_vm1, %v613_v54, 0  ;;  %vm1415_vm5 = vcmp.lt.s32.totalorder %v1159_v8, 2600  ;;  %vm1416_vm6 = vcmp.lt.s32.totalorder %v1160_v50, 2600 }
 0x1ca   : > { %4149 = vmatprep.subr.bf16.mxu1 %v4962_v30  ;;  %v1129_v51 = vadd.s32 %v6034_v4, %v872_v9  ;;  %v4939_v56 = vcombine.low %v7863_v61, %v7870_v32  ;;  %v4940_v13 = vcombine.high %v7863_v61, %v7870_v32  ;;  %vm2183_vm2 = vmpackc.low %vm1415_vm5, %vm1415_vm5  ;;  %v614_v30 = vld [vmem:[%s6010_s12 + $0x490] sm:$0xff]  ;;  %v904_v26 = vadd.s32 1424, %v6037_v5  ;;  %v623_v61 = vld [vmem:[%s6010_s12 + $0x4d8] sm:$0xff] }
 0x1cb   : > { %4109 = vmatpush1.bf16.msra.mxu0 %v4929_v45  ;;  %v1130_v59 = vadd.s32 %v6034_v4, %v873_v21  ;;  %vm2184_vm13 = vmpackc.low %vm1416_vm6, %vm1416_vm6  ;;  %v7887_v41 = vsel %vm2183_vm2, %v644_v38, 0  ;;  %v905_v3 = vadd.s32 1432, %v6037_v5  ;;  %v874_v45 = vadd.s32 1184, %v6037_v5 }
 0x1cc   : > { %4110 = vmatprep.subr.bf16.mxu0 %v4932_v25  ;;  %vm1385_vm12 = vcmp.lt.s32.totalorder %v1129_v51, 2600  ;;  %v7895_v60 = vsel %vm2184_vm13, %v645_v55, 0  ;;  %v1161_v25 = vadd.s32 %v6034_v4, %v904_v26  ;;  %v875_v37 = vadd.s32 1192, %v6037_v5  ;;  %v648_v26 = vld [vmem:[%s6010_s12 + $0x5a0] sm:$0xff] }
 0x1cd   : > { %4150 = vmatpush1.bf16.msra.mxu1 %v4961_v57  ;;  %vm1386_vm14 = vcmp.lt.s32.totalorder %v1130_v59, 2600  ;;  %vm2153_vm7 = vmpackc.low %vm1385_vm12, %vm1385_vm12  ;;  %v4971_v20 = vcombine.low %v7887_v41, %v7895_v60  ;;  %v4972_v1 = vcombine.high %v7887_v41, %v7895_v60  ;;  %v646_v57 = vld [vmem:[%s6010_s12 + $0x590] sm:$0xff]  ;;  %v1162_v40 = vadd.s32 %v6034_v4, %v905_v3 }
 0x1ce   : > { %4151 = vmatprep.subr.bf16.mxu1 %v4964_v12  ;;  %vm2154_vm0 = vmpackc.low %vm1386_vm14, %vm1386_vm14  ;;  %v7906_v11 = vsel %vm2153_vm7, %v614_v30, 0  ;;  %v8722_v35 = vcombine.low %v7659_v47, %v7666_v34  ;;  %v647_v12 = vld [vmem:[%s6010_s12 + $0x598] sm:$0xff]  ;;  %vm1417_vm10 = vcmp.lt.s32.totalorder %v1161_v25, 2600  ;;  %v1131_v8 = vadd.s32 %v6034_v4, %v874_v45  ;;  %v616_v34 = vld [vmem:[%s6010_s12 + $0x4a0] sm:$0xff] }
 0x1cf   : > { %v7913_v54 = vsel %vm2154_vm0, %v615_v31, 0  ;;  %v1132_v50 = vadd.s32 %v6034_v4, %v875_v37  ;;  %vm1418_vm4 = vcmp.lt.s32.totalorder %v1162_v40, 2600  ;;  %vm2185_vm3 = vmpackc.low %vm1417_vm10, %vm1417_vm10  ;;  %v906_v38 = vadd.s32 1440, %v6037_v5 }
 0x1d0   : > { %4111 = vmatpush1.bf16.msra.mxu0 %v8722_v35  ;;  %v4941_v9 = vcombine.low %v7906_v11, %v7913_v54  ;;  %v4942_v47 = vcombine.high %v7906_v11, %v7913_v54  ;;  %vm2186_vm8 = vmpackc.low %vm1418_vm4, %vm1418_vm4  ;;  %v7930_v21 = vsel %vm2185_vm3, %v646_v57, 0  ;;  %vm1387_vm11 = vcmp.lt.s32.totalorder %v1131_v8, 2600  ;;  %v624_v54 = vld [vmem:[%s6010_s12 + $0x4e0] sm:$0xff] }
 0x1d1   : > { %4112 = vmatprep.subr.bf16.mxu0 %v4934_v39  ;;  %4152 = vmatpush1.bf16.msra.mxu1 %v4963_v29  ;;  %v617_v39 = vld [vmem:[%s6010_s12 + $0x4a8] sm:$0xff]  ;;  %vm1388_vm15 = vcmp.lt.s32.totalorder %v1132_v50, 2600  ;;  %v907_v55 = vadd.s32 1448, %v6037_v5  ;;  %v7937_v51 = vsel %vm2186_vm8, %v647_v12, 0  ;;  %vm2155_vm9 = vmpackc.low %vm1387_vm11, %vm1387_vm11  ;;  %v1163_v2 = vadd.s32 %v6034_v4, %v906_v38 }
 0x1d2   : > { %4153 = vmatprep.subr.bf16.mxu1 %v4966_v18  ;;  %v876_v7 = vadd.s32 1200, %v6037_v5  ;;  %v877_v29 = vadd.s32 1208, %v6037_v5  ;;  %v4973_v30 = vcombine.low %v7930_v21, %v7937_v51  ;;  %v4974_v59 = vcombine.high %v7930_v21, %v7937_v51  ;;  %vm2156_vm1 = vmpackc.low %vm1388_vm15, %vm1388_vm15 }
 0x1d3   : > { %v7949_v18 = vsel %vm2155_vm9, %v616_v34, 0  ;;  %v1164_v31 = vadd.s32 %v6034_v4, %v907_v55  ;;  %v7956_v58 = vsel %vm2156_vm1, %v617_v39, 0  ;;  %vm1419_vm5 = vcmp.lt.s32.totalorder %v1163_v2, 2600 }
 0x1d4   : > { %4113 = vmatpush1.bf16.msra.mxu0 %v4933_v53  ;;  %v1133_v53 = vadd.s32 %v6034_v4, %v876_v7  ;;  %v1134_v3 = vadd.s32 %v6034_v4, %v877_v29  ;;  %v4943_v45 = vcombine.low %v7949_v18, %v7956_v58  ;;  %v4944_v25 = vcombine.high %v7949_v18, %v7956_v58  ;;  %vm2187_vm2 = vmpackc.low %vm1419_vm5, %vm1419_vm5  ;;  %v657_v58 = vld [vmem:[%s6010_s12 + $0x5e8] sm:$0xff] }
 0x1d5   : > { %4114 = vmatprep.subr.bf16.mxu0 %v4936_v49  ;;  %4154 = vmatpush1.bf16.msra.mxu1 %v4965_v27  ;;  %vm1420_vm6 = vcmp.lt.s32.totalorder %v1164_v31, 2600  ;;  %v618_v49 = vld [vmem:[%s6010_s12 + $0x4b0] sm:$0xff]  ;;  %v908_v37 = vadd.s32 1456, %v6037_v5  ;;  %v7973_v57 = vsel %vm2187_vm2, %v648_v26, 0  ;;  %v909_v17 = vadd.s32 1464, %v6037_v5  ;;  %v652_v31 = vld [vmem:[%s6010_s12 + $0x5c0] sm:$0xff] }
 0x1d6   : > { %4155 = vmatprep.subr.bf16.mxu1 %v4968_v43  ;;  %vm2188_vm13 = vmpackc.low %vm1420_vm6, %vm1420_vm6  ;;  %vm1389_vm12 = vcmp.lt.s32.totalorder %v1133_v53, 2600  ;;  %vm1390_vm14 = vcmp.lt.s32.totalorder %v1134_v3, 2600  ;;  %v878_v43 = vadd.s32 1216, %v6037_v5  ;;  %v879_v35 = vadd.s32 1224, %v6037_v5 }
 0x1d7   : > { %v7980_v27 = vsel %vm2188_vm13, %v649_v19, 0  ;;  %vm2157_vm7 = vmpackc.low %vm1389_vm12, %vm1389_vm12  ;;  %v1165_v40 = vadd.s32 %v6034_v4, %v908_v37  ;;  %v1166_v8 = vadd.s32 %v6034_v4, %v909_v17  ;;  %v911_v2 = vadd.s32 1480, %v6037_v5 }
 0x1d8   : > { %4115 = vmatpush1.bf16.msra.mxu0 %v4935_v36  ;;  %v4975_v12 = vcombine.low %v7973_v57, %v7980_v27  ;;  %v4976_v6 = vcombine.high %v7973_v57, %v7980_v27  ;;  %vm2158_vm0 = vmpackc.low %vm1390_vm14, %vm1390_vm14  ;;  %v7992_v62 = vsel %vm2157_vm7, %v618_v49, 0  ;;  %v650_v36 = vld [vmem:[%s6010_s12 + $0x5b0] sm:$0xff]  ;;  %v1135_v34 = vadd.s32 %v6034_v4, %v878_v43  ;;  %v627_v57 = vld [vmem:[%s6010_s12 + $0x4f8] sm:$0xff] }
 0x1d9   : > { %4116 = vmatprep.subr.bf16.mxu0 %v4938_v46  ;;  %4156 = vmatpush1.bf16.msra.mxu1 %v4967_v10  ;;  %v7999_v50 = vsel %vm2158_vm0, %v619_v33, 0  ;;  %v651_v46 = vld [vmem:[%s6010_s12 + $0x5b8] sm:$0xff]  ;;  %vm1421_vm10 = vcmp.lt.s32.totalorder %v1165_v40, 2600  ;;  %v1136_v38 = vadd.s32 %v6034_v4, %v879_v35  ;;  %vm1422_vm4 = vcmp.lt.s32.totalorder %v1166_v8, 2600 }
 0x1da   : > { %4157 = vmatprep.subr.bf16.mxu1 %v4970_v14  ;;  %v4945_v39 = vcombine.low %v7992_v62, %v7999_v50  ;;  %v4946_v48 = vcombine.high %v7992_v62, %v7999_v50  ;;  %vm2189_vm3 = vmpackc.low %vm1421_vm10, %vm1421_vm10  ;;  %v910_v10 = vadd.s32 1472, %v6037_v5  ;;  %v621_v14 = vld [vmem:[%s6010_s12 + $0x4c8] sm:$0xff]  ;;  %vm1391_vm11 = vcmp.lt.s32.totalorder %v1135_v34, 2600 }
 0x1db   : > { %vm2190_vm8 = vmpackc.low %vm1422_vm4, %vm1422_vm4  ;;  %v8016_v55 = vsel %vm2189_vm3, %v650_v36, 0  ;;  %vm1392_vm15 = vcmp.lt.s32.totalorder %v1136_v38, 2600  ;;  %v880_v44 = vadd.s32 1232, %v6037_v5  ;;  %v1168_v19 = vadd.s32 %v6034_v4, %v911_v2 }
 0x1dc   : > { %4117 = vmatpush1.bf16.msra.mxu0 %v4937_v63  ;;  %v8023_v7 = vsel %vm2190_vm8, %v651_v46, 0  ;;  %vm2159_vm9 = vmpackc.low %vm1391_vm11, %vm1391_vm11  ;;  %v1167_v15 = vadd.s32 %v6034_v4, %v910_v10  ;;  %v881_v63 = vadd.s32 1240, %v6037_v5  ;;  %v912_v37 = vadd.s32 1488, %v6037_v5 }
 0x1dd   : > { %4118 = vmatprep.subr.bf16.mxu0 %v4940_v13  ;;  %4158 = vmatpush1.bf16.msra.mxu1 %v4969_v16  ;;  %v4977_v29 = vcombine.low %v8016_v55, %v8023_v7  ;;  %v4978_v26 = vcombine.high %v8016_v55, %v8023_v7  ;;  %vm2160_vm1 = vmpackc.low %vm1392_vm15, %vm1392_vm15  ;;  %v8035_v13 = vsel %vm2159_vm9, %v620_v23, 0  ;;  %v1137_v16 = vadd.s32 %v6034_v4, %v880_v44 }
 0x1de   : > { %4159 = vmatprep.subr.bf16.mxu1 %v4972_v1  ;;  %v8042_v24 = vsel %vm2160_vm1, %v621_v14, 0  ;;  %vm1423_vm5 = vcmp.lt.s32.totalorder %v1167_v15, 2600  ;;  %v1138_v53 = vadd.s32 %v6034_v4, %v881_v63  ;;  %vm1424_vm6 = vcmp.lt.s32.totalorder %v1168_v19, 2600  ;;  %v622_v1 = vld [vmem:[%s6010_s12 + $0x4d0] sm:$0xff]  ;;  %v656_v15 = vld [vmem:[%s6010_s12 + $0x5e0] sm:$0xff] }
 0x1df   : > { %v4947_v3 = vcombine.low %v8035_v13, %v8042_v24  ;;  %v4948_v49 = vcombine.high %v8035_v13, %v8042_v24  ;;  %vm2191_vm2 = vmpackc.low %vm1423_vm5, %vm1423_vm5  ;;  %vm1393_vm12 = vcmp.lt.s32.totalorder %v1137_v16, 2600  ;;  %v913_v32 = vadd.s32 1496, %v6037_v5 }
 0x1e0   : > { %4119 = vmatpush1.bf16.msra.mxu0 %v4939_v56  ;;  %vm2192_vm13 = vmpackc.low %vm1424_vm6, %vm1424_vm6  ;;  %v8059_v33 = vsel %vm2191_vm2, %v652_v31, 0  ;;  %vm1394_vm14 = vcmp.lt.s32.totalorder %v1138_v53, 2600  ;;  %v1169_v17 = vadd.s32 %v6034_v4, %v912_v37  ;;  %v883_v40 = vadd.s32 1256, %v6037_v5 }
 0x1e1   : > { %4120 = vmatprep.subr.bf16.mxu0 %v4942_v47  ;;  %4160 = vmatpush1.bf16.msra.mxu1 %v4971_v20  ;;  %v8066_v56 = vsel %vm2192_vm13, %v653_v52, 0  ;;  %vm2161_vm7 = vmpackc.low %vm1393_vm12, %vm1393_vm12  ;;  %v882_v47 = vadd.s32 1248, %v6037_v5  ;;  %v654_v20 = vld [vmem:[%s6010_s12 + $0x5d0] sm:$0xff]  ;;  %v1170_v35 = vadd.s32 %v6034_v4, %v913_v32  ;;  %v915_v23 = vadd.s32 1512, %v6037_v5 }
 0x1e2   : > { %4161 = vmatprep.subr.bf16.mxu1 %v4974_v59  ;;  %v4979_v43 = vcombine.low %v8059_v33, %v8066_v56  ;;  %v4980_v41 = vcombine.high %v8059_v33, %v8066_v56  ;;  %vm2162_vm0 = vmpackc.low %vm1394_vm14, %vm1394_vm14  ;;  %v8078_v60 = vsel %vm2161_vm7, %v622_v1, 0  ;;  %v655_v59 = vld [vmem:[%s6010_s12 + $0x5d8] sm:$0xff]  ;;  %vm1425_vm10 = vcmp.lt.s32.totalorder %v1169_v17, 2600  ;;  %v660_v33 = vld [vmem:[%s6010_s12 + $0x600] sm:$0xff] }
 0x1e3   : > { %v8085_v36 = vsel %vm2162_vm0, %v623_v61, 0  ;;  %v1139_v8 = vadd.s32 %v6034_v4, %v882_v47  ;;  %v1140_v46 = vadd.s32 %v6034_v4, %v883_v40  ;;  %vm1426_vm4 = vcmp.lt.s32.totalorder %v1170_v35, 2600  ;;  %vm2193_vm3 = vmpackc.low %vm1425_vm10, %vm1425_vm10  ;;  %v659_v17 = vld [vmem:[%s6010_s12 + $0x5f8] sm:$0xff] }
 0x1e4   : > { %4121 = vmatpush1.bf16.msra.mxu0 %v4941_v9  ;;  %v4949_v34 = vcombine.low %v8078_v60, %v8085_v36  ;;  %v4950_v11 = vcombine.high %v8078_v60, %v8085_v36  ;;  %v914_v9 = vadd.s32 1504, %v6037_v5  ;;  %vm2194_vm8 = vmpackc.low %vm1426_vm4, %vm1426_vm4  ;;  %v8102_v38 = vsel %vm2193_vm3, %v654_v20, 0  ;;  %v692_v60 = vld [vmem:[%s6010_s12 + $0x700] sm:$0xff] }
 0x1e5   : > { %4122 = vmatprep.subr.bf16.mxu0 %v4944_v25  ;;  %4162 = vmatpush1.bf16.msra.mxu1 %v4973_v30  ;;  %v625_v25 = vld [vmem:[%s6010_s12 + $0x4e8] sm:$0xff]  ;;  %vm1395_vm11 = vcmp.lt.s32.totalorder %v1139_v8, 2600  ;;  %vm1396_vm15 = vcmp.lt.s32.totalorder %v1140_v46, 2600  ;;  %v8109_v10 = vsel %vm2194_vm8, %v655_v59, 0  ;;  %v884_v51 = vadd.s32 1264, %v6037_v5 }
 0x1e6   : > { %4163 = vmatprep.subr.bf16.mxu1 %v4976_v6  ;;  %vm2163_vm9 = vmpackc.low %vm1395_vm11, %vm1395_vm11  ;;  %v1171_v21 = vadd.s32 %v6034_v4, %v914_v9  ;;  %v885_v30 = vadd.s32 1272, %v6037_v5  ;;  %v4981_v14 = vcombine.low %v8102_v38, %v8109_v10  ;;  %v4982_v2 = vcombine.high %v8102_v38, %v8109_v10 }
 0x1e7   : > { %vm2164_vm1 = vmpackc.low %vm1396_vm15, %vm1396_vm15  ;;  %v8121_v6 = vsel %vm2163_vm9, %v624_v54, 0  ;;  %v1172_v44 = vadd.s32 %v6034_v4, %v915_v23  ;;  %v916_v52 = vadd.s32 1520, %v6037_v5  ;;  %v917_v27 = vadd.s32 1528, %v6037_v5  ;;  %v661_v54 = vld [vmem:[%s6010_s12 + $0x608] sm:$0xff] }
 0x1e8   : > { %4123 = vmatpush1.bf16.msra.mxu0 %v4943_v45  ;;  %v8128_v18 = vsel %vm2164_vm1, %v625_v25, 0  ;;  %vm1427_vm5 = vcmp.lt.s32.totalorder %v1171_v21, 2600  ;;  %v1141_v45 = vadd.s32 %v6034_v4, %v884_v51  ;;  %v1142_v63 = vadd.s32 %v6034_v4, %v885_v30 }
 0x1e9   : > { %4124 = vmatprep.subr.bf16.mxu0 %v4946_v48  ;;  %4164 = vmatpush1.bf16.msra.mxu1 %v4975_v12  ;;  %v4951_v31 = vcombine.low %v8121_v6, %v8128_v18  ;;  %v4952_v19 = vcombine.high %v8121_v6, %v8128_v18  ;;  %vm1428_vm6 = vcmp.lt.s32.totalorder %v1172_v44, 2600  ;;  %vm2195_vm2 = vmpackc.low %vm1427_vm5, %vm1427_vm5  ;;  %v626_v48 = vld [vmem:[%s6010_s12 + $0x4f0] sm:$0xff]  ;;  %v1173_v53 = vadd.s32 %v6034_v4, %v916_v52 }
 0x1ea   : > { %4165 = vmatprep.subr.bf16.mxu1 %v4978_v26  ;;  %vm2196_vm13 = vmpackc.low %vm1428_vm6, %vm1428_vm6  ;;  %v8145_v16 = vsel %vm2195_vm2, %v656_v15, 0  ;;  %vm1397_vm12 = vcmp.lt.s32.totalorder %v1141_v45, 2600  ;;  %vm1398_vm14 = vcmp.lt.s32.totalorder %v1142_v63, 2600  ;;  %v2528_v26 = vadd.s32 1024, %v6256_v22  ;;  %v668_v45 = vld [vmem:[%s6010_s12 + $0x640] sm:$0xff] }
 0x1eb   : > { %v8152_v12 = vsel %vm2196_vm13, %v657_v58, 0  ;;  %vm2165_vm7 = vmpackc.low %vm1397_vm12, %vm1397_vm12  ;;  %v2530_v1 = vadd.s32 1280, %v6256_v22  ;;  %v1174_v61 = vadd.s32 %v6034_v4, %v917_v27  ;;  %vm1429_vm10 = vcmp.lt.s32.totalorder %v1173_v53, 2600  ;;  %v663_v53 = vld [vmem:[%s6010_s12 + $0x618] sm:$0xff] }
 0x1ec   : > { %4125 = vmatpush1.bf16.msra.mxu0 %v4945_v39  ;;  %v4983_v37 = vcombine.low %v8145_v16, %v8152_v12  ;;  %v4984_v62 = vcombine.high %v8145_v16, %v8152_v12  ;;  %vm2166_vm0 = vmpackc.low %vm1398_vm14, %vm1398_vm14  ;;  %v8164_v50 = vsel %vm2165_vm7, %v626_v48, 0  ;;  %v658_v39 = vld [vmem:[%s6010_s12 + $0x5f0] sm:$0xff]  ;;  %v918_v55 = vadd.s32 1536, %v6037_v5 }
 0x1ed   : > { %4126 = vmatprep.subr.bf16.mxu0 %v4948_v49  ;;  %4166 = vmatpush1.bf16.msra.mxu1 %v4977_v29  ;;  %v8171_v32 = vsel %vm2166_vm0, %v627_v57, 0  ;;  %v2544_v49 = vadd.s32 %v2528_v26, %v6034_v4  ;;  %v2546_v47 = vadd.s32 %v2530_v1, %v6034_v4  ;;  %vm1430_vm4 = vcmp.lt.s32.totalorder %v1174_v61, 2600  ;;  %vm2197_vm3 = vmpackc.low %vm1429_vm10, %vm1429_vm10  ;;  %v662_v16 = vld [vmem:[%s6010_s12 + $0x610] sm:$0xff] }
 0x1ee   : > { %4167 = vmatprep.subr.bf16.mxu1 %v4980_v41  ;;  %v4953_v40 = vcombine.low %v8164_v50, %v8171_v32  ;;  %v4954_v20 = vcombine.high %v8164_v50, %v8171_v32  ;;  %vm2198_vm8 = vmpackc.low %vm1430_vm4, %vm1430_vm4  ;;  %v8187_v7 = vsel %vm2197_vm3, %v658_v39, 0  ;;  %v919_v13 = vadd.s32 1544, %v6037_v5 }
 0x1ef   : > { %vm2564_vm11 = vcmp.ge.s32.totalorder %v2544_v49, %v6640_v28  ;;  %vm2584_vm15 = vcmp.lt.s32.totalorder %v2544_v49, %v6671_v0  ;;  %vm2566_vm9 = vcmp.ge.s32.totalorder %v2546_v47, %v6640_v28  ;;  %v8195_v29 = vsel %vm2198_vm8, %v659_v17, 0  ;;  %v695_v17 = vld [vmem:[%s6010_s12 + $0x718] sm:$0xff] }
 0x1f0   : > { %4127 = vmatpush1.bf16.msra.mxu0 %v4947_v3  ;;  %vm2586_vm1 = vcmp.lt.s32.totalorder %v2546_v47, %v6671_v0  ;;  %v1175_v24 = vadd.s32 %v6034_v4, %v918_v55  ;;  %v4985_v3 = vcombine.low %v8187_v7, %v8195_v29  ;;  %v4986_v41 = vcombine.high %v8187_v7, %v8195_v29  ;;  %vm8212_vm5 = vmand %vm2564_vm11, %vm2584_vm15 }
 0x1f1   : > { %4128 = vmatprep.subr.bf16.mxu0 %v4950_v11  ;;  %4168 = vmatpush1.bf16.msra.mxu1 %v4979_v43  ;;  %v950_v35 = vadd.s32 1792, %v6037_v5  ;;  %v951_v59 = vadd.s32 1800, %v6037_v5  ;;  %v1176_v56 = vadd.s32 %v6034_v4, %v919_v13  ;;  %v2533_v43 = vadd.s32 1664, %v6256_v22  ;;  %vm8227_vm2 = vmand %vm2566_vm9, %vm2586_vm1  ;;  %v666_v11 = vld [vmem:[%s6010_s12 + $0x630] sm:$0xff] }
 0x1f2   : > { %4169 = vmatprep.subr.bf16.mxu1 %v4982_v2  ;;  %vm1431_vm6 = vcmp.lt.s32.totalorder %v1175_v24, 2600  ;;  %v2535_v46 = vadd.s32 1920, %v6256_v22  ;;  %v920_v23 = vadd.s32 1552, %v6037_v5  ;;  %v921_v21 = vadd.s32 1560, %v6037_v5  ;;  %vm5069_vm14 = vmpackc.low %vm8212_vm5, %vm8212_vm5  ;;  %v693_v2 = vld [vmem:[%s6010_s12 + $0x708] sm:$0xff] }
 0x1f3   : > { %v1207_v9 = vadd.s32 %v6034_v4, %v950_v35  ;;  %v1208_v25 = vadd.s32 %v6034_v4, %v951_v59  ;;  %vm1432_vm13 = vcmp.lt.s32.totalorder %v1176_v56, 2600  ;;  %vm2199_vm12 = vmpackc.low %vm1431_vm6, %vm1431_vm6  ;;  %v2549_v36 = vadd.s32 %v2533_v43, %v6034_v4  ;;  %v665_v24 = vld [vmem:[%s6010_s12 + $0x628] sm:$0xff] }
 0x1f4   : > { %4129 = vmatpush1.bf16.msra.mxu0 %v4949_v34  ;;  %v2551_v34 = vadd.s32 %v2535_v46, %v6034_v4  ;;  %v952_v51 = vadd.s32 1808, %v6037_v5  ;;  %vm2200_vm7 = vmpackc.low %vm1432_vm13, %vm1432_vm13  ;;  %v8249_v30 = vsel %vm2199_vm12, %v660_v33, 0  ;;  %v1177_v15 = vadd.s32 %v6034_v4, %v920_v23  ;;  %v697_v56 = vld [vmem:[%s6010_s12 + $0x728] sm:$0xff] }
 0x1f5   : > { %4130 = vmatprep.subr.bf16.mxu0 %v4952_v19  ;;  %4170 = vmatpush1.bf16.msra.mxu1 %v4981_v14  ;;  %vm1463_vm0 = vcmp.lt.s32.totalorder %v1207_v9, 2600  ;;  %vm1464_vm10 = vcmp.lt.s32.totalorder %v1208_v25, 2600  ;;  %v2456_v44 = vsel %vm2200_vm7, %v661_v54, 0  ;;  %vm2569_vm3 = vcmp.ge.s32.totalorder %v2549_v36, %v6640_v28  ;;  %vm5073_vm15 = vmpackc.low %vm8227_vm2, %vm8227_vm2 }
 0x1f6   : > { %4171 = vmatprep.subr.bf16.mxu1 %v4984_v62  ;;  %vm2231_vm4 = vmpackc.low %vm1463_vm0, %vm1463_vm0  ;;  %vm2589_vm8 = vcmp.lt.s32.totalorder %v2549_v36, %v6671_v0  ;;  %vm2571_vm11 = vcmp.ge.s32.totalorder %v2551_v34, %v6640_v28  ;;  %v4987_v38 = vcombine.low %v8249_v30, %v2456_v44  ;;  %v4988_v10 = vcombine.high %v8249_v30, %v2456_v44  ;;  %v694_v62 = vld [vmem:[%s6010_s12 + $0x710] sm:$0xff]  ;;  %v667_v36 = vld [vmem:[%s6010_s12 + $0x638] sm:$0xff] }
 0x1f7   : > { %vm2232_vm9 = vmpackc.low %vm1464_vm10, %vm1464_vm10  ;;  %v8264_v14 = vsel %vm2231_vm4, %v692_v60, 0  ;;  %vm2591_vm1 = vcmp.lt.s32.totalorder %v2551_v34, %v6671_v0  ;;  %v1178_v6 = vadd.s32 %v6034_v4, %v921_v21  ;;  %vm1433_vm13 = vcmp.lt.s32.totalorder %v1177_v15, 2600  ;;  %v698_v30 = vld [vmem:[%s6010_s12 + $0x730] sm:$0xff] }
 0x1f8   : > { %4131 = vmatpush1.bf16.msra.mxu0 %v4951_v31  ;;  %v2488_v58 = vsel %vm2232_vm9, %v693_v2, 0  ;;  %vm8267_vm6 = vmand %vm2569_vm3, %vm2589_vm8  ;;  %v953_v18 = vadd.s32 1816, %v6037_v5  ;;  %v1209_v19 = vadd.s32 %v6034_v4, %v952_v51  ;;  %v922_v48 = vadd.s32 1568, %v6037_v5 }
 0x1f9   : > { %4132 = vmatprep.subr.bf16.mxu0 %v4954_v20  ;;  %4172 = vmatpush1.bf16.msra.mxu1 %v4983_v37  ;;  %v5019_v63 = vcombine.low %v8264_v14, %v2488_v58  ;;  %v5020_v31 = vcombine.high %v8264_v14, %v2488_v58  ;;  %vm5075_vm12 = vmpackc.low %vm8267_vm6, %vm8267_vm6  ;;  %vm1434_vm0 = vcmp.lt.s32.totalorder %v1178_v6, 2600  ;;  %v923_v27 = vadd.s32 1576, %v6037_v5  ;;  %v664_v20 = vld [vmem:[%s6010_s12 + $0x620] sm:$0xff]  ;;  %v699_v14 = vld [vmem:[%s6010_s12 + $0x738] sm:$0xff] }
 0x1fa   : > { %4173 = vmatprep.subr.bf16.mxu1 %v4986_v41  ;;  %vm8285_vm7 = vmand %vm2571_vm11, %vm2591_vm1  ;;  %v1210_v57 = vadd.s32 %v6034_v4, %v953_v18  ;;  %v954_v12 = vadd.s32 1824, %v6037_v5  ;;  %vm1465_vm4 = vcmp.lt.s32.totalorder %v1209_v19, 2600  ;;  %v1179_v26 = vadd.s32 %v6034_v4, %v922_v48  ;;  %v696_v41 = vld [vmem:[%s6010_s12 + $0x720] sm:$0xff]  ;;  %v669_v19 = vld [vmem:[%s6010_s12 + $0x648] sm:$0xff] }
 0x1fb   : > { %vm5079_vm10 = vmpackc.low %vm8285_vm7, %vm8285_vm7  ;;  %v955_v1 = vadd.s32 1832, %v6037_v5  ;;  %v924_v37 = vadd.s32 1584, %v6037_v5  ;;  %v1180_v50 = vadd.s32 %v6034_v4, %v923_v27  ;;  %v925_v61 = vadd.s32 1592, %v6037_v5 }
 0x1fc   : > { %4133 = vmatpush1.bf16.msra.mxu0 %v4953_v40  ;;  %vm2201_vm3 = vmpackc.low %vm1433_vm13, %vm1433_vm13  ;;  %vm1466_vm8 = vcmp.lt.s32.totalorder %v1210_v57, 2600  ;;  %v1211_v39 = vadd.s32 %v6034_v4, %v954_v12  ;;  %vm1435_vm9 = vcmp.lt.s32.totalorder %v1179_v26, 2600  ;;  %v956_v35 = vadd.s32 1840, %v6037_v5 }
 0x1fd   : > { %4184 = vmatprep.subr.bf16.mxu0 %v4988_v10  ;;  %4174 = vmatpush1.bf16.msra.mxu1 %v4985_v3  ;;  %vm2202_vm11 = vmpackc.low %vm1434_vm0, %vm1434_vm0  ;;  %v2457_v32 = vsel %vm2201_vm3, %v662_v16, 0  ;;  %v1212_v49 = vadd.s32 %v6034_v4, %v955_v1  ;;  %v1181_v47 = vadd.s32 %v6034_v4, %v924_v37  ;;  %vm1436_vm13 = vcmp.lt.s32.totalorder %v1180_v50, 2600  ;;  %v700_v1 = vld [vmem:[%s6010_s12 + $0x740] sm:$0xff]  ;;  %v701_v50 = vld [vmem:[%s6010_s12 + $0x748] sm:$0xff] }
 0x1fe   : > { %4225 = vmatprep.subr.bf16.mxu1 %v5020_v31  ;;  %v2458_v40 = vsel %vm2202_vm11, %v663_v53, 0  ;;  %vm2233_vm1 = vmpackc.low %vm1465_vm4, %vm1465_vm4  ;;  %vm1467_vm0 = vcmp.lt.s32.totalorder %v1211_v39, 2600  ;;  %v1182_v55 = vadd.s32 %v6034_v4, %v925_v61  ;;  %v957_v43 = vadd.s32 1848, %v6037_v5 }
 0x1ff   : > { %5070 = vmatmul.mubr.msk.bf16.vlgmr.msra.gmra.mrb[8].mxu0 %vm5069_vm14, %v8717_v42  ;;  %v4989_v7 = vcombine.low %v2457_v32, %v2458_v40  ;;  %v4990_v29 = vcombine.high %v2457_v32, %v2458_v40  ;;  %vm2234_vm5 = vmpackc.low %vm1466_vm8, %vm1466_vm8  ;;  %v2489_v13 = vsel %vm2233_vm1, %v694_v62, 0  ;;  %vm1468_vm14 = vcmp.lt.s32.totalorder %v1212_v49, 2600  ;;  %v670_v49 = vld [vmem:[%s6010_s12 + $0x650] sm:$0xff] }
 0x200   : > { %4185 = vmatpush1.bf16.msra.mxu0 %v4987_v38  ;;  %5076 = vmatprep.mubr.msk.bf16.mxu0 %vm5075_vm12, %v8717_v42  ;;  %v2490_v3 = vsel %vm2234_vm5, %v695_v17, 0  ;;  %vm2203_vm6 = vmpackc.low %vm1435_vm9, %vm1435_vm9  ;;  %vm1437_vm12 = vcmp.lt.s32.totalorder %v1181_v47, 2600  ;;  %vm1438_vm4 = vcmp.lt.s32.totalorder %v1182_v55, 2600  ;;  %v1213_v54 = vadd.s32 %v6034_v4, %v956_v35 }
 0x201   : > { %5074 = vmatmul.mubr.msk.bf16.vlgmr.msra.gmra.mrb[8].mxu1 %vm5073_vm15, %v8717_v42  ;;  %v5021_v59 = vcombine.low %v2489_v13, %v2490_v3  ;;  %v5022_v8 = vcombine.high %v2489_v13, %v2490_v3  ;;  %vm2204_vm2 = vmpackc.low %vm1436_vm13, %vm1436_vm13  ;;  %v2459_v33 = vsel %vm2203_vm6, %v664_v20, 0  ;;  %4186 = vmatprep.subr.bf16.mxu0 %v4990_v29  ;;  %v926_v9 = vadd.s32 1600, %v6037_v5  ;;  %v671_v20 = vld [vmem:[%s6010_s12 + $0x658] sm:$0xff] }
 0x202   : > { %4226 = vmatpush1.bf16.msra.mxu1 %v5019_v63  ;;  %5080 = vmatprep.mubr.msk.bf16.mxu1 %vm5079_vm10, %v8717_v42  ;;  %v2460_v46 = vsel %vm2204_vm2, %v665_v24, 0  ;;  %vm2235_vm15 = vmpackc.low %vm1467_vm0, %vm1467_vm0  ;;  %v927_v25 = vadd.s32 1608, %v6037_v5  ;;  %v1214_v34 = vadd.s32 %v6034_v4, %v957_v43  ;;  %vm1469_vm3 = vcmp.lt.s32.totalorder %v1213_v54, 2600 }
 0x203   : > { %4227 = vmatprep.subr.bf16.mxu1 %v5022_v8  ;;  %v4991_v23 = vcombine.low %v2459_v33, %v2460_v46  ;;  %v4992_v21 = vcombine.high %v2459_v33, %v2460_v46  ;;  %vm2236_vm7 = vmpackc.low %vm1468_vm14, %vm1468_vm14  ;;  %v2491_v60 = vsel %vm2235_vm15, %v696_v41, 0  ;;  %v1183_v2 = vadd.s32 %v6034_v4, %v926_v9  ;;  %v672_v9 = vld [vmem:[%s6010_s12 + $0x660] sm:$0xff] }
 0x204   : > { %4187 = vmatpush1.bf16.msra.mxu0 %v4989_v7  ;;  %v2492_v51 = vsel %vm2236_vm7, %v697_v56, 0  ;;  %vm2205_vm10 = vmpackc.low %vm1437_vm12, %vm1437_vm12  ;;  %v1184_v15 = vadd.s32 %v6034_v4, %v927_v25  ;;  %vm1470_vm11 = vcmp.lt.s32.totalorder %v1214_v34, 2600  ;;  %v958_v6 = vadd.s32 1856, %v6037_v5  ;;  %v703_v56 = vld [vmem:[%s6010_s12 + $0x758] sm:$0xff] }
 0x205   : > { %4188 = vmatprep.subr.bf16.mxu0 %v4992_v21  ;;  %v5023_v44 = vcombine.low %v2491_v60, %v2492_v51  ;;  %v5024_v38 = vcombine.high %v2491_v60, %v2492_v51  ;;  %vm2206_vm8 = vmpackc.low %vm1438_vm4, %vm1438_vm4  ;;  %v2461_v10 = vsel %vm2205_vm10, %v666_v11, 0  ;;  %vm1439_vm1 = vcmp.lt.s32.totalorder %v1183_v2, 2600  ;;  %v673_v21 = vld [vmem:[%s6010_s12 + $0x668] sm:$0xff] }
 0x206   : > { %4228 = vmatpush1.bf16.msra.mxu1 %v5021_v59  ;;  %v2462_v58 = vsel %vm2206_vm8, %v667_v36, 0  ;;  %vm2237_vm9 = vmpackc.low %vm1469_vm3, %vm1469_vm3  ;;  %vm1440_vm13 = vcmp.lt.s32.totalorder %v1184_v15, 2600  ;;  %v959_v48 = vadd.s32 1864, %v6037_v5  ;;  %v1215_v16 = vadd.s32 %v6034_v4, %v958_v6  ;;  %v702_v59 = vld [vmem:[%s6010_s12 + $0x750] sm:$0xff] }
 0x207   : > { %4229 = vmatprep.subr.bf16.mxu1 %v5024_v38  ;;  %v4993_v18 = vcombine.low %v2461_v10, %v2462_v58  ;;  %v4994_v63 = vcombine.high %v2461_v10, %v2462_v58  ;;  %vm2238_vm0 = vmpackc.low %vm1470_vm11, %vm1470_vm11  ;;  %v2493_v31 = vsel %vm2237_vm9, %v698_v30, 0  ;;  %v928_v57 = vadd.s32 1616, %v6037_v5  ;;  %v704_v38 = vld [vmem:[%s6010_s12 + $0x760] sm:$0xff]  ;;  %v705_v58 = vld [vmem:[%s6010_s12 + $0x768] sm:$0xff] }
 0x208   : > { %4189 = vmatpush1.bf16.msra.mxu0 %v4991_v23  ;;  %v2494_v52 = vsel %vm2238_vm0, %v699_v14, 0  ;;  %vm2207_vm5 = vmpackc.low %vm1439_vm1, %vm1439_vm1  ;;  %v929_v27 = vadd.s32 1624, %v6037_v5  ;;  %v1216_v37 = vadd.s32 %v6034_v4, %v959_v48  ;;  %vm1471_vm6 = vcmp.lt.s32.totalorder %v1215_v16, 2600 }
 0x209   : > { %4190 = vmatprep.subr.bf16.mxu0 %v4994_v63  ;;  %v5025_v12 = vcombine.low %v2493_v31, %v2494_v52  ;;  %v5026_v53 = vcombine.high %v2493_v31, %v2494_v52  ;;  %vm2208_vm14 = vmpackc.low %vm1440_vm13, %vm1440_vm13  ;;  %v2463_v26 = vsel %vm2207_vm5, %v668_v45, 0  ;;  %v1185_v39 = vadd.s32 %v6034_v4, %v928_v57  ;;  %v674_v31 = vld [vmem:[%s6010_s12 + $0x670] sm:$0xff]  ;;  %v675_v52 = vld [vmem:[%s6010_s12 + $0x678] sm:$0xff] }
 0x20a   : > { %4230 = vmatpush1.bf16.msra.mxu1 %v5023_v44  ;;  %v2464_v62 = vsel %vm2208_vm14, %v669_v19, 0  ;;  %v1186_v61 = vadd.s32 %v6034_v4, %v929_v27  ;;  %vm1472_vm12 = vcmp.lt.s32.totalorder %v1216_v37, 2600  ;;  %vm2239_vm4 = vmpackc.low %vm1471_vm6, %vm1471_vm6  ;;  %v960_v47 = vadd.s32 1872, %v6037_v5 }
 0x20b   : > { %4231 = vmatprep.subr.bf16.mxu1 %v5026_v53  ;;  %v4995_v32 = vcombine.low %v2463_v26, %v2464_v62  ;;  %v4996_v17 = vcombine.high %v2463_v26, %v2464_v62  ;;  %vm2240_vm2 = vmpackc.low %vm1472_vm12, %vm1472_vm12  ;;  %v2495_v40 = vsel %vm2239_vm4, %v700_v1, 0  ;;  %vm1441_vm15 = vcmp.lt.s32.totalorder %v1185_v39, 2600  ;;  %v706_v62 = vld [vmem:[%s6010_s12 + $0x770] sm:$0xff] }
 0x20c   : > { %4191 = vmatpush1.bf16.msra.mxu0 %v4993_v18  ;;  %vm1442_vm7 = vcmp.lt.s32.totalorder %v1186_v61, 2600  ;;  %v961_v55 = vadd.s32 1880, %v6037_v5  ;;  %v2496_v7 = vsel %vm2240_vm2, %v701_v50, 0  ;;  %vm2209_vm10 = vmpackc.low %vm1441_vm15, %vm1441_vm15  ;;  %v1217_v29 = vadd.s32 %v6034_v4, %v960_v47  ;;  %v707_v61 = vld [vmem:[%s6010_s12 + $0x778] sm:$0xff] }
 0x20d   : > { %4192 = vmatprep.subr.bf16.mxu0 %v4996_v17  ;;  %v930_v13 = vadd.s32 1632, %v6037_v5  ;;  %v931_v24 = vadd.s32 1640, %v6037_v5  ;;  %v5027_v3 = vcombine.low %v2495_v40, %v2496_v7  ;;  %v5028_v41 = vcombine.high %v2495_v40, %v2496_v7  ;;  %vm2210_vm3 = vmpackc.low %vm1442_vm7, %vm1442_vm7  ;;  %v676_v40 = vld [vmem:[%s6010_s12 + $0x680] sm:$0xff]  ;;  %v677_v7 = vld [vmem:[%s6010_s12 + $0x688] sm:$0xff] }
 0x20e   : > { %4232 = vmatpush1.bf16.msra.mxu1 %v5025_v12  ;;  %v2465_v35 = vsel %vm2209_vm10, %v670_v49, 0  ;;  %v1218_v8 = vadd.s32 %v6034_v4, %v961_v55  ;;  %v2466_v33 = vsel %vm2210_vm3, %v671_v20, 0  ;;  %vm1473_vm8 = vcmp.lt.s32.totalorder %v1217_v29, 2600 }
 0x20f   : > { %v1187_v43 = vadd.s32 %v6034_v4, %v930_v13  ;;  %v1188_v46 = vadd.s32 %v6034_v4, %v931_v24  ;;  %4233 = vmatprep.subr.bf16.mxu1 %v5028_v41  ;;  %v4997_v11 = vcombine.low %v2465_v35, %v2466_v33  ;;  %v4998_v54 = vcombine.high %v2465_v35, %v2466_v33  ;;  %vm2241_vm9 = vmpackc.low %vm1473_vm8, %vm1473_vm8  ;;  %v708_v33 = vld [vmem:[%s6010_s12 + $0x780] sm:$0xff] }
 0x210   : > { %4193 = vmatpush1.bf16.msra.mxu0 %v4995_v32  ;;  %vm1474_vm11 = vcmp.lt.s32.totalorder %v1218_v8, 2600  ;;  %v962_v25 = vadd.s32 1888, %v6037_v5  ;;  %v2497_v23 = vsel %vm2241_vm9, %v702_v59, 0  ;;  %v963_v60 = vadd.s32 1896, %v6037_v5 }
 0x211   : > { %vm2242_vm1 = vmpackc.low %vm1474_vm11, %vm1474_vm11  ;;  %vm1443_vm13 = vcmp.lt.s32.totalorder %v1187_v43, 2600  ;;  %vm1444_vm0 = vcmp.lt.s32.totalorder %v1188_v46, 2600  ;;  %4194 = vmatprep.subr.bf16.mxu0 %v4998_v54  ;;  %v932_v51 = vadd.s32 1648, %v6037_v5  ;;  %v933_v30 = vadd.s32 1656, %v6037_v5  ;;  %v709_v46 = vld [vmem:[%s6010_s12 + $0x788] sm:$0xff] }
 0x212   : > { %4234 = vmatpush1.bf16.msra.mxu1 %v5027_v3  ;;  %v2498_v36 = vsel %vm2242_vm1, %v703_v56, 0  ;;  %vm2211_vm5 = vmpackc.low %vm1443_vm13, %vm1443_vm13  ;;  %v1219_v34 = vadd.s32 %v6034_v4, %v962_v25  ;;  %v1220_v10 = vadd.s32 %v6034_v4, %v963_v60  ;;  %v964_v19 = vadd.s32 1904, %v6037_v5 }
 0x213   : > { %v5029_v2 = vcombine.low %v2497_v23, %v2498_v36  ;;  %v5030_v15 = vcombine.high %v2497_v23, %v2498_v36  ;;  %vm2212_vm14 = vmpackc.low %vm1444_vm0, %vm1444_vm0  ;;  %v2467_v44 = vsel %vm2211_vm5, %v672_v9, 0  ;;  %v1189_v45 = vadd.s32 %v6034_v4, %v932_v51  ;;  %v678_v23 = vld [vmem:[%s6010_s12 + $0x690] sm:$0xff]  ;;  %v679_v36 = vld [vmem:[%s6010_s12 + $0x698] sm:$0xff] }
 0x214   : > { %4195 = vmatpush1.bf16.msra.mxu0 %v4997_v11  ;;  %v2468_v14 = vsel %vm2212_vm14, %v673_v21, 0  ;;  %vm1475_vm6 = vcmp.lt.s32.totalorder %v1219_v34, 2600  ;;  %v1190_v6 = vadd.s32 %v6034_v4, %v933_v30  ;;  %vm1476_vm12 = vcmp.lt.s32.totalorder %v1220_v10, 2600 }
 0x215   : > { %4235 = vmatprep.subr.bf16.mxu1 %v5030_v15  ;;  %v4999_v18 = vcombine.low %v2467_v44, %v2468_v14  ;;  %v5000_v63 = vcombine.high %v2467_v44, %v2468_v14  ;;  %vm2243_vm4 = vmpackc.low %vm1475_vm6, %vm1475_vm6  ;;  %vm1445_vm15 = vcmp.lt.s32.totalorder %v1189_v45, 2600  ;;  %v965_v16 = vadd.s32 1912, %v6037_v5  ;;  %v710_v14 = vld [vmem:[%s6010_s12 + $0x790] sm:$0xff] }
 0x216   : > { %4236 = vmatpush1.bf16.msra.mxu1 %v5029_v2  ;;  %vm2244_vm2 = vmpackc.low %vm1476_vm12, %vm1476_vm12  ;;  %v2499_v48 = vsel %vm2243_vm4, %v704_v38, 0  ;;  %vm1446_vm7 = vcmp.lt.s32.totalorder %v1190_v6, 2600  ;;  %v1221_v27 = vadd.s32 %v6034_v4, %v964_v19  ;;  %v934_v12 = vadd.s32 1664, %v6037_v5  ;;  %v711_v6 = vld [vmem:[%s6010_s12 + $0x798] sm:$0xff] }
 0x217   : > { %4196 = vmatprep.subr.bf16.mxu0 %v5000_v63  ;;  %v2500_v57 = vsel %vm2244_vm2, %v705_v58, 0  ;;  %vm2213_vm10 = vmpackc.low %vm1445_vm15, %vm1445_vm15  ;;  %v935_v53 = vadd.s32 1672, %v6037_v5  ;;  %v1222_v50 = vadd.s32 %v6034_v4, %v965_v16  ;;  %v966_v20 = vadd.s32 1920, %v6037_v5 }
 0x218   : > { %v5031_v26 = vcombine.low %v2499_v48, %v2500_v57  ;;  %v5032_v1 = vcombine.high %v2499_v48, %v2500_v57  ;;  %4197 = vmatpush1.bf16.msra.mxu0 %v4999_v18  ;;  %vm2214_vm3 = vmpackc.low %vm1446_vm7, %vm1446_vm7  ;;  %v2469_v37 = vsel %vm2213_vm10, %v674_v31, 0  ;;  %vm1477_vm8 = vcmp.lt.s32.totalorder %v1221_v27, 2600  ;;  %v680_v48 = vld [vmem:[%s6010_s12 + $0x6a0] sm:$0xff]  ;;  %v681_v57 = vld [vmem:[%s6010_s12 + $0x6a8] sm:$0xff] }
 0x219   : > { %v2470_v39 = vsel %vm2214_vm3, %v675_v52, 0  ;;  %v1191_v32 = vadd.s32 %v6034_v4, %v934_v12  ;;  %v1192_v17 = vadd.s32 %v6034_v4, %v935_v53  ;;  %vm1478_vm11 = vcmp.lt.s32.totalorder %v1222_v50, 2600  ;;  %vm2245_vm9 = vmpackc.low %vm1477_vm8, %vm1477_vm8 }
 0x21a   : > { %4237 = vmatprep.subr.bf16.mxu1 %v5032_v1  ;;  %v5001_v49 = vcombine.low %v2469_v37, %v2470_v39  ;;  %v5002_v47 = vcombine.high %v2469_v37, %v2470_v39  ;;  %vm2246_vm1 = vmpackc.low %vm1478_vm11, %vm1478_vm11  ;;  %v2501_v55 = vsel %vm2245_vm9, %v706_v62, 0  ;;  %v967_v29 = vadd.s32 1928, %v6037_v5  ;;  %v712_v39 = vld [vmem:[%s6010_s12 + $0x7a0] sm:$0xff] }
 0x21b   : > { %4238 = vmatpush1.bf16.msra.mxu1 %v5031_v26  ;;  %vm1447_vm13 = vcmp.lt.s32.totalorder %v1191_v32, 2600  ;;  %vm1448_vm0 = vcmp.lt.s32.totalorder %v1192_v17, 2600  ;;  %v2502_v13 = vsel %vm2246_vm1, %v707_v61, 0  ;;  %v1223_v24 = vadd.s32 %v6034_v4, %v966_v20  ;;  %v713_v17 = vld [vmem:[%s6010_s12 + $0x7a8] sm:$0xff] }
 0x21c   : > { %4198 = vmatprep.subr.bf16.mxu0 %v5002_v47  ;;  %vm2215_vm5 = vmpackc.low %vm1447_vm13, %vm1447_vm13  ;;  %v936_v3 = vadd.s32 1680, %v6037_v5  ;;  %v937_v41 = vadd.s32 1688, %v6037_v5  ;;  %v5033_v35 = vcombine.low %v2501_v55, %v2502_v13  ;;  %v5034_v59 = vcombine.high %v2501_v55, %v2502_v13  ;;  %v682_v55 = vld [vmem:[%s6010_s12 + $0x6b0] sm:$0xff]  ;;  %v683_v13 = vld [vmem:[%s6010_s12 + $0x6b8] sm:$0xff] }
 0x21d   : > { %4199 = vmatpush1.bf16.msra.mxu0 %v5001_v49  ;;  %vm2216_vm14 = vmpackc.low %vm1448_vm0, %vm1448_vm0  ;;  %v2471_v8 = vsel %vm2215_vm5, %v676_v40, 0  ;;  %v1224_v56 = vadd.s32 %v6034_v4, %v967_v29  ;;  %vm1479_vm6 = vcmp.lt.s32.totalorder %v1223_v24, 2600  ;;  %v968_v21 = vadd.s32 1936, %v6037_v5 }
 0x21e   : > { %v2472_v43 = vsel %vm2216_vm14, %v677_v7, 0  ;;  %v1193_v11 = vadd.s32 %v6034_v4, %v936_v3  ;;  %v1194_v54 = vadd.s32 %v6034_v4, %v937_v41  ;;  %4239 = vmatprep.subr.bf16.mxu1 %v5034_v59  ;;  %vm2247_vm4 = vmpackc.low %vm1479_vm6, %vm1479_vm6  ;;  %v969_v34 = vadd.s32 1944, %v6037_v5 }
 0x21f   : > { %v5003_v9 = vcombine.low %v2471_v8, %v2472_v43  ;;  %v5004_v25 = vcombine.high %v2471_v8, %v2472_v43  ;;  %vm1480_vm12 = vcmp.lt.s32.totalorder %v1224_v56, 2600  ;;  %4240 = vmatpush1.bf16.msra.mxu1 %v5033_v35  ;;  %v2503_v60 = vsel %vm2247_vm4, %v708_v33, 0  ;;  %v714_v43 = vld [vmem:[%s6010_s12 + $0x7b0] sm:$0xff] }
 0x220   : > { %vm2248_vm2 = vmpackc.low %vm1480_vm12, %vm1480_vm12  ;;  %vm1449_vm15 = vcmp.lt.s32.totalorder %v1193_v11, 2600  ;;  %vm1450_vm7 = vcmp.lt.s32.totalorder %v1194_v54, 2600  ;;  %v1225_v30 = vadd.s32 %v6034_v4, %v968_v21  ;;  %v938_v2 = vadd.s32 1696, %v6037_v5  ;;  %v715_v54 = vld [vmem:[%s6010_s12 + $0x7b8] sm:$0xff] }
 0x221   : > { %4200 = vmatprep.subr.bf16.mxu0 %v5004_v25  ;;  %v2504_v51 = vsel %vm2248_vm2, %v709_v46, 0  ;;  %vm2217_vm10 = vmpackc.low %vm1449_vm15, %vm1449_vm15  ;;  %v939_v15 = vadd.s32 1704, %v6037_v5  ;;  %v1226_v58 = vadd.s32 %v6034_v4, %v969_v34  ;;  %v970_v52 = vadd.s32 1952, %v6037_v5 }
 0x222   : > { %v5035_v44 = vcombine.low %v2503_v60, %v2504_v51  ;;  %v5036_v38 = vcombine.high %v2503_v60, %v2504_v51  ;;  %4201 = vmatpush1.bf16.msra.mxu0 %v5003_v9  ;;  %vm2218_vm3 = vmpackc.low %vm1450_vm7, %vm1450_vm7  ;;  %v2473_v10 = vsel %vm2217_vm10, %v678_v23, 0  ;;  %vm1481_vm8 = vcmp.lt.s32.totalorder %v1225_v30, 2600  ;;  %v684_v60 = vld [vmem:[%s6010_s12 + $0x6c0] sm:$0xff]  ;;  %v685_v51 = vld [vmem:[%s6010_s12 + $0x6c8] sm:$0xff] }
 0x223   : > { %v2474_v45 = vsel %vm2218_vm3, %v679_v36, 0  ;;  %v1195_v18 = vadd.s32 %v6034_v4, %v938_v2  ;;  %v1196_v63 = vadd.s32 %v6034_v4, %v939_v15  ;;  %vm1482_vm11 = vcmp.lt.s32.totalorder %v1226_v58, 2600  ;;  %vm2249_vm9 = vmpackc.low %vm1481_vm8, %vm1481_vm8 }
 0x224   : > { %4241 = vmatprep.subr.bf16.mxu1 %v5036_v38  ;;  %v5005_v31 = vcombine.low %v2473_v10, %v2474_v45  ;;  %v5006_v19 = vcombine.high %v2473_v10, %v2474_v45  ;;  %vm2250_vm1 = vmpackc.low %vm1482_vm11, %vm1482_vm11  ;;  %v2505_v16 = vsel %vm2249_vm9, %v710_v14, 0  ;;  %v971_v27 = vadd.s32 1960, %v6037_v5  ;;  %v716_v45 = vld [vmem:[%s6010_s12 + $0x7c0] sm:$0xff] }
 0x225   : > { %4242 = vmatpush1.bf16.msra.mxu1 %v5035_v44  ;;  %vm1451_vm13 = vcmp.lt.s32.totalorder %v1195_v18, 2600  ;;  %vm1452_vm0 = vcmp.lt.s32.totalorder %v1196_v63, 2600  ;;  %v2506_v12 = vsel %vm2250_vm1, %v711_v6, 0  ;;  %v1227_v53 = vadd.s32 %v6034_v4, %v970_v52  ;;  %v717_v63 = vld [vmem:[%s6010_s12 + $0x7c8] sm:$0xff] }
 0x226   : > { %4202 = vmatprep.subr.bf16.mxu0 %v5006_v19  ;;  %vm2219_vm5 = vmpackc.low %vm1451_vm13, %vm1451_vm13  ;;  %v940_v26 = vadd.s32 1712, %v6037_v5  ;;  %v941_v1 = vadd.s32 1720, %v6037_v5  ;;  %v5037_v37 = vcombine.low %v2505_v16, %v2506_v12  ;;  %v5038_v62 = vcombine.high %v2505_v16, %v2506_v12  ;;  %v686_v16 = vld [vmem:[%s6010_s12 + $0x6d0] sm:$0xff]  ;;  %v687_v12 = vld [vmem:[%s6010_s12 + $0x6d8] sm:$0xff] }
 0x227   : > { %4203 = vmatpush1.bf16.msra.mxu0 %v5005_v31  ;;  %vm2220_vm14 = vmpackc.low %vm1452_vm0, %vm1452_vm0  ;;  %v2475_v50 = vsel %vm2219_vm5, %v680_v48, 0  ;;  %v1228_v61 = vadd.s32 %v6034_v4, %v971_v27  ;;  %vm1483_vm6 = vcmp.lt.s32.totalorder %v1227_v53, 2600  ;;  %v972_v7 = vadd.s32 1968, %v6037_v5 }
 0x228   : > { %v2476_v32 = vsel %vm2220_vm14, %v681_v57, 0  ;;  %v1197_v49 = vadd.s32 %v6034_v4, %v940_v26  ;;  %v1198_v47 = vadd.s32 %v6034_v4, %v941_v1  ;;  %4243 = vmatprep.subr.bf16.mxu1 %v5038_v62  ;;  %vm2251_vm4 = vmpackc.low %vm1483_vm6, %vm1483_vm6  ;;  %v973_v24 = vadd.s32 1976, %v6037_v5 }
 0x229   : > { %v5007_v40 = vcombine.low %v2475_v50, %v2476_v32  ;;  %v5008_v20 = vcombine.high %v2475_v50, %v2476_v32  ;;  %vm1484_vm12 = vcmp.lt.s32.totalorder %v1228_v61, 2600  ;;  %4244 = vmatpush1.bf16.msra.mxu1 %v5037_v37  ;;  %v2507_v29 = vsel %vm2251_vm4, %v712_v39, 0  ;;  %v718_v32 = vld [vmem:[%s6010_s12 + $0x7d0] sm:$0xff] }
 0x22a   : > { %vm2252_vm2 = vmpackc.low %vm1484_vm12, %vm1484_vm12  ;;  %vm1453_vm15 = vcmp.lt.s32.totalorder %v1197_v49, 2600  ;;  %vm1454_vm7 = vcmp.lt.s32.totalorder %v1198_v47, 2600  ;;  %v1229_v41 = vadd.s32 %v6034_v4, %v972_v7  ;;  %v942_v35 = vadd.s32 1728, %v6037_v5  ;;  %v719_v47 = vld [vmem:[%s6010_s12 + $0x7d8] sm:$0xff] }
 0x22b   : > { %4204 = vmatprep.subr.bf16.mxu0 %v5008_v20  ;;  %v2508_v3 = vsel %vm2252_vm2, %v713_v17, 0  ;;  %vm2221_vm10 = vmpackc.low %vm1453_vm15, %vm1453_vm15  ;;  %v943_v59 = vadd.s32 1736, %v6037_v5  ;;  %v1230_v46 = vadd.s32 %v6034_v4, %v973_v24  ;;  %v974_v36 = vadd.s32 1984, %v6037_v5 }
 0x22c   : > { %v5039_v8 = vcombine.low %v2507_v29, %v2508_v3  ;;  %v5040_v33 = vcombine.high %v2507_v29, %v2508_v3  ;;  %4205 = vmatpush1.bf16.msra.mxu0 %v5007_v40  ;;  %vm2222_vm3 = vmpackc.low %vm1454_vm7, %vm1454_vm7  ;;  %v2477_v56 = vsel %vm2221_vm10, %v682_v55, 0  ;;  %vm1485_vm8 = vcmp.lt.s32.totalorder %v1229_v41, 2600  ;;  %v688_v29 = vld [vmem:[%s6010_s12 + $0x6e0] sm:$0xff]  ;;  %v689_v3 = vld [vmem:[%s6010_s12 + $0x6e8] sm:$0xff] }
 0x22d   : > { %v2478_v11 = vsel %vm2222_vm3, %v683_v13, 0  ;;  %v1199_v9 = vadd.s32 %v6034_v4, %v942_v35  ;;  %v1200_v25 = vadd.s32 %v6034_v4, %v943_v59  ;;  %vm1486_vm11 = vcmp.lt.s32.totalorder %v1230_v46, 2600  ;;  %vm2253_vm9 = vmpackc.low %vm1485_vm8, %vm1485_vm8 }
 0x22e   : > { %4245 = vmatprep.subr.bf16.mxu1 %v5040_v33  ;;  %v5009_v23 = vcombine.low %v2477_v56, %v2478_v11  ;;  %v5010_v21 = vcombine.high %v2477_v56, %v2478_v11  ;;  %vm2254_vm1 = vmpackc.low %vm1486_vm11, %vm1486_vm11  ;;  %v2509_v34 = vsel %vm2253_vm9, %v714_v43, 0  ;;  %v975_v30 = vadd.s32 1992, %v6037_v5  ;;  %v720_v11 = vld [vmem:[%s6010_s12 + $0x7e0] sm:$0xff] }
 0x22f   : > { %4246 = vmatpush1.bf16.msra.mxu1 %v5039_v8  ;;  %vm1455_vm13 = vcmp.lt.s32.totalorder %v1199_v9, 2600  ;;  %vm1456_vm0 = vcmp.lt.s32.totalorder %v1200_v25, 2600  ;;  %v2510_v2 = vsel %vm2254_vm1, %v715_v54, 0  ;;  %v1231_v15 = vadd.s32 %v6034_v4, %v974_v36  ;;  %v721_v25 = vld [vmem:[%s6010_s12 + $0x7e8] sm:$0xff] }
 0x230   : > { %4206 = vmatprep.subr.bf16.mxu0 %v5010_v21  ;;  %vm2223_vm5 = vmpackc.low %vm1455_vm13, %vm1455_vm13  ;;  %v944_v44 = vadd.s32 1744, %v6037_v5  ;;  %v945_v38 = vadd.s32 1752, %v6037_v5  ;;  %v5041_v10 = vcombine.low %v2509_v34, %v2510_v2  ;;  %v5042_v14 = vcombine.high %v2509_v34, %v2510_v2  ;;  %v690_v34 = vld [vmem:[%s6010_s12 + $0x6f0] sm:$0xff]  ;;  %v691_v2 = vld [vmem:[%s6010_s12 + $0x6f8] sm:$0xff] }
 0x231   : > { %4207 = vmatpush1.bf16.msra.mxu0 %v5009_v23  ;;  %vm2224_vm14 = vmpackc.low %vm1456_vm0, %vm1456_vm0  ;;  %v2479_v58 = vsel %vm2223_vm5, %v684_v60, 0  ;;  %v1232_v6 = vadd.s32 %v6034_v4, %v975_v30  ;;  %vm1487_vm6 = vcmp.lt.s32.totalorder %v1231_v15, 2600  ;;  %v976_v57 = vadd.s32 2000, %v6037_v5 }
 0x232   : > { %v2480_v18 = vsel %vm2224_vm14, %v685_v51, 0  ;;  %v1201_v31 = vadd.s32 %v6034_v4, %v944_v44  ;;  %v1202_v19 = vadd.s32 %v6034_v4, %v945_v38  ;;  %4247 = vmatprep.subr.bf16.mxu1 %v5042_v14  ;;  %vm2255_vm4 = vmpackc.low %vm1487_vm6, %vm1487_vm6  ;;  %v977_v53 = vadd.s32 2008, %v6037_v5 }
 0x233   : > { %v5011_v48 = vcombine.low %v2479_v58, %v2480_v18  ;;  %v5012_v52 = vcombine.high %v2479_v58, %v2480_v18  ;;  %vm1488_vm12 = vcmp.lt.s32.totalorder %v1232_v6, 2600  ;;  %4248 = vmatpush1.bf16.msra.mxu1 %v5041_v10  ;;  %v2511_v27 = vsel %vm2255_vm4, %v716_v45, 0  ;;  %v722_v18 = vld [vmem:[%s6010_s12 + $0x7f0] sm:$0xff] }
 0x234   : > { %vm2256_vm2 = vmpackc.low %vm1488_vm12, %vm1488_vm12  ;;  %vm1457_vm15 = vcmp.lt.s32.totalorder %v1201_v31, 2600  ;;  %vm1458_vm7 = vcmp.lt.s32.totalorder %v1202_v19, 2600  ;;  %v1233_v1 = vadd.s32 %v6034_v4, %v976_v57  ;;  %v946_v37 = vadd.s32 1760, %v6037_v5  ;;  %v723_v19 = vld [vmem:[%s6010_s12 + $0x7f8] sm:$0xff] }
 0x235   : > { %4208 = vmatprep.subr.bf16.mxu0 %v5012_v52  ;;  %v2512_v26 = vsel %vm2256_vm2, %v717_v63, 0  ;;  %vm2225_vm10 = vmpackc.low %vm1457_vm15, %vm1457_vm15  ;;  %v947_v62 = vadd.s32 1768, %v6037_v5  ;;  %v1234_v17 = vadd.s32 %v6034_v4, %v977_v53  ;;  %v978_v13 = vadd.s32 2016, %v6037_v5 }
 0x236   : > { %v5043_v50 = vcombine.low %v2511_v27, %v2512_v26  ;;  %v5044_v39 = vcombine.high %v2511_v27, %v2512_v26  ;;  %4209 = vmatpush1.bf16.msra.mxu0 %v5011_v48  ;;  %vm2226_vm3 = vmpackc.low %vm1458_vm7, %vm1458_vm7  ;;  %v2481_v61 = vsel %vm2225_vm10, %v686_v16, 0  ;;  %vm1489_vm8 = vcmp.lt.s32.totalorder %v1233_v1, 2600 }
 0x237   : > { %v2482_v49 = vsel %vm2226_vm3, %v687_v12, 0  ;;  %v1203_v40 = vadd.s32 %v6034_v4, %v946_v37  ;;  %v1204_v20 = vadd.s32 %v6034_v4, %v947_v62  ;;  %vm1490_vm11 = vcmp.lt.s32.totalorder %v1234_v17, 2600  ;;  %vm2257_vm9 = vmpackc.low %vm1489_vm8, %vm1489_vm8 }
 0x238   : > { %4249 = vmatprep.subr.bf16.mxu1 %v5044_v39  ;;  %v5013_v55 = vcombine.low %v2481_v61, %v2482_v49  ;;  %v5014_v7 = vcombine.high %v2481_v61, %v2482_v49  ;;  %vm2258_vm1 = vmpackc.low %vm1490_vm11, %vm1490_vm11  ;;  %v2513_v24 = vsel %vm2257_vm9, %v718_v32, 0  ;;  %v979_v41 = vadd.s32 2024, %v6037_v5 }
 0x239   : > { %4250 = vmatpush1.bf16.msra.mxu1 %v5043_v50  ;;  %vm1459_vm13 = vcmp.lt.s32.totalorder %v1203_v40, 2600  ;;  %vm1460_vm0 = vcmp.lt.s32.totalorder %v1204_v20, 2600  ;;  %v2514_v35 = vsel %vm2258_vm1, %v719_v47, 0  ;;  %v1235_v59 = vadd.s32 %v6034_v4, %v978_v13 }
 0x23a   : > { %4210 = vmatprep.subr.bf16.mxu0 %v5014_v7  ;;  %vm2227_vm5 = vmpackc.low %vm1459_vm13, %vm1459_vm13  ;;  %v948_v8 = vadd.s32 1776, %v6037_v5  ;;  %v949_v33 = vadd.s32 1784, %v6037_v5  ;;  %v5045_v56 = vcombine.low %v2513_v24, %v2514_v35  ;;  %v5046_v43 = vcombine.high %v2513_v24, %v2514_v35 }
 0x23b   : > { %4211 = vmatpush1.bf16.msra.mxu0 %v5013_v55  ;;  %vm2228_vm14 = vmpackc.low %vm1460_vm0, %vm1460_vm0  ;;  %v2483_v46 = vsel %vm2227_vm5, %v688_v29, 0  ;;  %v1236_v54 = vadd.s32 %v6034_v4, %v979_v41  ;;  %vm1491_vm6 = vcmp.lt.s32.totalorder %v1235_v59, 2600  ;;  %v980_v51 = vadd.s32 2032, %v6037_v5 }
 0x23c   : > { %v2484_v9 = vsel %vm2228_vm14, %v689_v3, 0  ;;  %v1205_v23 = vadd.s32 %v6034_v4, %v948_v8  ;;  %v1206_v21 = vadd.s32 %v6034_v4, %v949_v33  ;;  %4251 = vmatprep.subr.bf16.mxu1 %v5046_v43  ;;  %vm2259_vm4 = vmpackc.low %vm1491_vm6, %vm1491_vm6  ;;  %v981_v15 = vadd.s32 2040, %v6037_v5 }
 0x23d   : > { %v5015_v60 = vcombine.low %v2483_v46, %v2484_v9  ;;  %v5016_v36 = vcombine.high %v2483_v46, %v2484_v9  ;;  %vm1492_vm12 = vcmp.lt.s32.totalorder %v1236_v54, 2600  ;;  %4252 = vmatpush1.bf16.msra.mxu1 %v5045_v56  ;;  %v2515_v30 = vsel %vm2259_vm4, %v720_v11, 0 }
 0x23e   : > { %vm2260_vm2 = vmpackc.low %vm1492_vm12, %vm1492_vm12  ;;  %vm1461_vm15 = vcmp.lt.s32.totalorder %v1205_v23, 2600  ;;  %vm1462_vm7 = vcmp.lt.s32.totalorder %v1206_v21, 2600  ;;  %v1237_v38 = vadd.s32 %v6034_v4, %v980_v51  ;;  %v2532_v10 = vadd.s32 1536, %v6256_v22 }
 0x23f   : > { %4212 = vmatprep.subr.bf16.mxu0 %v5016_v36  ;;  %v2516_v44 = vsel %vm2260_vm2, %v721_v25, 0  ;;  %vm2229_vm10 = vmpackc.low %vm1461_vm15, %vm1461_vm15  ;;  %v2534_v14 = vadd.s32 1792, %v6256_v22  ;;  %v1238_v63 = vadd.s32 %v6034_v4, %v981_v15  ;;  %v2657_v15 = vld [vmem:[#allocation2 + $0x8] sm:$0xff]  ;;  %vm5708_vm15 = vmmov (!%p5083_p0), 0  }
 0x240   : > { %v5047_v58 = vcombine.low %v2515_v30, %v2516_v44  ;;  %v5048_v45 = vcombine.high %v2515_v30, %v2516_v44  ;;  %4213 = vmatpush1.bf16.msra.mxu0 %v5015_v60  ;;  %vm2230_vm3 = vmpackc.low %vm1462_vm7, %vm1462_vm7  ;;  %v2485_v6 = vsel %vm2229_vm10, %v690_v34, 0  ;;  %vm1493_vm8 = vcmp.lt.s32.totalorder %v1237_v38, 2600  ;;  %v2656_v34 = vld [vmem:[#allocation2] sm:$0xff] }
 0x241   : > { %v2486_v31 = vsel %vm2230_vm3, %v691_v2, 0  ;;  %v2548_v48 = vadd.s32 %v2532_v10, %v6034_v4  ;;  %vm1494_vm11 = vcmp.lt.s32.totalorder %v1238_v63, 2600  ;;  %vm2261_vm9 = vmpackc.low %vm1493_vm8, %vm1493_vm8  ;;  %v2550_v22 = vadd.s32 %v2534_v14, %v6034_v4  ;;  %v4287_v63 = vld [vmem:[#allocation6 + $0x18] sm:$0xff] (!%p5083_p0) }
 0x242   : > { %4253 = vmatprep.subr.bf16.mxu1 %v5048_v45  ;;  %v5017_v52 = vcombine.low %v2485_v6, %v2486_v31  ;;  %v5018_v16 = vcombine.high %v2485_v6, %v2486_v31  ;;  %vm2262_vm1 = vmpackc.low %vm1494_vm11, %vm1494_vm11  ;;  %v2517_v57 = vsel %vm2261_vm9, %v722_v18, 0  ;;  %v4276_v6 = vld [vmem:[%s8731_s16] sm:$0xff] (!%p5083_p0)  ;;  %v5706_v31 = vmov (!%p5083_p0), 0  }
 0x243   : > { %4254 = vmatpush1.bf16.msra.mxu1 %v5047_v58  ;;  %vm2568_vm13 = vcmp.ge.s32.totalorder %v2548_v48, %v6640_v28  ;;  %vm2588_vm0 = vcmp.lt.s32.totalorder %v2548_v48, %v6671_v0  ;;  %v2518_v27 = vsel %vm2262_vm1, %v723_v19, 0  ;;  %vm2590_vm14 = vcmp.lt.s32.totalorder %v2550_v22, %v6671_v0  ;;  %v4285_v18 = vld [vmem:[#allocation6 + $0x8] sm:$0xff] (!%p5083_p0)  ;;  %5415 = vset.pattern.permute.xlu0 (!%p5083_p0), %v5706_v31  ;;  %v4284_v48 = vld [vmem:[#allocation6] sm:$0xff] (!%p5083_p0) }
 0x244   : > { %4214 = vmatprep.subr.bf16.mxu0 %v5018_v16  ;;  %vm2604_vm5 = vmand %vm2568_vm13, %vm2588_vm0  ;;  %v5049_v12 = vcombine.low %v2517_v57, %v2518_v27  ;;  %v5050_v53 = vcombine.high %v2517_v57, %v2518_v27  ;;  %vm2570_vm12 = vcmp.ge.s32.totalorder %v2550_v22, %v6640_v28  ;;  %v5180_v19 = vpack.c.bf16 (!%p5083_p0), %v4287_v63, %v4285_v18  ;;  %v4289_v16 = vld [vmem:[#allocation6 + $0x28] sm:$0xff] (!%p5083_p0)  ;;  %v4291_v57 = vld [vmem:[#allocation6 + $0x38] sm:$0xff] (!%p5083_p0) }
 0x245   : > { %4215 = vmatpush1.bf16.msra.mxu0 %v5017_v52  ;;  %vm5077_vm6 = vmpackc.low %vm2604_vm5, %vm2604_vm5  ;;  %v4286_v52 = vld [vmem:[#allocation6 + $0x10] sm:$0xff] (!%p5083_p0)  ;;  %4279 = vperm.xlu0 (!%p5083_p0), %5415, %v4276_v6   ;;  %v4288_v27 = vld [vmem:[#allocation6 + $0x20] sm:$0xff] (!%p5083_p0) }
 0x246   : > { %4255 = vmatprep.subr.bf16.mxu1 %v5050_v53  ;;  %vm2606_vm4 = vmand %vm2570_vm12, %vm2590_vm14  ;;  %v5182_v22 = vpack.c.bf16 (!%p5083_p0), %v4286_v52, %v4284_v48  ;;  %5181 = vmatprep.subr.bf16.mxu0 (!%p5083_p0), %v5180_v19  ;;  %v5184_v53 = vpack.c.bf16 (!%p5083_p0), %v4291_v57, %v4289_v16  ;;  %v4319_v6 = vld [vmem:[#allocation6 + $0x118] sm:$0xff] (!%p5083_p0)  ;;  %v4437_v31 = vld [vmem:[#allocation9 + $0x20] sm:$0xff] (!%p5083_p0) }
 0x247   : > { %4256 = vmatpush1.bf16.msra.mxu1 %v5049_v12  ;;  %vm5081_vm2 = vmpackc.low %vm2606_vm4, %vm2606_vm4  ;;  %v4290_v12 = vld [vmem:[#allocation6 + $0x30] sm:$0xff] (!%p5083_p0)  ;;  %v4456_v16 = vld [vmem:[#allocation9 + $0xb8] sm:$0xff] (!%p5083_p0) }
 0x248   : > { %5078 = vmatmul.mubr.msk.bf16.vlgmr.msra.gmra.mrb[12].mxu0 %vm5077_vm6, %v8717_v42  ;;  %v4438_v19 = vld [vmem:[#allocation9 + $0x28] sm:$0xff] (!%p5083_p0)  ;;  %v4455_v52 = vld [vmem:[#allocation9 + $0xb0] sm:$0xff] (!%p5083_p0)  ;;  %v4316_v57 = vld [vmem:[#allocation6 + $0x100] sm:$0xff] (!%p5083_p0) }
 0x249   : > { %5183 = vmatpush1.bf16.msra.mxu0 (!%p5083_p0), %v5182_v22 }
 0x24a   : > { %5082 = vmatmul.mubr.msk.bf16.vlgmr.msra.gmra.mrb[12].mxu1 %vm5081_vm2, %v8717_v42  ;;  %5185 = vmatprep.subr.bf16.mxu0 (!%p5083_p0), %v5184_v53  ;;  %v4323_v53 = vld [vmem:[#allocation6 + $0x138] sm:$0xff] (!%p5083_p0) }
 0x24b   : > { %v3972_v4 = vpop.f32.mrb[0].mxu0 }
 0x24c   : > { %v3974_v26 = vpop.f32.mrb[1].mxu0 }
 0x24d   : > { %v4013_v1 = vpop.f32.mrb[0].mxu1  ;;  %v3976_v37 = vpop.f32.mrb[2].mxu0 }
 0x24e   : > { %v4014_v62 = vadd.f32 %v4013_v1, %v3972_v4  ;;  %v4015_v0 = vpop.f32.mrb[1].mxu1  ;;  %v3977_v50 = vpop.f32.mrb[3].mxu0  ;;  %v4293_v4 = vld [vmem:[#allocation6 + $0x48] sm:$0xff] (!%p5083_p0)  ;;  %v5186_v1 = vpack.c.bf16 (!%p5083_p0), %v4290_v12, %v4288_v27  ;;  %v4318_v27 = vld [vmem:[#allocation6 + $0x110] sm:$0xff] (!%p5083_p0) }
 0x24f   : > { %v4016_v39 = vadd.f32 %v4015_v0, %v3974_v26  ;;  %v4017_v61 = vpop.f32.mrb[2].mxu1  ;;  %v4295_v26 = vld [vmem:[#allocation6 + $0x58] sm:$0xff] (!%p5083_p0)  ;;  %v4294_v0 = vld [vmem:[#allocation6 + $0x50] sm:$0xff] (!%p5083_p0)  ;;  %v4297_v50 = vld [vmem:[#allocation6 + $0x68] sm:$0xff] (!%p5083_p0) }
 0x250   : > { %v4018_v32 = vpop.f32.mrb[3].mxu1  ;;  %v5188_v37 = vpack.c.bf16 (!%p5083_p0), %v4295_v26, %v4293_v4  ;;  %5187 = vmatpush1.bf16.msra.mxu0 (!%p5083_p0), %v5186_v1  ;;  %v4321_v12 = vld [vmem:[#allocation6 + $0x128] sm:$0xff] (!%p5083_p0)  ;;  %v5254_v4 = vpack.c.bf16 (!%p5083_p0), %v4438_v19, %v4437_v31  ;;  %v5256_v26 = vpack.c.bf16 (!%p5083_p0), %v4456_v16, %v4455_v52  ;;  %v4439_v1 = vld [vmem:[#allocation9 + $0x30] sm:$0xff] (!%p5083_p0) }
 0x251   : > { %v4342_v31 = vld [vmem:[#allocation6 + $0x1d0] sm:$0xff] (!%p5083_p0)  ;;  %v4345_v19 = vld [vmem:[#allocation6 + $0x1e8] sm:$0xff] (!%p5083_p0) }
 0x252   : > { %5189 = vmatprep.subr.bf16.mxu0 (!%p5083_p0), %v5188_v37  ;;  %v4440_v37 = vld [vmem:[#allocation9 + $0x38] sm:$0xff] (!%p5083_p0) }
 0x291   : > { %v4054_v17 = vpop.f32.mrb[4].mxu0 }
 0x292   : > { %v4055_v28 = vadd.f32 %v4054_v17, %v4014_v62  ;;  %v4056_v49 = vpop.f32.mrb[5].mxu0  ;;  %v4292_v62 = vld [vmem:[#allocation6 + $0x40] sm:$0xff] (!%p5083_p0) }
 0x293   : > { %v4095_v47 = vpop.f32.mrb[4].mxu1  ;;  %v4057_v40 = vadd.f32 %v4056_v49, %v4016_v39  ;;  %v4058_v20 = vpop.f32.mrb[6].mxu0  ;;  %v4299_v39 = vld [vmem:[#allocation6 + $0x78] sm:$0xff] (!%p5083_p0)  ;;  %v5190_v61 = vpack.c.bf16 (!%p5083_p0), %v4294_v0, %v4292_v62  ;;  %v4296_v17 = vld [vmem:[#allocation6 + $0x60] sm:$0xff] (!%p5083_p0)  ;;  %v4301_v49 = vld [vmem:[#allocation6 + $0x88] sm:$0xff] (!%p5083_p0)  ;;  %v5214_v62 = vpack.c.bf16 (!%p5083_p0), %v4318_v27, %v4316_v57 }
 0x294   : > { %v4096_v55 = vadd.f32 %v4095_v47, %v4055_v28  ;;  %v4097_v7 = vpop.f32.mrb[5].mxu1  ;;  %v4059_v29 = vpop.f32.mrb[7].mxu0  ;;  %v5192_v32 = vpack.c.bf16 (!%p5083_p0), %v4299_v39, %v4297_v50  ;;  %v4298_v28 = vld [vmem:[#allocation6 + $0x70] sm:$0xff] (!%p5083_p0)  ;;  %v4303_v47 = vld [vmem:[#allocation6 + $0x98] sm:$0xff] (!%p5083_p0)  ;;  %v4457_v0 = vld [vmem:[#allocation9 + $0xc0] sm:$0xff] (!%p5083_p0)  ;;  %v5216_v39 = vpack.c.bf16 (!%p5083_p0), %v4323_v53, %v4321_v12 }
 0x295   : > { %v4098_v42 = vadd.f32 %v4097_v7, %v4057_v40  ;;  %v4099_v13 = vpop.f32.mrb[6].mxu1  ;;  %5191 = vmatpush1.bf16.msra.mxu0 (!%p5083_p0), %v5190_v61  ;;  %v5194_v40 = vpack.c.bf16 (!%p5083_p0), %v4298_v28, %v4296_v17  ;;  %v5196_v20 = vpack.c.bf16 (!%p5083_p0), %v4303_v47, %v4301_v49  ;;  %v4302_v7 = vld [vmem:[#allocation6 + $0x90] sm:$0xff] (!%p5083_p0)  ;;  %v4305_v29 = vld [vmem:[#allocation6 + $0xa8] sm:$0xff] (!%p5083_p0)  ;;  %v4320_v61 = vld [vmem:[#allocation6 + $0x120] sm:$0xff] (!%p5083_p0)  ;;  %v5258_v49 = vpack.c.bf16 (!%p5083_p0), %v4440_v37, %v4439_v1 }
 0x296   : > { %v4100_v24 = vpop.f32.mrb[7].mxu1  ;;  %5193 = vmatprep.subr.bf16.mxu0 (!%p5083_p0), %v5192_v32  ;;  %v4458_v50 = vld [vmem:[#allocation9 + $0xc8] sm:$0xff] (!%p5083_p0)  ;;  %v4327_v28 = vld [vmem:[#allocation6 + $0x158] sm:$0xff] (!%p5083_p0)  ;;  %v4445_v37 = vld [vmem:[#allocation9 + $0x60] sm:$0xff] (!%p5083_p0) }
 0x297   : > { %v4322_v32 = vld [vmem:[#allocation6 + $0x130] sm:$0xff] (!%p5083_p0)  ;;  %v4325_v17 = vld [vmem:[#allocation6 + $0x148] sm:$0xff] (!%p5083_p0)  ;;  %v5260_v47 = vpack.c.bf16 (!%p5083_p0), %v4458_v50, %v4457_v0 }
 0x298   : > { %v4346_v57 = vld [vmem:[#allocation6 + $0x1f0] sm:$0xff] (!%p5083_p0) }
 0x299   : > { %5195 = vmatpush1.bf16.msra.mxu0 (!%p5083_p0), %v5194_v40  ;;  %v4441_v40 = vld [vmem:[#allocation9 + $0x40] sm:$0xff] (!%p5083_p0)  ;;  %v4463_v50 = vld [vmem:[#allocation9 + $0xf0] sm:$0xff] (!%p5083_p0) }
 0x29a   : > { %5197 = vmatprep.subr.bf16.mxu0 (!%p5083_p0), %v5196_v20  ;;  %v4442_v20 = vld [vmem:[#allocation9 + $0x48] sm:$0xff] (!%p5083_p0) }
 0x2d2   : > { %v4136_v3 = vpop.f32.mrb[8].mxu0 }
 0x2d3   : > { %v4137_v41 = vadd.f32 %v4136_v3, %v4096_v55  ;;  %v4138_v35 = vpop.f32.mrb[9].mxu0  ;;  %v4300_v55 = vld [vmem:[#allocation6 + $0x80] sm:$0xff] (!%p5083_p0) }
 0x2d4   : > { %v4177_v59 = vpop.f32.mrb[8].mxu1  ;;  %v4139_v8 = vadd.f32 %v4138_v35, %v4098_v42  ;;  %v4140_v33 = vpop.f32.mrb[10].mxu0  ;;  %v4307_v42 = vld [vmem:[#allocation6 + $0xb8] sm:$0xff] (!%p5083_p0)  ;;  %v5198_v13 = vpack.c.bf16 (!%p5083_p0), %v4302_v7, %v4300_v55  ;;  %v4304_v3 = vld [vmem:[#allocation6 + $0xa0] sm:$0xff] (!%p5083_p0)  ;;  %v4309_v35 = vld [vmem:[#allocation6 + $0xc8] sm:$0xff] (!%p5083_p0)  ;;  %v5218_v55 = vpack.c.bf16 (!%p5083_p0), %v4322_v32, %v4320_v61 }
 0x2d5   : > { %v4178_v56 = vadd.f32 %v4177_v59, %v4137_v41  ;;  %v4179_v43 = vpop.f32.mrb[9].mxu1  ;;  %v4141_v46 = vpop.f32.mrb[11].mxu0  ;;  %v5200_v24 = vpack.c.bf16 (!%p5083_p0), %v4307_v42, %v4305_v29  ;;  %v4306_v41 = vld [vmem:[#allocation6 + $0xb0] sm:$0xff] (!%p5083_p0)  ;;  %v4311_v59 = vld [vmem:[#allocation6 + $0xd8] sm:$0xff] (!%p5083_p0)  ;;  %v5220_v42 = vpack.c.bf16 (!%p5083_p0), %v4327_v28, %v4325_v17 }
 0x2d6   : > { %v4180_v11 = vadd.f32 %v4179_v43, %v4139_v8  ;;  %v4181_v54 = vpop.f32.mrb[10].mxu1  ;;  %5199 = vmatpush1.bf16.msra.mxu0 (!%p5083_p0), %v5198_v13  ;;  %v5202_v8 = vpack.c.bf16 (!%p5083_p0), %v4306_v41, %v4304_v3  ;;  %v5204_v33 = vpack.c.bf16 (!%p5083_p0), %v4311_v59, %v4309_v35  ;;  %v4310_v43 = vld [vmem:[#allocation6 + $0xd0] sm:$0xff] (!%p5083_p0)  ;;  %v4313_v46 = vld [vmem:[#allocation6 + $0xe8] sm:$0xff] (!%p5083_p0)  ;;  %v4460_v29 = vld [vmem:[#allocation9 + $0xd8] sm:$0xff] (!%p5083_p0)  ;;  %v5262_v35 = vpack.c.bf16 (!%p5083_p0), %v4442_v20, %v4441_v40 }
 0x2d7   : > { %v4182_v9 = vpop.f32.mrb[11].mxu1  ;;  %5201 = vmatprep.subr.bf16.mxu0 (!%p5083_p0), %v5200_v24  ;;  %v4449_v54 = vld [vmem:[#allocation9 + $0x80] sm:$0xff] (!%p5083_p0)  ;;  %v4459_v7 = vld [vmem:[#allocation9 + $0xd0] sm:$0xff] (!%p5083_p0)  ;;  %v4448_v17 = vld [vmem:[#allocation9 + $0x78] sm:$0xff] (!%p5083_p0)  ;;  %v4356_v20 = vsub.s32 (!%p5083_p0), 1, %v6037_v5 }
 0x2d8   : > { %v4450_v9 = vld [vmem:[#allocation9 + $0x88] sm:$0xff] (!%p5083_p0)  ;;  %v4324_v13 = vld [vmem:[#allocation6 + $0x140] sm:$0xff] (!%p5083_p0)  ;;  %v4331_v41 = vld [vmem:[#allocation6 + $0x178] sm:$0xff] (!%p5083_p0)  ;;  %v5264_v59 = vpack.c.bf16 (!%p5083_p0), %v4460_v29, %v4459_v7 }
 0x2d9   : > { %v4326_v24 = vld [vmem:[#allocation6 + $0x150] sm:$0xff] (!%p5083_p0)  ;;  %v4329_v3 = vld [vmem:[#allocation6 + $0x168] sm:$0xff] (!%p5083_p0)  ;;  %v4348_v40 = vld [vmem:[#allocation8] sm:$0x3] (!%p5083_p0) }
 0x2da   : > { %5203 = vmatpush1.bf16.msra.mxu0 (!%p5083_p0), %v5202_v8  ;;  %v4443_v8 = vld [vmem:[#allocation9 + $0x50] sm:$0xff] (!%p5083_p0)  ;;  %v4357_v7 = vrot.slane (!%p5083_p0), %v4348_v40, %v4356_v20 }
 0x2db   : > { %5205 = vmatprep.subr.bf16.mxu0 (!%p5083_p0), %v5204_v33  ;;  %v4444_v33 = vld [vmem:[#allocation9 + $0x58] sm:$0xff] (!%p5083_p0)  ;;  %v4447_v32 = vld [vmem:[#allocation9 + $0x70] sm:$0xff] (!%p5083_p0) }
 0x2dc   : > { %v5274_v28 = vpack.c.bf16 (!%p5083_p0), %v4448_v17, %v4447_v32 }
 0x31b   : > { %v4218_v25 = vpop.f32.mrb[12].mxu0 }
 0x31c   : > { %v4219_v23 = vadd.f32 %v4218_v25, %v4178_v56  ;;  %v4220_v21 = vpop.f32.mrb[13].mxu0  ;;  %v4308_v56 = vld [vmem:[#allocation6 + $0xc0] sm:$0xff] (!%p5083_p0) }
 0x31d   : > { %v4221_v60 = vadd.f32 %v4220_v21, %v4180_v11  ;;  %v4222_v36 = vpop.f32.mrb[14].mxu0  ;;  %v4259_v51 = vpop.f32.mrb[12].mxu1  ;;  %4273 = sbr.rel (%p5083_p0) target bundleno = 1493 (0x5d5), region = 96  ;;  %v4315_v11 = vld [vmem:[#allocation6 + $0xf8] sm:$0xff] (!%p5083_p0)  ;;  %v4312_v25 = vld [vmem:[#allocation6 + $0xe0] sm:$0xff] (!%p5083_p0) }
 0x31e   : > { %v4223_v30 = vpop.f32.mrb[15].mxu0  ;;  %v4260_v2 = vadd.f32 %v4259_v51, %v4219_v23  ;;  %v4261_v44 = vpop.f32.mrb[13].mxu1  ;;  %v5244_v23 = vpack.c.bf16 (!%p5083_p0), %v4450_v9, %v4449_v54  ;;  %v4433_v21 = vld [vmem:[#allocation9] sm:$0xff] (!%p5083_p0)  ;;  %v4451_v36 = vld [vmem:[#allocation9 + $0x90] sm:$0xff] (!%p5083_p0) }
 0x31f   : > { %v4262_v38 = vadd.f32 %v4261_v44, %v4221_v60  ;;  %v4263_v10 = vpop.f32.mrb[14].mxu1  ;;  %v4434_v60 = vld [vmem:[#allocation9 + $0x8] sm:$0xff] (!%p5083_p0)  ;;  %v4452_v30 = vld [vmem:[#allocation9 + $0x98] sm:$0xff] (!%p5083_p0)  ;;  %v5208_v44 = vpack.c.bf16 (!%p5083_p0), %v4315_v11, %v4313_v46  ;;  %v5224_v11 = vpack.c.bf16 (!%p5083_p0), %v4331_v41, %v4329_v3 }
 0x320   : > { %v4266_v14 = vadd.f32 %v4260_v2, %v2656_v34  ;;  %v4264_v58 = vpop.f32.mrb[15].mxu1  ;;  %v5206_v34 = vpack.c.bf16 (!%p5083_p0), %v4310_v43, %v4308_v56  ;;  %v5246_v51 = vpack.c.bf16 (!%p5083_p0), %v4434_v60, %v4433_v21  ;;  %v4435_v2 = vld [vmem:[#allocation9 + $0x10] sm:$0xff] (!%p5083_p0)  ;;  %5245 = vmatprep.subr.bf16.mxu1 (!%p5083_p0), %v5244_v23  ;;  %v5248_v10 = vpack.c.bf16 (!%p5083_p0), %v4452_v30, %v4451_v36  ;;  %v4461_v43 = vld [vmem:[#allocation9 + $0xe0] sm:$0xff] (!%p5083_p0)  ;;  %v4462_v46 = vld [vmem:[#allocation9 + $0xe8] sm:$0xff] (!%p5083_p0) }
 0x321   : > { %v4267_v45 = vadd.f32 %v4262_v38, %v2657_v15  ;;  %v4436_v15 = vld [vmem:[#allocation9 + $0x18] sm:$0xff] (!%p5083_p0)  ;;  %v4314_v38 = vld [vmem:[#allocation6 + $0xf0] sm:$0xff] (!%p5083_p0)  ;;  %v5222_v56 = vpack.c.bf16 (!%p5083_p0), %v4326_v24, %v4324_v13  ;;  %v5266_v21 = vpack.c.bf16 (!%p5083_p0), %v4444_v33, %v4443_v8  ;;  %v5268_v60 = vpack.c.bf16 (!%p5083_p0), %v4462_v46, %v4461_v43  ;;  %v4543_v24 = vld [vmem:[#allocation12] sm:$0xff] (!%p5083_p0) }
 0x322   : > { %4268 = vst [vmem:[#allocation2] sm:$0xff] %v4266_v14  ;;  %v4453_v14 = vld [vmem:[#allocation9 + $0xa0] sm:$0xff] (!%p5083_p0)  ;;  %v4454_v58 = vld [vmem:[#allocation9 + $0xa8] sm:$0xff] (!%p5083_p0)  ;;  %5247 = vmatpush3.bf16.msra.mxu1 (!%p5083_p0), %v5246_v51  ;;  %v5250_v18 = vpack.c.bf16 (!%p5083_p0), %v4436_v15, %v4435_v2  ;;  %5207 = vmatpush1.bf16.msra.mxu0 (!%p5083_p0), %v5206_v34  ;;  %v5210_v48 = vpack.c.bf16 (!%p5083_p0), %v4314_v38, %v4312_v25  ;;  %v4335_v23 = vld [vmem:[#allocation6 + $0x198] sm:$0xff] (!%p5083_p0) }
 0x323   : > { %4269 = vst [vmem:[#allocation2 + $0x8] sm:$0xff] %v4267_v45  ;;  %v4317_v45 = vld [vmem:[#allocation6 + $0x108] sm:$0xff] (!%p5083_p0)  ;;  %5249 = vmatprep.subr.bf16.mxu1 (!%p5083_p0), %v5248_v10  ;;  %v5252_v63 = vpack.c.bf16 (!%p5083_p0), %v4454_v58, %v4453_v14  ;;  %5209 = vmatprep.subr.bf16.mxu0 (!%p5083_p0), %v5208_v44  ;;  %v4328_v54 = vld [vmem:[#allocation6 + $0x160] sm:$0xff] (!%p5083_p0)  ;;  %v4330_v9 = vld [vmem:[#allocation6 + $0x170] sm:$0xff] (!%p5083_p0) }
 0x324   : > { %v5212_v22 = vpack.c.bf16 %v4319_v6, %v4317_v45  ;;  %v4333_v25 = vld [vmem:[#allocation6 + $0x188] sm:$0xff]  ;;  %v5226_v36 = vpack.c.bf16 %v4330_v9, %v4328_v54  ;;  %v4332_v51 = vld [vmem:[#allocation6 + $0x180] sm:$0xff]  ;;  %v4334_v30 = vld [vmem:[#allocation6 + $0x190] sm:$0xff] }
 0x325   : > { %v5228_v34 = vpack.c.bf16 %v4335_v23, %v4333_v25  ;;  %v4337_v2 = vld [vmem:[#allocation6 + $0x1a8] sm:$0xff]  ;;  %v4339_v15 = vld [vmem:[#allocation6 + $0x1b8] sm:$0xff]  ;;  %v5230_v44 = vpack.c.bf16 %v4334_v30, %v4332_v51  ;;  %v4336_v10 = vld [vmem:[#allocation6 + $0x1a0] sm:$0xff] }
 0x326   : > { %5251 = vmatpush3.bf16.msra.mxu1 %v5250_v18  ;;  %5211 = vmatpush1.bf16.msra.mxu0 %v5210_v48  ;;  %v5232_v38 = vpack.c.bf16 %v4339_v15, %v4337_v2  ;;  %v4338_v14 = vld [vmem:[#allocation6 + $0x1b0] sm:$0xff]  ;;  %v4341_v58 = vld [vmem:[#allocation6 + $0x1c8] sm:$0xff]  ;;  %v4343_v45 = vld [vmem:[#allocation6 + $0x1d8] sm:$0xff] }
 0x327   : > { %5253 = vmatprep.subr.bf16.mxu1 %v5252_v63  ;;  %5213 = vmatprep.subr.bf16.mxu0 %v5212_v22  ;;  %v5234_v6 = vpack.c.bf16 %v4338_v14, %v4336_v10  ;;  %v5236_v18 = vpack.c.bf16 %v4343_v45, %v4341_v58  ;;  %v4340_v63 = vld [vmem:[#allocation6 + $0x1c0] sm:$0xff]  ;;  %v4347_v48 = vld [vmem:[#allocation6 + $0x1f8] sm:$0xff]  ;;  %v4544_v3 = vld [vmem:[#allocation12 + $0x8] sm:$0xff]  ;;  %v5709_v14 = vmov 0.0  }
 0x328   : > { %v5238_v52 = vpack.c.bf16 %v4342_v31, %v4340_v63  ;;  %v5240_v16 = vpack.c.bf16 %v4347_v48, %v4345_v19  ;;  %v4344_v22 = vld [vmem:[#allocation6 + $0x1e0] sm:$0xff]  ;;  %v4545_v33 = vld [vmem:[#allocation12 + $0x10] sm:$0xff]  ;;  %v4556_v2 = vld [vmem:[#allocation12 + $0x68] sm:$0xff] }
 0x329   : > { %v5242_v27 = vpack.c.bf16 %v4346_v57, %v4344_v22  ;;  %v4274_v12 = vld [vmem:[#allocation2] sm:$0xff]  ;;  %v4547_v46 = vld [vmem:[#allocation12 + $0x20] sm:$0xff]  ;;  %v4550_v9 = vld [vmem:[#allocation12 + $0x38] sm:$0xff] }
 0x32a   : > { %5255 = vmatpush3.bf16.msra.mxu1 %v5254_v4  ;;  %5215 = vmatpush1.bf16.msra.mxu0 %v5214_v62  ;;  %v4275_v53 = vld [vmem:[#allocation2 + $0x8] sm:$0xff]  ;;  %v4280_v4 = vpop.permute.xlu0 %4279  ;;  %v4446_v62 = vld [vmem:[#allocation9 + $0x68] sm:$0xff]  ;;  %v5084_v45 = vld [vmem:[#allocation11] ss:$0 sm:$0xff] }
 0x32b   : > { %5257 = vmatprep.subr.bf16.mxu1 %v5256_v26  ;;  %5217 = vmatprep.subr.bf16.mxu0 %v5216_v39  ;;  %v4282_v26 = vmul.f32 %v4280_v4, %v4274_v12  ;;  %v4283_v1 = vmul.f32 %v4280_v4, %v4275_v53  ;;  %v5270_v0 = vpack.c.bf16 %v4446_v62, %v4445_v37  ;;  %v4464_v39 = vld [vmem:[#allocation9 + $0xf8] sm:$0xff]  ;;  %v4551_v23 = vld [vmem:[#allocation12 + $0x40] sm:$0xff] }
 0x32c   : > { %v5272_v61 = vpack.c.bf16 %v4464_v39, %v4463_v50  ;;  %v4549_v54 = vld [vmem:[#allocation12 + $0x30] sm:$0xff]  ;;  %v4555_v30 = vld [vmem:[#allocation12 + $0x60] sm:$0xff] }
 0x32d   : > { %4424 = vmatprep.mubr.f32.mxu0 %v4283_v1  ;;  %v5286_v25 = vpack.c.bf16 %v4550_v9, %v4549_v54  ;;  %v5295_v15 = vpack.c.bf16 %v4556_v2, %v4555_v30  ;;  %v5085_v19 = vld [vmem:[#allocation14] ss:$0 sm:$0xff] }
 0x32e   : > { %5259 = vmatpush3.bf16.msra.mxu1 %v5258_v49  ;;  %5219 = vmatpush1.bf16.msra.mxu0 %v5218_v55  ;;  %v5707_v49 = vmov 0.0|0.0  }
 0x32f   : > { %5261 = vmatprep.subr.bf16.mxu1 %v5260_v47  ;;  %5221 = vmatprep.subr.bf16.mxu0 %v5220_v42  ;;  %v4352_v47 = vsub.s32 0, %v6037_v5  ;;  %v4548_v5 = vld [vmem:[#allocation12 + $0x28] sm:$0xff] }
 0x331   : > { %v4353_v55 = vrot.slane %v4348_v40, %v4352_v47 }
 0x332   : > { %5263 = vmatpush3.bf16.msra.mxu1 %v5262_v35  ;;  %5223 = vmatpush1.bf16.msra.mxu0 %v5222_v56  ;;  %v4546_v56 = vld [vmem:[#allocation12 + $0x18] sm:$0xff] }
 0x333   : > { %5265 = vmatprep.subr.bf16.mxu1 %v5264_v59  ;;  %5225 = vmatprep.subr.bf16.mxu0 %v5224_v11  ;;  %v5277_v59 = vpack.c.bf16 %v4544_v3, %v4543_v24  ;;  %v5280_v43 = vpack.c.bf16 %v4546_v56, %v4545_v33  ;;  %v5283_v11 = vpack.c.bf16 %v4548_v5, %v4547_v46 }
 0x336   : > { %5267 = vmatpush3.bf16.msra.mxu1 %v5266_v21  ;;  %5227 = vmatpush1.bf16.msra.mxu0 %v5226_v36  ;;  %v4552_v21 = vld [vmem:[#allocation12 + $0x48] sm:$0xff]  ;;  %v4553_v36 = vld [vmem:[#allocation12 + $0x50] sm:$0xff] }
 0x337   : > { %5269 = vmatprep.subr.bf16.mxu1 %v5268_v60  ;;  %5229 = vmatprep.subr.bf16.mxu0 %v5228_v34  ;;  %v5289_v60 = vpack.c.bf16 %v4552_v21, %v4551_v23  ;;  %v4554_v34 = vld [vmem:[#allocation12 + $0x58] sm:$0xff] }
 0x338   : > { %v5292_v51 = vpack.c.bf16 %v4554_v34, %v4553_v36 }
 0x33a   : > { %5231 = vmatpush1.bf16.msra.mxu0 %v5230_v44  ;;  %5271 = vmatpush3.bf16.msra.mxu1 %v5270_v0  ;;  %v4557_v44 = vld [vmem:[#allocation12 + $0x70] sm:$0xff] }
 0x33b   : > { %5233 = vmatprep.subr.bf16.mxu0 %v5232_v38  ;;  %5273 = vmatprep.subr.bf16.mxu1 %v5272_v61  ;;  %v4558_v38 = vld [vmem:[#allocation12 + $0x78] sm:$0xff] }
 0x33c   : > { %v5298_v10 = vpack.c.bf16 %v4558_v38, %v4557_v44 }
 0x33e   : > { %5235 = vmatpush1.bf16.msra.mxu0 %v5234_v6  ;;  %5275 = vmatpush3.bf16.msra.mxu1 %v5274_v28 }
 0x33f   : > { %5237 = vmatprep.subr.bf16.mxu0 %v5236_v18  ;;  %5276 = vmatprep.subr.bf16.mxu1 %v5707_v49 }
 0x342   : > { %5239 = vmatpush1.bf16.msra.mxu0 %v5238_v52 }
 0x343   : > { %5241 = vmatprep.subr.bf16.mxu0 %v5240_v16 }
 0x346   : > { %5243 = vmatpush1.bf16.msra.mxu0 %v5242_v27 }
 0x349   : > { %4425 = vmatmul.mubr.f32.vlgmr.msra.gmra.mrb[0].mxu0 %v4282_v26 }
 0x41c   : > { %v4426_v29 = vpop.f32.mrb[0].mxu0 }
 0x41d   : > { %v4427_v42 = vadd.f32 %v4426_v29, %v4353_v55  ;;  %v4428_v13 = vpop.f32.mrb[1].mxu0 }
 0x41e   : > { %v4429_v41 = vadd.f32 %v4428_v13, %v4357_v7 }
 0x41f   : > { %v4431_v8 = vmax.f32 %v4427_v42, 0.0 }
 0x420   : > { %v4432_v35 = vmax.f32 %v4429_v41, 0.0 }
 0x422   : > { %4536 = vmatprep.mubr.f32.mxu1 %v4432_v35 }
 0x423   : > { %4537 = vmatmul.mubr.f32.vlgmr.msra.gmra.mrb[0].mxu1 %v4431_v8 }
 0x424   : > { %5278 = vmatpush3.bf16.msra.mxu1 %v5277_v59  ;;  %5177 = vmatprep.mubr.msk.f32.mxu1 %vm5708_vm15, %v5709_v14 }
 0x425   : > { %5279 = vmatprep.subr.bf16.mxu1 %v5707_v49 }
 0x428   : > { %5281 = vmatpush3.bf16.msra.mxu1 %v5280_v43 }
 0x429   : > { %5282 = vmatprep.subr.bf16.mxu1 %v5707_v49 }
 0x42c   : > { %5284 = vmatpush3.bf16.msra.mxu1 %v5283_v11 }
 0x42d   : > { %5285 = vmatprep.subr.bf16.mxu1 %v5707_v49 }
 0x430   : > { %5287 = vmatpush3.bf16.msra.mxu1 %v5286_v25 }
 0x431   : > { %5288 = vmatprep.subr.bf16.mxu1 %v5707_v49 }
 0x434   : > { %5290 = vmatpush3.bf16.msra.mxu1 %v5289_v60 }
 0x435   : > { %5291 = vmatprep.subr.bf16.mxu1 %v5707_v49 }
 0x438   : > { %5293 = vmatpush3.bf16.msra.mxu1 %v5292_v51 }
 0x439   : > { %5294 = vmatprep.subr.bf16.mxu1 %v5707_v49 }
 0x43c   : > { %5296 = vmatpush3.bf16.msra.mxu1 %v5295_v15 }
 0x43d   : > { %5297 = vmatprep.subr.bf16.mxu1 %v5707_v49 }
 0x440   : > { %5299 = vmatpush3.bf16.msra.mxu1 %v5298_v10 }
 0x4f6   : > { %v5125_v58 = vpop.f32.mrb[0].mxu1 }
 0x4f7   : > { %v5126_v6 = vpop.f32.mrb[1].mxu1 }
 0x4f8   : > { %v5127_v18 = vadd.f32 %v5126_v6, %v5125_v58 }
 0x4fa   : > { %v4539_v63 = vadd.f32 %v5127_v18, %v5084_v45 }
 0x4fc   : > { %v4542_v31 = vmax.f32 %v4539_v63, 0.0 }
 0x4fe   : > { %5178 = vmatmul.mubr.f32.vlgmr.msra.gmra.mrb[2].mxu1 %v4542_v31 }
 0x5d1   : > { %v4632_v48 = vpop.f32.mrb[2].mxu1 }
 0x5d2   : > { %v4633_v52 = vadd.f32 %v5085_v19, %v4632_v48  ;;  %v5179_v16 = vpop.f32.mrb[3].mxu1 }
 0x5d4   : > { %4636 = vst [vmem:[#allocation15] sm:$0xff] %v4633_v52 }
 0x5d5 PF: > { %p5360_p5 = scmp.eq.s32.totalorder %s5785_s17, 1  ;;  %s5710_s2 = smov [#allocation15]  }
 0x5d6   : > { %s4644_s20 = sshll.u32 %s5710_s2, 4  ;;  %s4645_s20 = int_to_ptr.vmem [resolvable:$true] %s4644_s20 }
 0x5d7   : > { %s5612_s13 = scalar_lea.vmem %s4645_s20, 128  ;;  %p5619_p9 = scmp.lt.s32.totalorder %s4645_s20, %s4645_s20 }
 0x5d8   : > { %p5613_p4 = scmp.ne.s32.totalorder %s4645_s20, %s5612_s13  ;;  %p5620_p1 = scmp.lt.s32.totalorder %s5612_s13, %s5612_s13 }
 0x5da   : > { %p5614_p8 = pnand %p5613_p4, %p5360_p5  ;;  %p5621_p2 = por %p5620_p1, %p5619_p9 }
 0x5dc   : > { %p5615_p10 = pneg %p5614_p8 }
 0x5de   : > { %p5622_p12 = pnand %p5621_p2, %p5615_p10 }
 0x5e0   : > { %5625 = shalt.err (!%p5622_p12)
}
 0x5e1   : > { %s8732_s25 = sld [smem:[#allocation25_spill]] }
 0x5e7   : > { %s5626_s19 = scalar_lea.hbm %s8732_s25, 128 }
 0x5e8   : > { %p5627_p3 = scmp.ne.s32.totalorder %s8732_s25, %s5626_s19  ;;  %p5632_p11 = scmp.lt.u32.totalorder %s5626_s19, %s8732_s25 }
 0x5ea   : > { %p5628_p6 = pnand %p5627_p3, %p5360_p5 }
 0x5ec   : > { %p5629_p7 = pneg %p5628_p6 }
 0x5ee   : > { %p5634_p13 = pnand %p5632_p11, %p5629_p7 }
 0x5f0   : > { %5637 = shalt.err (!%p5634_p13)
}
 0x5f1   : > { %5326 = dma.vmem_to_hbm [thread:$0]  (%p5360_p5), %s4645_s20, 128, %s8732_s25, [#allocation5]  }
 0x5f2   : > { %5671 = dma.done.wait (%p5360_p5), [#allocation5], 128  }
 0x5f3   : > { %5673 = vsyncadd (%p5360_p5), [#allocation5], 4294967168 }
 0x5f4 PF: > { %s8733_s16 = sld [smem:[#allocation21_spill]]  ;;  %s8734_s24 = sld [smem:[#allocation22_spill]] }
 0x5f5   : > { %s8735_s13 = smov %s5680_s14  ;;  %s8736_s14 = smov %s5684_s15 }
 0x5fa   : > { %p24_p0 = scmp.ge.s32.totalorder %s8733_s16, 4   ;;  %s8737_s15 = smov %s8734_s24 }
 0x5fc   :  { %26 = sbr.rel (!%p24_p0) target bundleno = 11 (0xb), region = 129 }
 0x603   :  { %4657 = vsyncpa [#allocation4], 1 }
 0x604   :  { %4659 = vsyncpa [#allocation4 + $0x1], 1 }
 0x605   :  { %4660 = vsyncpa [#allocation7], 1 }
 0x606   :  { %4661 = vsyncpa [#allocation10], 1 }
 0x607   :  { %4662 = vsyncpa [#allocation13], 1 }
 0x608   :  { %4663 = vsyncpa [#allocation5], 1 }
 0x609   :  { %4665 = vsyncpa [#allocation5 + $0x1], 1 }

</bundles_post_ra>
